<compile_context>
chip_gen: v5e
topology: v5e:2x2
jax: 0.10.0
libtpu: 0.0.40
codegen_flags: <defaults>
</compile_context>

<pallas_src>
import jax
import jax.numpy as jnp
from jax.experimental import pallas as pl
from jax.experimental.pallas import tpu as pltpu


def _sigmoid(z):
    # exact sigmoid (exp goes to the EUP); exact divide keeps us well inside 1e-4 of ref
    return 1.0 / (1.0 + jnp.exp(-z))


def _make_cbam_kernel(H, W):
    HW = H * W

    def kernel(x_ref, w1_ref, w2_ref, wc_ref, out_ref):
        # x_ref: (1, C, HW)   w1_ref: (Ch, C)   w2_ref: (C, Ch)
        # wc_ref (SMEM): (2, 49) flattened 7x7 conv weights   out_ref: (1, C, HW)
        x = x_ref[0]                                            # [C, HW]

        # ---- channel attention: avg/max over HW (lane reduce) -> shared MLP ----
        avg_c = jnp.mean(x, axis=1, keepdims=True)              # [C, 1]
        max_c = jnp.max(x, axis=1, keepdims=True)               # [C, 1]
        pooled = jnp.concatenate([avg_c, max_c], axis=1)        # [C, 2]
        h = jnp.maximum(
            jnp.dot(w1_ref[...], pooled, preferred_element_type=jnp.float32), 0.0
        )                                                       # [Ch, 2]  (Linear + ReLU)
        o2 = jnp.dot(w2_ref[...], h, preferred_element_type=jnp.float32)   # [C, 2]
        ca = _sigmoid(jnp.sum(o2, axis=1, keepdims=True))       # [C, 1]  (avg-path + max-path)
        x_ca = x * ca                                           # [C, HW] broadcast over lanes

        # ---- spatial attention: channel mean/max (sublane reduce) -> 7x7 conv ----
        mean_r = jnp.mean(x_ca, axis=0, keepdims=True)          # [1, HW]
        max_r = jnp.max(x_ca, axis=0, keepdims=True)            # [1, HW]

        # x coordinate of each flat position (for column-boundary masks).
        pos = jax.lax.broadcasted_iota(jnp.int32, (1, HW), 1)
        if (W & (W - 1)) == 0:
            xs = jnp.bitwise_and(pos, W - 1)
        else:
            xs = pos % W  # not exercised at the test shape

        def shift_zero(v, off):
            # u[:, i] = v[:, i + off] if 0 <= i + off < HW else 0
            if off == 0:
                return v
            if off > 0:
                return jnp.concatenate(
                    [v[:, off:], jnp.zeros((1, off), v.dtype)], axis=1)
            return jnp.concatenate(
                [jnp.zeros((1, -off), v.dtype), v[:, :HW + off]], axis=1)

        # Row (y) boundary handling is implicit: out-of-image rows fall into the
        # zero-filled ends of the flat shift; only the column (x) wrap needs a mask.
        accs = [jnp.zeros((1, HW), jnp.float32) for _ in range(4)]
        k = 0
        for dx in range(7):
            dxo = dx - 3
            if dxo > 0:
                xm = xs < (W - dxo)
            elif dxo < 0:
                xm = xs >= (-dxo)
            else:
                xm = None
            for dy in range(7):
                dyo = dy - 3
                widx = dy * 7 + dx
                # both pooled channels share this tap's spatial shift -> combine first
                comb = wc_ref[0, widx] * mean_r + wc_ref[1, widx] * max_r   # [1, HW]
                contrib = shift_zero(comb, dyo * W + dxo)
                if xm is not None:
                    contrib = jnp.where(xm, contrib, 0.0)
                accs[k & 3] = accs[k & 3] + contrib
                k += 1
        conv = (accs[0] + accs[1]) + (accs[2] + accs[3])        # [1, HW]
        sa = _sigmoid(conv)                                     # [1, HW]

        out_ref[0] = (x_ca * sa).astype(out_ref.dtype)          # lane-dense store

    return kernel


def cbam_forward(x, w1, w2, w_conv):
    """x: [B, C, H, W]; w1: [Ch, C]; w2: [C, Ch]; w_conv: [1, 2, 7, 7] (all f32)."""
    B, C, H, W = x.shape
    HW = H * W
    Ch = w1.shape[0]

    # Free, layout-preserving reshapes (no transposes, no extra HBM passes).
    x_flat = x.reshape(B, C, HW)
    w_flat = w_conv.reshape(2, 49)

    # TODO(synk): for production CBAM shapes (large C / HW) tile HW as an extra grid
    # axis (pool-accumulate pass + apply pass) and re-budget for v7x's 64 MiB VMEM.
    out_flat = pl.pallas_call(
        _make_cbam_kernel(H, W),
        out_shape=jax.ShapeDtypeStruct((B, C, HW), x.dtype),
        grid=(B,),
        in_specs=[
            pl.BlockSpec((1, C, HW), lambda b: (b, 0, 0)),
            pl.BlockSpec((Ch, C), lambda b: (0, 0)),
            pl.BlockSpec((C, Ch), lambda b: (0, 0)),
            pl.BlockSpec(memory_space=pltpu.MemorySpace.SMEM),
        ],
        out_specs=pl.BlockSpec((1, C, HW), lambda b: (b, 0, 0)),
        compiler_params=pltpu.CompilerParams(
            dimension_semantics=("parallel",),
            vmem_limit_bytes=64 << 20,
        ),
    )(x_flat, w1, w2, w_flat)

    return out_flat.reshape(B, C, H, W)


# ---------------------------------------------------------------------------
# Pure-JAX reference for verification
# ---------------------------------------------------------------------------
def cbam_ref(x, w1, w2, w_conv):
    avg = jnp.mean(x, axis=(2, 3))
    mx = jnp.max(x, axis=(2, 3))

    def mlp(v):
        return jnp.maximum(v @ w1.T, 0.0) @ w2.T

    ca = jax.nn.sigmoid(mlp(avg) + mlp(mx))[:, :, None, None]
    x = x * ca
    avg_s = jnp.mean(x, axis=1, keepdims=True)
    max_s = jnp.max(x, axis=1, keepdims=True)
    s = jnp.concatenate([avg_s, max_s], axis=1)
    conv = jax.lax.conv_general_dilated(
        s, w_conv, window_strides=(1, 1), padding=((3, 3), (3, 3)),
        dimension_numbers=("NCHW", "OIHW", "NCHW"))
    return x * jax.nn.sigmoid(conv)


if __name__ == "__main__":
    B, C, H, W = 2, 32, 16, 16
    reduction = 16
    Ch = C // reduction

    key = jax.random.PRNGKey(0)
    kx, k1, k2, k3 = jax.random.split(key, 4)
    x = jax.random.normal(kx, (B, C, H, W), dtype=jnp.float32)
    w1 = 0.1 * jax.random.normal(k1, (Ch, C), dtype=jnp.float32)           # Linear(C -> C//r)
    w2 = 0.1 * jax.random.normal(k2, (C, Ch), dtype=jnp.float32)           # Linear(C//r -> C)
    w_conv = 0.1 * jax.random.normal(k3, (1, 2, 7, 7), dtype=jnp.float32)  # Conv2d(2 -> 1, k=7)

    out = jax.block_until_ready(cbam_forward(x, w1, w2, w_conv))
    ref = jax.block_until_ready(cbam_ref(x, w1, w2, w_conv))

    assert out.shape == (B, C, H, W)
    assert jnp.allclose(out, ref, atol=1e-4, rtol=1e-4), float(jnp.max(jnp.abs(out - ref)))
    print("KERNEL_OK")
</pallas_src>

<mosaic_0001>
module attributes {stable_mosaic.version = 11 : i64} {
  func.func @kernel(%arg0: i32, %arg1: memref<1x32x256xf32, #tpu.memory_space<vmem>>, %arg2: memref<2x32xf32, #tpu.memory_space<vmem>>, %arg3: memref<32x2xf32, #tpu.memory_space<vmem>>, %arg4: memref<2x49xf32, #tpu.memory_space<smem>>, %arg5: memref<1x32x256xf32, #tpu.memory_space<vmem>>) attributes {dimension_semantics = [#tpu.dimension_semantics<parallel>], iteration_bounds = array<i64: 2>, scalar_prefetch = 0 : i64, scratch_operands = 0 : i64, tpu.core_type = #tpu.core_type<tc>, window_params = [{transform_indices = @transform_0, window_bounds = array<i64: 1, 32, 256>}, {pipeline_mode = #tpu.pipeline_mode<synchronous>, transform_indices = @transform_1, window_bounds = array<i64: 2, 32>}, {pipeline_mode = #tpu.pipeline_mode<synchronous>, transform_indices = @transform_2, window_bounds = array<i64: 32, 2>}, {transform_indices = @transform_3, window_bounds = array<i64: 2, 49>}, {transform_indices = @transform_4, window_bounds = array<i64: 1, 32, 256>}]} {
    %c0 = arith.constant 0 : index
    %c0_0 = arith.constant 0 : index
    %c0_1 = arith.constant 0 : index
    %0 = vector.load %arg1[%c0, %c0_0, %c0_1] : memref<1x32x256xf32, #tpu.memory_space<vmem>>, vector<1x32x256xf32>
    %1 = vector.shape_cast %0 : vector<1x32x256xf32> to vector<32x256xf32>
    %cst = arith.constant dense<0.000000e+00> : vector<32xf32>
    %2 = vector.multi_reduction <add>, %1, %cst [1] : vector<32x256xf32> to vector<32xf32>
    %3 = vector.shape_cast %2 : vector<32xf32> to vector<32x1xf32>
    %cst_2 = arith.constant 2.560000e+02 : f32
    %4 = vector.broadcast %cst_2 : f32 to vector<32x1xf32>
    %5 = arith.divf %3, %4 : vector<32x1xf32>
    %cst_3 = arith.constant dense<0xFF800000> : vector<32xf32>
    %6 = vector.multi_reduction <maximumf>, %1, %cst_3 [1] : vector<32x256xf32> to vector<32xf32>
    %7 = vector.shape_cast %6 : vector<32xf32> to vector<32x1xf32>
    %8 = tpu.concatenate %5, %7 in 1 : vector<32x1xf32>, vector<32x1xf32> -> vector<32x2xf32>
    %c0_4 = arith.constant 0 : index
    %c0_5 = arith.constant 0 : index
    %9 = vector.load %arg2[%c0_4, %c0_5] : memref<2x32xf32, #tpu.memory_space<vmem>>, vector<2x32xf32>
    %cst_6 = arith.constant dense<0.000000e+00> : vector<2x2xf32>
    %10 = tpu.matmul %9, %8, %cst_6 {dimension_numbers = #tpu.dot_dimension_numbers<[1], [0], [0], [1], [0, 0, 1, 1], [], []>} : vector<2x32xf32>, vector<32x2xf32>, vector<2x2xf32> -> vector<2x2xf32>
    %cst_7 = arith.constant 0.000000e+00 : f32
    %11 = vector.broadcast %cst_7 : f32 to vector<2x2xf32>
    %12 = arith.maximumf %10, %11 : vector<2x2xf32>
    %c0_8 = arith.constant 0 : index
    %c0_9 = arith.constant 0 : index
    %13 = vector.load %arg3[%c0_8, %c0_9] : memref<32x2xf32, #tpu.memory_space<vmem>>, vector<32x2xf32>
    %cst_10 = arith.constant dense<0.000000e+00> : vector<32x2xf32>
    %14 = tpu.matmul %13, %12, %cst_10 {dimension_numbers = #tpu.dot_dimension_numbers<[1], [0], [0], [1], [0, 0, 1, 1], [], []>} : vector<32x2xf32>, vector<2x2xf32>, vector<32x2xf32> -> vector<32x2xf32>
    %cst_11 = arith.constant dense<0.000000e+00> : vector<32xf32>
    %15 = vector.multi_reduction <add>, %14, %cst_11 [1] : vector<32x2xf32> to vector<32xf32>
    %16 = vector.shape_cast %15 : vector<32xf32> to vector<32x1xf32>
    %cst_12 = arith.constant 0.000000e+00 : f32
    %17 = vector.broadcast %cst_12 : f32 to vector<32x1xf32>
    %18 = arith.subf %17, %16 : vector<32x1xf32>
    %19 = math.exp %18 : vector<32x1xf32>
    %cst_13 = arith.constant 1.000000e+00 : f32
    %20 = vector.broadcast %cst_13 : f32 to vector<32x1xf32>
    %21 = arith.addf %20, %19 : vector<32x1xf32>
    %cst_14 = arith.constant 1.000000e+00 : f32
    %22 = vector.broadcast %cst_14 : f32 to vector<32x1xf32>
    %23 = arith.divf %22, %21 : vector<32x1xf32>
    %24 = vector.broadcast %23 : vector<32x1xf32> to vector<32x256xf32>
    %25 = arith.mulf %1, %24 : vector<32x256xf32>
    %cst_15 = arith.constant dense<0.000000e+00> : vector<256xf32>
    %26 = vector.multi_reduction <add>, %25, %cst_15 [0] : vector<32x256xf32> to vector<256xf32>
    %27 = vector.shape_cast %26 : vector<256xf32> to vector<1x256xf32>
    %cst_16 = arith.constant 3.200000e+01 : f32
    %28 = vector.broadcast %cst_16 : f32 to vector<1x256xf32>
    %29 = arith.divf %27, %28 : vector<1x256xf32>
    %cst_17 = arith.constant dense<0xFF800000> : vector<256xf32>
    %30 = vector.multi_reduction <maximumf>, %25, %cst_17 [0] : vector<32x256xf32> to vector<256xf32>
    %31 = vector.shape_cast %30 : vector<256xf32> to vector<1x256xf32>
    %32 = tpu.iota {dimensions = array<i32: 1>} : vector<1x256xi32>
    %c15_i32 = arith.constant 15 : i32
    %33 = vector.broadcast %c15_i32 : i32 to vector<1x256xi32>
    %34 = arith.andi %32, %33 : vector<1x256xi32>
    %cst_18 = arith.constant 0.000000e+00 : f32
    %35 = vector.broadcast %cst_18 : f32 to vector<1x256xf32>
    %cst_19 = arith.constant 0.000000e+00 : f32
    %36 = vector.broadcast %cst_19 : f32 to vector<1x256xf32>
    %cst_20 = arith.constant 0.000000e+00 : f32
    %37 = vector.broadcast %cst_20 : f32 to vector<1x256xf32>
    %cst_21 = arith.constant 0.000000e+00 : f32
    %38 = vector.broadcast %cst_21 : f32 to vector<1x256xf32>
    %c3_i32 = arith.constant 3 : i32
    %39 = vector.broadcast %c3_i32 : i32 to vector<1x256xi32>
    %40 = arith.cmpi sge, %34, %39 : vector<1x256xi32>
    %c0_22 = arith.constant 0 : index
    %c0_23 = arith.constant 0 : index
    %41 = memref.load %arg4[%c0_22, %c0_23] : memref<2x49xf32, #tpu.memory_space<smem>>
    %42 = vector.broadcast %41 : f32 to vector<1x256xf32>
    %43 = arith.mulf %42, %29 : vector<1x256xf32>
    %c1 = arith.constant 1 : index
    %c0_24 = arith.constant 0 : index
    %44 = memref.load %arg4[%c1, %c0_24] : memref<2x49xf32, #tpu.memory_space<smem>>
    %45 = vector.broadcast %44 : f32 to vector<1x256xf32>
    %46 = arith.mulf %45, %31 : vector<1x256xf32>
    %47 = arith.addf %43, %46 : vector<1x256xf32>
    %cst_25 = arith.constant 0.000000e+00 : f32
    %48 = vector.broadcast %cst_25 : f32 to vector<1x51xf32>
    %49 = vector.extract_strided_slice %47 {offsets = [0, 0], sizes = [1, 205], strides = [1, 1]} : vector<1x256xf32> to vector<1x205xf32>
    %50 = tpu.concatenate %48, %49 in 1 : vector<1x51xf32>, vector<1x205xf32> -> vector<1x256xf32>
    %cst_26 = arith.constant 0.000000e+00 : f32
    %51 = vector.broadcast %cst_26 : f32 to vector<1x256xf32>
    %52 = arith.select %40, %50, %51 : vector<1x256xi1>, vector<1x256xf32>
    %53 = arith.addf %35, %52 : vector<1x256xf32>
    %c0_27 = arith.constant 0 : index
    %c7 = arith.constant 7 : index
    %54 = memref.load %arg4[%c0_27, %c7] : memref<2x49xf32, #tpu.memory_space<smem>>
    %55 = vector.broadcast %54 : f32 to vector<1x256xf32>
    %56 = arith.mulf %55, %29 : vector<1x256xf32>
    %c1_28 = arith.constant 1 : index
    %c7_29 = arith.constant 7 : index
    %57 = memref.load %arg4[%c1_28, %c7_29] : memref<2x49xf32, #tpu.memory_space<smem>>
    %58 = vector.broadcast %57 : f32 to vector<1x256xf32>
    %59 = arith.mulf %58, %31 : vector<1x256xf32>
    %60 = arith.addf %56, %59 : vector<1x256xf32>
    %cst_30 = arith.constant 0.000000e+00 : f32
    %61 = vector.broadcast %cst_30 : f32 to vector<1x35xf32>
    %62 = vector.extract_strided_slice %60 {offsets = [0, 0], sizes = [1, 221], strides = [1, 1]} : vector<1x256xf32> to vector<1x221xf32>
    %63 = tpu.concatenate %61, %62 in 1 : vector<1x35xf32>, vector<1x221xf32> -> vector<1x256xf32>
    %cst_31 = arith.constant 0.000000e+00 : f32
    %64 = vector.broadcast %cst_31 : f32 to vector<1x256xf32>
    %65 = arith.select %40, %63, %64 : vector<1x256xi1>, vector<1x256xf32>
    %66 = arith.addf %36, %65 : vector<1x256xf32>
    %c0_32 = arith.constant 0 : index
    %c14 = arith.constant 14 : index
    %67 = memref.load %arg4[%c0_32, %c14] : memref<2x49xf32, #tpu.memory_space<smem>>
    %68 = vector.broadcast %67 : f32 to vector<1x256xf32>
    %69 = arith.mulf %68, %29 : vector<1x256xf32>
    %c1_33 = arith.constant 1 : index
    %c14_34 = arith.constant 14 : index
    %70 = memref.load %arg4[%c1_33, %c14_34] : memref<2x49xf32, #tpu.memory_space<smem>>
    %71 = vector.broadcast %70 : f32 to vector<1x256xf32>
    %72 = arith.mulf %71, %31 : vector<1x256xf32>
    %73 = arith.addf %69, %72 : vector<1x256xf32>
    %cst_35 = arith.constant 0.000000e+00 : f32
    %74 = vector.broadcast %cst_35 : f32 to vector<1x19xf32>
    %75 = vector.extract_strided_slice %73 {offsets = [0, 0], sizes = [1, 237], strides = [1, 1]} : vector<1x256xf32> to vector<1x237xf32>
    %76 = tpu.concatenate %74, %75 in 1 : vector<1x19xf32>, vector<1x237xf32> -> vector<1x256xf32>
    %cst_36 = arith.constant 0.000000e+00 : f32
    %77 = vector.broadcast %cst_36 : f32 to vector<1x256xf32>
    %78 = arith.select %40, %76, %77 : vector<1x256xi1>, vector<1x256xf32>
    %79 = arith.addf %37, %78 : vector<1x256xf32>
    %c0_37 = arith.constant 0 : index
    %c21 = arith.constant 21 : index
    %80 = memref.load %arg4[%c0_37, %c21] : memref<2x49xf32, #tpu.memory_space<smem>>
    %81 = vector.broadcast %80 : f32 to vector<1x256xf32>
    %82 = arith.mulf %81, %29 : vector<1x256xf32>
    %c1_38 = arith.constant 1 : index
    %c21_39 = arith.constant 21 : index
    %83 = memref.load %arg4[%c1_38, %c21_39] : memref<2x49xf32, #tpu.memory_space<smem>>
    %84 = vector.broadcast %83 : f32 to vector<1x256xf32>
    %85 = arith.mulf %84, %31 : vector<1x256xf32>
    %86 = arith.addf %82, %85 : vector<1x256xf32>
    %cst_40 = arith.constant 0.000000e+00 : f32
    %87 = vector.broadcast %cst_40 : f32 to vector<1x3xf32>
    %88 = vector.extract_strided_slice %86 {offsets = [0, 0], sizes = [1, 253], strides = [1, 1]} : vector<1x256xf32> to vector<1x253xf32>
    %89 = tpu.concatenate %87, %88 in 1 : vector<1x3xf32>, vector<1x253xf32> -> vector<1x256xf32>
    %cst_41 = arith.constant 0.000000e+00 : f32
    %90 = vector.broadcast %cst_41 : f32 to vector<1x256xf32>
    %91 = arith.select %40, %89, %90 : vector<1x256xi1>, vector<1x256xf32>
    %92 = arith.addf %38, %91 : vector<1x256xf32>
    %c0_42 = arith.constant 0 : index
    %c28 = arith.constant 28 : index
    %93 = memref.load %arg4[%c0_42, %c28] : memref<2x49xf32, #tpu.memory_space<smem>>
    %94 = vector.broadcast %93 : f32 to vector<1x256xf32>
    %95 = arith.mulf %94, %29 : vector<1x256xf32>
    %c1_43 = arith.constant 1 : index
    %c28_44 = arith.constant 28 : index
    %96 = memref.load %arg4[%c1_43, %c28_44] : memref<2x49xf32, #tpu.memory_space<smem>>
    %97 = vector.broadcast %96 : f32 to vector<1x256xf32>
    %98 = arith.mulf %97, %31 : vector<1x256xf32>
    %99 = arith.addf %95, %98 : vector<1x256xf32>
    %100 = vector.extract_strided_slice %99 {offsets = [0, 13], sizes = [1, 243], strides = [1, 1]} : vector<1x256xf32> to vector<1x243xf32>
    %cst_45 = arith.constant 0.000000e+00 : f32
    %101 = vector.broadcast %cst_45 : f32 to vector<1x13xf32>
    %102 = tpu.concatenate %100, %101 in 1 : vector<1x243xf32>, vector<1x13xf32> -> vector<1x256xf32>
    %cst_46 = arith.constant 0.000000e+00 : f32
    %103 = vector.broadcast %cst_46 : f32 to vector<1x256xf32>
    %104 = arith.select %40, %102, %103 : vector<1x256xi1>, vector<1x256xf32>
    %105 = arith.addf %53, %104 : vector<1x256xf32>
    %c0_47 = arith.constant 0 : index
    %c35 = arith.constant 35 : index
    %106 = memref.load %arg4[%c0_47, %c35] : memref<2x49xf32, #tpu.memory_space<smem>>
    %107 = vector.broadcast %106 : f32 to vector<1x256xf32>
    %108 = arith.mulf %107, %29 : vector<1x256xf32>
    %c1_48 = arith.constant 1 : index
    %c35_49 = arith.constant 35 : index
    %109 = memref.load %arg4[%c1_48, %c35_49] : memref<2x49xf32, #tpu.memory_space<smem>>
    %110 = vector.broadcast %109 : f32 to vector<1x256xf32>
    %111 = arith.mulf %110, %31 : vector<1x256xf32>
    %112 = arith.addf %108, %111 : vector<1x256xf32>
    %113 = vector.extract_strided_slice %112 {offsets = [0, 29], sizes = [1, 227], strides = [1, 1]} : vector<1x256xf32> to vector<1x227xf32>
    %cst_50 = arith.constant 0.000000e+00 : f32
    %114 = vector.broadcast %cst_50 : f32 to vector<1x29xf32>
    %115 = tpu.concatenate %113, %114 in 1 : vector<1x227xf32>, vector<1x29xf32> -> vector<1x256xf32>
    %cst_51 = arith.constant 0.000000e+00 : f32
    %116 = vector.broadcast %cst_51 : f32 to vector<1x256xf32>
    %117 = arith.select %40, %115, %116 : vector<1x256xi1>, vector<1x256xf32>
    %118 = arith.addf %66, %117 : vector<1x256xf32>
    %c0_52 = arith.constant 0 : index
    %c42 = arith.constant 42 : index
    %119 = memref.load %arg4[%c0_52, %c42] : memref<2x49xf32, #tpu.memory_space<smem>>
    %120 = vector.broadcast %119 : f32 to vector<1x256xf32>
    %121 = arith.mulf %120, %29 : vector<1x256xf32>
    %c1_53 = arith.constant 1 : index
    %c42_54 = arith.constant 42 : index
    %122 = memref.load %arg4[%c1_53, %c42_54] : memref<2x49xf32, #tpu.memory_space<smem>>
    %123 = vector.broadcast %122 : f32 to vector<1x256xf32>
    %124 = arith.mulf %123, %31 : vector<1x256xf32>
    %125 = arith.addf %121, %124 : vector<1x256xf32>
    %126 = vector.extract_strided_slice %125 {offsets = [0, 45], sizes = [1, 211], strides = [1, 1]} : vector<1x256xf32> to vector<1x211xf32>
    %cst_55 = arith.constant 0.000000e+00 : f32
    %127 = vector.broadcast %cst_55 : f32 to vector<1x45xf32>
    %128 = tpu.concatenate %126, %127 in 1 : vector<1x211xf32>, vector<1x45xf32> -> vector<1x256xf32>
    %cst_56 = arith.constant 0.000000e+00 : f32
    %129 = vector.broadcast %cst_56 : f32 to vector<1x256xf32>
    %130 = arith.select %40, %128, %129 : vector<1x256xi1>, vector<1x256xf32>
    %131 = arith.addf %79, %130 : vector<1x256xf32>
    %c2_i32 = arith.constant 2 : i32
    %132 = vector.broadcast %c2_i32 : i32 to vector<1x256xi32>
    %133 = arith.cmpi sge, %34, %132 : vector<1x256xi32>
    %c0_57 = arith.constant 0 : index
    %c1_58 = arith.constant 1 : index
    %134 = memref.load %arg4[%c0_57, %c1_58] : memref<2x49xf32, #tpu.memory_space<smem>>
    %135 = vector.broadcast %134 : f32 to vector<1x256xf32>
    %136 = arith.mulf %135, %29 : vector<1x256xf32>
    %c1_59 = arith.constant 1 : index
    %c1_60 = arith.constant 1 : index
    %137 = memref.load %arg4[%c1_59, %c1_60] : memref<2x49xf32, #tpu.memory_space<smem>>
    %138 = vector.broadcast %137 : f32 to vector<1x256xf32>
    %139 = arith.mulf %138, %31 : vector<1x256xf32>
    %140 = arith.addf %136, %139 : vector<1x256xf32>
    %cst_61 = arith.constant 0.000000e+00 : f32
    %141 = vector.broadcast %cst_61 : f32 to vector<1x50xf32>
    %142 = vector.extract_strided_slice %140 {offsets = [0, 0], sizes = [1, 206], strides = [1, 1]} : vector<1x256xf32> to vector<1x206xf32>
    %143 = tpu.concatenate %141, %142 in 1 : vector<1x50xf32>, vector<1x206xf32> -> vector<1x256xf32>
    %cst_62 = arith.constant 0.000000e+00 : f32
    %144 = vector.broadcast %cst_62 : f32 to vector<1x256xf32>
    %145 = arith.select %133, %143, %144 : vector<1x256xi1>, vector<1x256xf32>
    %146 = arith.addf %92, %145 : vector<1x256xf32>
    %c0_63 = arith.constant 0 : index
    %c8 = arith.constant 8 : index
    %147 = memref.load %arg4[%c0_63, %c8] : memref<2x49xf32, #tpu.memory_space<smem>>
    %148 = vector.broadcast %147 : f32 to vector<1x256xf32>
    %149 = arith.mulf %148, %29 : vector<1x256xf32>
    %c1_64 = arith.constant 1 : index
    %c8_65 = arith.constant 8 : index
    %150 = memref.load %arg4[%c1_64, %c8_65] : memref<2x49xf32, #tpu.memory_space<smem>>
    %151 = vector.broadcast %150 : f32 to vector<1x256xf32>
    %152 = arith.mulf %151, %31 : vector<1x256xf32>
    %153 = arith.addf %149, %152 : vector<1x256xf32>
    %cst_66 = arith.constant 0.000000e+00 : f32
    %154 = vector.broadcast %cst_66 : f32 to vector<1x34xf32>
    %155 = vector.extract_strided_slice %153 {offsets = [0, 0], sizes = [1, 222], strides = [1, 1]} : vector<1x256xf32> to vector<1x222xf32>
    %156 = tpu.concatenate %154, %155 in 1 : vector<1x34xf32>, vector<1x222xf32> -> vector<1x256xf32>
    %cst_67 = arith.constant 0.000000e+00 : f32
    %157 = vector.broadcast %cst_67 : f32 to vector<1x256xf32>
    %158 = arith.select %133, %156, %157 : vector<1x256xi1>, vector<1x256xf32>
    %159 = arith.addf %105, %158 : vector<1x256xf32>
    %c0_68 = arith.constant 0 : index
    %c15 = arith.constant 15 : index
    %160 = memref.load %arg4[%c0_68, %c15] : memref<2x49xf32, #tpu.memory_space<smem>>
    %161 = vector.broadcast %160 : f32 to vector<1x256xf32>
    %162 = arith.mulf %161, %29 : vector<1x256xf32>
    %c1_69 = arith.constant 1 : index
    %c15_70 = arith.constant 15 : index
    %163 = memref.load %arg4[%c1_69, %c15_70] : memref<2x49xf32, #tpu.memory_space<smem>>
    %164 = vector.broadcast %163 : f32 to vector<1x256xf32>
    %165 = arith.mulf %164, %31 : vector<1x256xf32>
    %166 = arith.addf %162, %165 : vector<1x256xf32>
    %cst_71 = arith.constant 0.000000e+00 : f32
    %167 = vector.broadcast %cst_71 : f32 to vector<1x18xf32>
    %168 = vector.extract_strided_slice %166 {offsets = [0, 0], sizes = [1, 238], strides = [1, 1]} : vector<1x256xf32> to vector<1x238xf32>
    %169 = tpu.concatenate %167, %168 in 1 : vector<1x18xf32>, vector<1x238xf32> -> vector<1x256xf32>
    %cst_72 = arith.constant 0.000000e+00 : f32
    %170 = vector.broadcast %cst_72 : f32 to vector<1x256xf32>
    %171 = arith.select %133, %169, %170 : vector<1x256xi1>, vector<1x256xf32>
    %172 = arith.addf %118, %171 : vector<1x256xf32>
    %c0_73 = arith.constant 0 : index
    %c22 = arith.constant 22 : index
    %173 = memref.load %arg4[%c0_73, %c22] : memref<2x49xf32, #tpu.memory_space<smem>>
    %174 = vector.broadcast %173 : f32 to vector<1x256xf32>
    %175 = arith.mulf %174, %29 : vector<1x256xf32>
    %c1_74 = arith.constant 1 : index
    %c22_75 = arith.constant 22 : index
    %176 = memref.load %arg4[%c1_74, %c22_75] : memref<2x49xf32, #tpu.memory_space<smem>>
    %177 = vector.broadcast %176 : f32 to vector<1x256xf32>
    %178 = arith.mulf %177, %31 : vector<1x256xf32>
    %179 = arith.addf %175, %178 : vector<1x256xf32>
    %cst_76 = arith.constant 0.000000e+00 : f32
    %180 = vector.broadcast %cst_76 : f32 to vector<1x2xf32>
    %181 = vector.extract_strided_slice %179 {offsets = [0, 0], sizes = [1, 254], strides = [1, 1]} : vector<1x256xf32> to vector<1x254xf32>
    %182 = tpu.concatenate %180, %181 in 1 : vector<1x2xf32>, vector<1x254xf32> -> vector<1x256xf32>
    %cst_77 = arith.constant 0.000000e+00 : f32
    %183 = vector.broadcast %cst_77 : f32 to vector<1x256xf32>
    %184 = arith.select %133, %182, %183 : vector<1x256xi1>, vector<1x256xf32>
    %185 = arith.addf %131, %184 : vector<1x256xf32>
    %c0_78 = arith.constant 0 : index
    %c29 = arith.constant 29 : index
    %186 = memref.load %arg4[%c0_78, %c29] : memref<2x49xf32, #tpu.memory_space<smem>>
    %187 = vector.broadcast %186 : f32 to vector<1x256xf32>
    %188 = arith.mulf %187, %29 : vector<1x256xf32>
    %c1_79 = arith.constant 1 : index
    %c29_80 = arith.constant 29 : index
    %189 = memref.load %arg4[%c1_79, %c29_80] : memref<2x49xf32, #tpu.memory_space<smem>>
    %190 = vector.broadcast %189 : f32 to vector<1x256xf32>
    %191 = arith.mulf %190, %31 : vector<1x256xf32>
    %192 = arith.addf %188, %191 : vector<1x256xf32>
    %193 = vector.extract_strided_slice %192 {offsets = [0, 14], sizes = [1, 242], strides = [1, 1]} : vector<1x256xf32> to vector<1x242xf32>
    %cst_81 = arith.constant 0.000000e+00 : f32
    %194 = vector.broadcast %cst_81 : f32 to vector<1x14xf32>
    %195 = tpu.concatenate %193, %194 in 1 : vector<1x242xf32>, vector<1x14xf32> -> vector<1x256xf32>
    %cst_82 = arith.constant 0.000000e+00 : f32
    %196 = vector.broadcast %cst_82 : f32 to vector<1x256xf32>
    %197 = arith.select %133, %195, %196 : vector<1x256xi1>, vector<1x256xf32>
    %198 = arith.addf %146, %197 : vector<1x256xf32>
    %c0_83 = arith.constant 0 : index
    %c36 = arith.constant 36 : index
    %199 = memref.load %arg4[%c0_83, %c36] : memref<2x49xf32, #tpu.memory_space<smem>>
    %200 = vector.broadcast %199 : f32 to vector<1x256xf32>
    %201 = arith.mulf %200, %29 : vector<1x256xf32>
    %c1_84 = arith.constant 1 : index
    %c36_85 = arith.constant 36 : index
    %202 = memref.load %arg4[%c1_84, %c36_85] : memref<2x49xf32, #tpu.memory_space<smem>>
    %203 = vector.broadcast %202 : f32 to vector<1x256xf32>
    %204 = arith.mulf %203, %31 : vector<1x256xf32>
    %205 = arith.addf %201, %204 : vector<1x256xf32>
    %206 = vector.extract_strided_slice %205 {offsets = [0, 30], sizes = [1, 226], strides = [1, 1]} : vector<1x256xf32> to vector<1x226xf32>
    %cst_86 = arith.constant 0.000000e+00 : f32
    %207 = vector.broadcast %cst_86 : f32 to vector<1x30xf32>
    %208 = tpu.concatenate %206, %207 in 1 : vector<1x226xf32>, vector<1x30xf32> -> vector<1x256xf32>
    %cst_87 = arith.constant 0.000000e+00 : f32
    %209 = vector.broadcast %cst_87 : f32 to vector<1x256xf32>
    %210 = arith.select %133, %208, %209 : vector<1x256xi1>, vector<1x256xf32>
    %211 = arith.addf %159, %210 : vector<1x256xf32>
    %c0_88 = arith.constant 0 : index
    %c43 = arith.constant 43 : index
    %212 = memref.load %arg4[%c0_88, %c43] : memref<2x49xf32, #tpu.memory_space<smem>>
    %213 = vector.broadcast %212 : f32 to vector<1x256xf32>
    %214 = arith.mulf %213, %29 : vector<1x256xf32>
    %c1_89 = arith.constant 1 : index
    %c43_90 = arith.constant 43 : index
    %215 = memref.load %arg4[%c1_89, %c43_90] : memref<2x49xf32, #tpu.memory_space<smem>>
    %216 = vector.broadcast %215 : f32 to vector<1x256xf32>
    %217 = arith.mulf %216, %31 : vector<1x256xf32>
    %218 = arith.addf %214, %217 : vector<1x256xf32>
    %219 = vector.extract_strided_slice %218 {offsets = [0, 46], sizes = [1, 210], strides = [1, 1]} : vector<1x256xf32> to vector<1x210xf32>
    %cst_91 = arith.constant 0.000000e+00 : f32
    %220 = vector.broadcast %cst_91 : f32 to vector<1x46xf32>
    %221 = tpu.concatenate %219, %220 in 1 : vector<1x210xf32>, vector<1x46xf32> -> vector<1x256xf32>
    %cst_92 = arith.constant 0.000000e+00 : f32
    %222 = vector.broadcast %cst_92 : f32 to vector<1x256xf32>
    %223 = arith.select %133, %221, %222 : vector<1x256xi1>, vector<1x256xf32>
    %224 = arith.addf %172, %223 : vector<1x256xf32>
    %c1_i32 = arith.constant 1 : i32
    %225 = vector.broadcast %c1_i32 : i32 to vector<1x256xi32>
    %226 = arith.cmpi sge, %34, %225 : vector<1x256xi32>
    %c0_93 = arith.constant 0 : index
    %c2 = arith.constant 2 : index
    %227 = memref.load %arg4[%c0_93, %c2] : memref<2x49xf32, #tpu.memory_space<smem>>
    %228 = vector.broadcast %227 : f32 to vector<1x256xf32>
    %229 = arith.mulf %228, %29 : vector<1x256xf32>
    %c1_94 = arith.constant 1 : index
    %c2_95 = arith.constant 2 : index
    %230 = memref.load %arg4[%c1_94, %c2_95] : memref<2x49xf32, #tpu.memory_space<smem>>
    %231 = vector.broadcast %230 : f32 to vector<1x256xf32>
    %232 = arith.mulf %231, %31 : vector<1x256xf32>
    %233 = arith.addf %229, %232 : vector<1x256xf32>
    %cst_96 = arith.constant 0.000000e+00 : f32
    %234 = vector.broadcast %cst_96 : f32 to vector<1x49xf32>
    %235 = vector.extract_strided_slice %233 {offsets = [0, 0], sizes = [1, 207], strides = [1, 1]} : vector<1x256xf32> to vector<1x207xf32>
    %236 = tpu.concatenate %234, %235 in 1 : vector<1x49xf32>, vector<1x207xf32> -> vector<1x256xf32>
    %cst_97 = arith.constant 0.000000e+00 : f32
    %237 = vector.broadcast %cst_97 : f32 to vector<1x256xf32>
    %238 = arith.select %226, %236, %237 : vector<1x256xi1>, vector<1x256xf32>
    %239 = arith.addf %185, %238 : vector<1x256xf32>
    %c0_98 = arith.constant 0 : index
    %c9 = arith.constant 9 : index
    %240 = memref.load %arg4[%c0_98, %c9] : memref<2x49xf32, #tpu.memory_space<smem>>
    %241 = vector.broadcast %240 : f32 to vector<1x256xf32>
    %242 = arith.mulf %241, %29 : vector<1x256xf32>
    %c1_99 = arith.constant 1 : index
    %c9_100 = arith.constant 9 : index
    %243 = memref.load %arg4[%c1_99, %c9_100] : memref<2x49xf32, #tpu.memory_space<smem>>
    %244 = vector.broadcast %243 : f32 to vector<1x256xf32>
    %245 = arith.mulf %244, %31 : vector<1x256xf32>
    %246 = arith.addf %242, %245 : vector<1x256xf32>
    %cst_101 = arith.constant 0.000000e+00 : f32
    %247 = vector.broadcast %cst_101 : f32 to vector<1x33xf32>
    %248 = vector.extract_strided_slice %246 {offsets = [0, 0], sizes = [1, 223], strides = [1, 1]} : vector<1x256xf32> to vector<1x223xf32>
    %249 = tpu.concatenate %247, %248 in 1 : vector<1x33xf32>, vector<1x223xf32> -> vector<1x256xf32>
    %cst_102 = arith.constant 0.000000e+00 : f32
    %250 = vector.broadcast %cst_102 : f32 to vector<1x256xf32>
    %251 = arith.select %226, %249, %250 : vector<1x256xi1>, vector<1x256xf32>
    %252 = arith.addf %198, %251 : vector<1x256xf32>
    %c0_103 = arith.constant 0 : index
    %c16 = arith.constant 16 : index
    %253 = memref.load %arg4[%c0_103, %c16] : memref<2x49xf32, #tpu.memory_space<smem>>
    %254 = vector.broadcast %253 : f32 to vector<1x256xf32>
    %255 = arith.mulf %254, %29 : vector<1x256xf32>
    %c1_104 = arith.constant 1 : index
    %c16_105 = arith.constant 16 : index
    %256 = memref.load %arg4[%c1_104, %c16_105] : memref<2x49xf32, #tpu.memory_space<smem>>
    %257 = vector.broadcast %256 : f32 to vector<1x256xf32>
    %258 = arith.mulf %257, %31 : vector<1x256xf32>
    %259 = arith.addf %255, %258 : vector<1x256xf32>
    %cst_106 = arith.constant 0.000000e+00 : f32
    %260 = vector.broadcast %cst_106 : f32 to vector<1x17xf32>
    %261 = vector.extract_strided_slice %259 {offsets = [0, 0], sizes = [1, 239], strides = [1, 1]} : vector<1x256xf32> to vector<1x239xf32>
    %262 = tpu.concatenate %260, %261 in 1 : vector<1x17xf32>, vector<1x239xf32> -> vector<1x256xf32>
    %cst_107 = arith.constant 0.000000e+00 : f32
    %263 = vector.broadcast %cst_107 : f32 to vector<1x256xf32>
    %264 = arith.select %226, %262, %263 : vector<1x256xi1>, vector<1x256xf32>
    %265 = arith.addf %211, %264 : vector<1x256xf32>
    %c0_108 = arith.constant 0 : index
    %c23 = arith.constant 23 : index
    %266 = memref.load %arg4[%c0_108, %c23] : memref<2x49xf32, #tpu.memory_space<smem>>
    %267 = vector.broadcast %266 : f32 to vector<1x256xf32>
    %268 = arith.mulf %267, %29 : vector<1x256xf32>
    %c1_109 = arith.constant 1 : index
    %c23_110 = arith.constant 23 : index
    %269 = memref.load %arg4[%c1_109, %c23_110] : memref<2x49xf32, #tpu.memory_space<smem>>
    %270 = vector.broadcast %269 : f32 to vector<1x256xf32>
    %271 = arith.mulf %270, %31 : vector<1x256xf32>
    %272 = arith.addf %268, %271 : vector<1x256xf32>
    %cst_111 = arith.constant 0.000000e+00 : f32
    %273 = vector.broadcast %cst_111 : f32 to vector<1x1xf32>
    %274 = vector.extract_strided_slice %272 {offsets = [0, 0], sizes = [1, 255], strides = [1, 1]} : vector<1x256xf32> to vector<1x255xf32>
    %275 = tpu.concatenate %273, %274 in 1 : vector<1x1xf32>, vector<1x255xf32> -> vector<1x256xf32>
    %cst_112 = arith.constant 0.000000e+00 : f32
    %276 = vector.broadcast %cst_112 : f32 to vector<1x256xf32>
    %277 = arith.select %226, %275, %276 : vector<1x256xi1>, vector<1x256xf32>
    %278 = arith.addf %224, %277 : vector<1x256xf32>
    %c0_113 = arith.constant 0 : index
    %c30 = arith.constant 30 : index
    %279 = memref.load %arg4[%c0_113, %c30] : memref<2x49xf32, #tpu.memory_space<smem>>
    %280 = vector.broadcast %279 : f32 to vector<1x256xf32>
    %281 = arith.mulf %280, %29 : vector<1x256xf32>
    %c1_114 = arith.constant 1 : index
    %c30_115 = arith.constant 30 : index
    %282 = memref.load %arg4[%c1_114, %c30_115] : memref<2x49xf32, #tpu.memory_space<smem>>
    %283 = vector.broadcast %282 : f32 to vector<1x256xf32>
    %284 = arith.mulf %283, %31 : vector<1x256xf32>
    %285 = arith.addf %281, %284 : vector<1x256xf32>
    %286 = vector.extract_strided_slice %285 {offsets = [0, 15], sizes = [1, 241], strides = [1, 1]} : vector<1x256xf32> to vector<1x241xf32>
    %cst_116 = arith.constant 0.000000e+00 : f32
    %287 = vector.broadcast %cst_116 : f32 to vector<1x15xf32>
    %288 = tpu.concatenate %286, %287 in 1 : vector<1x241xf32>, vector<1x15xf32> -> vector<1x256xf32>
    %cst_117 = arith.constant 0.000000e+00 : f32
    %289 = vector.broadcast %cst_117 : f32 to vector<1x256xf32>
    %290 = arith.select %226, %288, %289 : vector<1x256xi1>, vector<1x256xf32>
    %291 = arith.addf %239, %290 : vector<1x256xf32>
    %c0_118 = arith.constant 0 : index
    %c37 = arith.constant 37 : index
    %292 = memref.load %arg4[%c0_118, %c37] : memref<2x49xf32, #tpu.memory_space<smem>>
    %293 = vector.broadcast %292 : f32 to vector<1x256xf32>
    %294 = arith.mulf %293, %29 : vector<1x256xf32>
    %c1_119 = arith.constant 1 : index
    %c37_120 = arith.constant 37 : index
    %295 = memref.load %arg4[%c1_119, %c37_120] : memref<2x49xf32, #tpu.memory_space<smem>>
    %296 = vector.broadcast %295 : f32 to vector<1x256xf32>
    %297 = arith.mulf %296, %31 : vector<1x256xf32>
    %298 = arith.addf %294, %297 : vector<1x256xf32>
    %299 = vector.extract_strided_slice %298 {offsets = [0, 31], sizes = [1, 225], strides = [1, 1]} : vector<1x256xf32> to vector<1x225xf32>
    %cst_121 = arith.constant 0.000000e+00 : f32
    %300 = vector.broadcast %cst_121 : f32 to vector<1x31xf32>
    %301 = tpu.concatenate %299, %300 in 1 : vector<1x225xf32>, vector<1x31xf32> -> vector<1x256xf32>
    %cst_122 = arith.constant 0.000000e+00 : f32
    %302 = vector.broadcast %cst_122 : f32 to vector<1x256xf32>
    %303 = arith.select %226, %301, %302 : vector<1x256xi1>, vector<1x256xf32>
    %304 = arith.addf %252, %303 : vector<1x256xf32>
    %c0_123 = arith.constant 0 : index
    %c44 = arith.constant 44 : index
    %305 = memref.load %arg4[%c0_123, %c44] : memref<2x49xf32, #tpu.memory_space<smem>>
    %306 = vector.broadcast %305 : f32 to vector<1x256xf32>
    %307 = arith.mulf %306, %29 : vector<1x256xf32>
    %c1_124 = arith.constant 1 : index
    %c44_125 = arith.constant 44 : index
    %308 = memref.load %arg4[%c1_124, %c44_125] : memref<2x49xf32, #tpu.memory_space<smem>>
    %309 = vector.broadcast %308 : f32 to vector<1x256xf32>
    %310 = arith.mulf %309, %31 : vector<1x256xf32>
    %311 = arith.addf %307, %310 : vector<1x256xf32>
    %312 = vector.extract_strided_slice %311 {offsets = [0, 47], sizes = [1, 209], strides = [1, 1]} : vector<1x256xf32> to vector<1x209xf32>
    %cst_126 = arith.constant 0.000000e+00 : f32
    %313 = vector.broadcast %cst_126 : f32 to vector<1x47xf32>
    %314 = tpu.concatenate %312, %313 in 1 : vector<1x209xf32>, vector<1x47xf32> -> vector<1x256xf32>
    %cst_127 = arith.constant 0.000000e+00 : f32
    %315 = vector.broadcast %cst_127 : f32 to vector<1x256xf32>
    %316 = arith.select %226, %314, %315 : vector<1x256xi1>, vector<1x256xf32>
    %317 = arith.addf %265, %316 : vector<1x256xf32>
    %c0_128 = arith.constant 0 : index
    %c3 = arith.constant 3 : index
    %318 = memref.load %arg4[%c0_128, %c3] : memref<2x49xf32, #tpu.memory_space<smem>>
    %319 = vector.broadcast %318 : f32 to vector<1x256xf32>
    %320 = arith.mulf %319, %29 : vector<1x256xf32>
    %c1_129 = arith.constant 1 : index
    %c3_130 = arith.constant 3 : index
    %321 = memref.load %arg4[%c1_129, %c3_130] : memref<2x49xf32, #tpu.memory_space<smem>>
    %322 = vector.broadcast %321 : f32 to vector<1x256xf32>
    %323 = arith.mulf %322, %31 : vector<1x256xf32>
    %324 = arith.addf %320, %323 : vector<1x256xf32>
    %cst_131 = arith.constant 0.000000e+00 : f32
    %325 = vector.broadcast %cst_131 : f32 to vector<1x48xf32>
    %326 = vector.extract_strided_slice %324 {offsets = [0, 0], sizes = [1, 208], strides = [1, 1]} : vector<1x256xf32> to vector<1x208xf32>
    %327 = tpu.concatenate %325, %326 in 1 : vector<1x48xf32>, vector<1x208xf32> -> vector<1x256xf32>
    %328 = arith.addf %278, %327 : vector<1x256xf32>
    %c0_132 = arith.constant 0 : index
    %c10 = arith.constant 10 : index
    %329 = memref.load %arg4[%c0_132, %c10] : memref<2x49xf32, #tpu.memory_space<smem>>
    %330 = vector.broadcast %329 : f32 to vector<1x256xf32>
    %331 = arith.mulf %330, %29 : vector<1x256xf32>
    %c1_133 = arith.constant 1 : index
    %c10_134 = arith.constant 10 : index
    %332 = memref.load %arg4[%c1_133, %c10_134] : memref<2x49xf32, #tpu.memory_space<smem>>
    %333 = vector.broadcast %332 : f32 to vector<1x256xf32>
    %334 = arith.mulf %333, %31 : vector<1x256xf32>
    %335 = arith.addf %331, %334 : vector<1x256xf32>
    %cst_135 = arith.constant 0.000000e+00 : f32
    %336 = vector.broadcast %cst_135 : f32 to vector<1x32xf32>
    %337 = vector.extract_strided_slice %335 {offsets = [0, 0], sizes = [1, 224], strides = [1, 1]} : vector<1x256xf32> to vector<1x224xf32>
    %338 = tpu.concatenate %336, %337 in 1 : vector<1x32xf32>, vector<1x224xf32> -> vector<1x256xf32>
    %339 = arith.addf %291, %338 : vector<1x256xf32>
    %c0_136 = arith.constant 0 : index
    %c17 = arith.constant 17 : index
    %340 = memref.load %arg4[%c0_136, %c17] : memref<2x49xf32, #tpu.memory_space<smem>>
    %341 = vector.broadcast %340 : f32 to vector<1x256xf32>
    %342 = arith.mulf %341, %29 : vector<1x256xf32>
    %c1_137 = arith.constant 1 : index
    %c17_138 = arith.constant 17 : index
    %343 = memref.load %arg4[%c1_137, %c17_138] : memref<2x49xf32, #tpu.memory_space<smem>>
    %344 = vector.broadcast %343 : f32 to vector<1x256xf32>
    %345 = arith.mulf %344, %31 : vector<1x256xf32>
    %346 = arith.addf %342, %345 : vector<1x256xf32>
    %cst_139 = arith.constant 0.000000e+00 : f32
    %347 = vector.broadcast %cst_139 : f32 to vector<1x16xf32>
    %348 = vector.extract_strided_slice %346 {offsets = [0, 0], sizes = [1, 240], strides = [1, 1]} : vector<1x256xf32> to vector<1x240xf32>
    %349 = tpu.concatenate %347, %348 in 1 : vector<1x16xf32>, vector<1x240xf32> -> vector<1x256xf32>
    %350 = arith.addf %304, %349 : vector<1x256xf32>
    %c0_140 = arith.constant 0 : index
    %c24 = arith.constant 24 : index
    %351 = memref.load %arg4[%c0_140, %c24] : memref<2x49xf32, #tpu.memory_space<smem>>
    %352 = vector.broadcast %351 : f32 to vector<1x256xf32>
    %353 = arith.mulf %352, %29 : vector<1x256xf32>
    %c1_141 = arith.constant 1 : index
    %c24_142 = arith.constant 24 : index
    %354 = memref.load %arg4[%c1_141, %c24_142] : memref<2x49xf32, #tpu.memory_space<smem>>
    %355 = vector.broadcast %354 : f32 to vector<1x256xf32>
    %356 = arith.mulf %355, %31 : vector<1x256xf32>
    %357 = arith.addf %353, %356 : vector<1x256xf32>
    %358 = arith.addf %317, %357 : vector<1x256xf32>
    %c0_143 = arith.constant 0 : index
    %c31 = arith.constant 31 : index
    %359 = memref.load %arg4[%c0_143, %c31] : memref<2x49xf32, #tpu.memory_space<smem>>
    %360 = vector.broadcast %359 : f32 to vector<1x256xf32>
    %361 = arith.mulf %360, %29 : vector<1x256xf32>
    %c1_144 = arith.constant 1 : index
    %c31_145 = arith.constant 31 : index
    %362 = memref.load %arg4[%c1_144, %c31_145] : memref<2x49xf32, #tpu.memory_space<smem>>
    %363 = vector.broadcast %362 : f32 to vector<1x256xf32>
    %364 = arith.mulf %363, %31 : vector<1x256xf32>
    %365 = arith.addf %361, %364 : vector<1x256xf32>
    %366 = vector.extract_strided_slice %365 {offsets = [0, 16], sizes = [1, 240], strides = [1, 1]} : vector<1x256xf32> to vector<1x240xf32>
    %cst_146 = arith.constant 0.000000e+00 : f32
    %367 = vector.broadcast %cst_146 : f32 to vector<1x16xf32>
    %368 = tpu.concatenate %366, %367 in 1 : vector<1x240xf32>, vector<1x16xf32> -> vector<1x256xf32>
    %369 = arith.addf %328, %368 : vector<1x256xf32>
    %c0_147 = arith.constant 0 : index
    %c38 = arith.constant 38 : index
    %370 = memref.load %arg4[%c0_147, %c38] : memref<2x49xf32, #tpu.memory_space<smem>>
    %371 = vector.broadcast %370 : f32 to vector<1x256xf32>
    %372 = arith.mulf %371, %29 : vector<1x256xf32>
    %c1_148 = arith.constant 1 : index
    %c38_149 = arith.constant 38 : index
    %373 = memref.load %arg4[%c1_148, %c38_149] : memref<2x49xf32, #tpu.memory_space<smem>>
    %374 = vector.broadcast %373 : f32 to vector<1x256xf32>
    %375 = arith.mulf %374, %31 : vector<1x256xf32>
    %376 = arith.addf %372, %375 : vector<1x256xf32>
    %377 = vector.extract_strided_slice %376 {offsets = [0, 32], sizes = [1, 224], strides = [1, 1]} : vector<1x256xf32> to vector<1x224xf32>
    %cst_150 = arith.constant 0.000000e+00 : f32
    %378 = vector.broadcast %cst_150 : f32 to vector<1x32xf32>
    %379 = tpu.concatenate %377, %378 in 1 : vector<1x224xf32>, vector<1x32xf32> -> vector<1x256xf32>
    %380 = arith.addf %339, %379 : vector<1x256xf32>
    %c0_151 = arith.constant 0 : index
    %c45 = arith.constant 45 : index
    %381 = memref.load %arg4[%c0_151, %c45] : memref<2x49xf32, #tpu.memory_space<smem>>
    %382 = vector.broadcast %381 : f32 to vector<1x256xf32>
    %383 = arith.mulf %382, %29 : vector<1x256xf32>
    %c1_152 = arith.constant 1 : index
    %c45_153 = arith.constant 45 : index
    %384 = memref.load %arg4[%c1_152, %c45_153] : memref<2x49xf32, #tpu.memory_space<smem>>
    %385 = vector.broadcast %384 : f32 to vector<1x256xf32>
    %386 = arith.mulf %385, %31 : vector<1x256xf32>
    %387 = arith.addf %383, %386 : vector<1x256xf32>
    %388 = vector.extract_strided_slice %387 {offsets = [0, 48], sizes = [1, 208], strides = [1, 1]} : vector<1x256xf32> to vector<1x208xf32>
    %cst_154 = arith.constant 0.000000e+00 : f32
    %389 = vector.broadcast %cst_154 : f32 to vector<1x48xf32>
    %390 = tpu.concatenate %388, %389 in 1 : vector<1x208xf32>, vector<1x48xf32> -> vector<1x256xf32>
    %391 = arith.addf %350, %390 : vector<1x256xf32>
    %c15_i32_155 = arith.constant 15 : i32
    %392 = vector.broadcast %c15_i32_155 : i32 to vector<1x256xi32>
    %393 = arith.cmpi slt, %34, %392 : vector<1x256xi32>
    %c0_156 = arith.constant 0 : index
    %c4 = arith.constant 4 : index
    %394 = memref.load %arg4[%c0_156, %c4] : memref<2x49xf32, #tpu.memory_space<smem>>
    %395 = vector.broadcast %394 : f32 to vector<1x256xf32>
    %396 = arith.mulf %395, %29 : vector<1x256xf32>
    %c1_157 = arith.constant 1 : index
    %c4_158 = arith.constant 4 : index
    %397 = memref.load %arg4[%c1_157, %c4_158] : memref<2x49xf32, #tpu.memory_space<smem>>
    %398 = vector.broadcast %397 : f32 to vector<1x256xf32>
    %399 = arith.mulf %398, %31 : vector<1x256xf32>
    %400 = arith.addf %396, %399 : vector<1x256xf32>
    %cst_159 = arith.constant 0.000000e+00 : f32
    %401 = vector.broadcast %cst_159 : f32 to vector<1x47xf32>
    %402 = vector.extract_strided_slice %400 {offsets = [0, 0], sizes = [1, 209], strides = [1, 1]} : vector<1x256xf32> to vector<1x209xf32>
    %403 = tpu.concatenate %401, %402 in 1 : vector<1x47xf32>, vector<1x209xf32> -> vector<1x256xf32>
    %cst_160 = arith.constant 0.000000e+00 : f32
    %404 = vector.broadcast %cst_160 : f32 to vector<1x256xf32>
    %405 = arith.select %393, %403, %404 : vector<1x256xi1>, vector<1x256xf32>
    %406 = arith.addf %358, %405 : vector<1x256xf32>
    %c0_161 = arith.constant 0 : index
    %c11 = arith.constant 11 : index
    %407 = memref.load %arg4[%c0_161, %c11] : memref<2x49xf32, #tpu.memory_space<smem>>
    %408 = vector.broadcast %407 : f32 to vector<1x256xf32>
    %409 = arith.mulf %408, %29 : vector<1x256xf32>
    %c1_162 = arith.constant 1 : index
    %c11_163 = arith.constant 11 : index
    %410 = memref.load %arg4[%c1_162, %c11_163] : memref<2x49xf32, #tpu.memory_space<smem>>
    %411 = vector.broadcast %410 : f32 to vector<1x256xf32>
    %412 = arith.mulf %411, %31 : vector<1x256xf32>
    %413 = arith.addf %409, %412 : vector<1x256xf32>
    %cst_164 = arith.constant 0.000000e+00 : f32
    %414 = vector.broadcast %cst_164 : f32 to vector<1x31xf32>
    %415 = vector.extract_strided_slice %413 {offsets = [0, 0], sizes = [1, 225], strides = [1, 1]} : vector<1x256xf32> to vector<1x225xf32>
    %416 = tpu.concatenate %414, %415 in 1 : vector<1x31xf32>, vector<1x225xf32> -> vector<1x256xf32>
    %cst_165 = arith.constant 0.000000e+00 : f32
    %417 = vector.broadcast %cst_165 : f32 to vector<1x256xf32>
    %418 = arith.select %393, %416, %417 : vector<1x256xi1>, vector<1x256xf32>
    %419 = arith.addf %369, %418 : vector<1x256xf32>
    %c0_166 = arith.constant 0 : index
    %c18 = arith.constant 18 : index
    %420 = memref.load %arg4[%c0_166, %c18] : memref<2x49xf32, #tpu.memory_space<smem>>
    %421 = vector.broadcast %420 : f32 to vector<1x256xf32>
    %422 = arith.mulf %421, %29 : vector<1x256xf32>
    %c1_167 = arith.constant 1 : index
    %c18_168 = arith.constant 18 : index
    %423 = memref.load %arg4[%c1_167, %c18_168] : memref<2x49xf32, #tpu.memory_space<smem>>
    %424 = vector.broadcast %423 : f32 to vector<1x256xf32>
    %425 = arith.mulf %424, %31 : vector<1x256xf32>
    %426 = arith.addf %422, %425 : vector<1x256xf32>
    %cst_169 = arith.constant 0.000000e+00 : f32
    %427 = vector.broadcast %cst_169 : f32 to vector<1x15xf32>
    %428 = vector.extract_strided_slice %426 {offsets = [0, 0], sizes = [1, 241], strides = [1, 1]} : vector<1x256xf32> to vector<1x241xf32>
    %429 = tpu.concatenate %427, %428 in 1 : vector<1x15xf32>, vector<1x241xf32> -> vector<1x256xf32>
    %cst_170 = arith.constant 0.000000e+00 : f32
    %430 = vector.broadcast %cst_170 : f32 to vector<1x256xf32>
    %431 = arith.select %393, %429, %430 : vector<1x256xi1>, vector<1x256xf32>
    %432 = arith.addf %380, %431 : vector<1x256xf32>
    %c0_171 = arith.constant 0 : index
    %c25 = arith.constant 25 : index
    %433 = memref.load %arg4[%c0_171, %c25] : memref<2x49xf32, #tpu.memory_space<smem>>
    %434 = vector.broadcast %433 : f32 to vector<1x256xf32>
    %435 = arith.mulf %434, %29 : vector<1x256xf32>
    %c1_172 = arith.constant 1 : index
    %c25_173 = arith.constant 25 : index
    %436 = memref.load %arg4[%c1_172, %c25_173] : memref<2x49xf32, #tpu.memory_space<smem>>
    %437 = vector.broadcast %436 : f32 to vector<1x256xf32>
    %438 = arith.mulf %437, %31 : vector<1x256xf32>
    %439 = arith.addf %435, %438 : vector<1x256xf32>
    %440 = vector.extract_strided_slice %439 {offsets = [0, 1], sizes = [1, 255], strides = [1, 1]} : vector<1x256xf32> to vector<1x255xf32>
    %cst_174 = arith.constant 0.000000e+00 : f32
    %441 = vector.broadcast %cst_174 : f32 to vector<1x1xf32>
    %442 = tpu.concatenate %440, %441 in 1 : vector<1x255xf32>, vector<1x1xf32> -> vector<1x256xf32>
    %cst_175 = arith.constant 0.000000e+00 : f32
    %443 = vector.broadcast %cst_175 : f32 to vector<1x256xf32>
    %444 = arith.select %393, %442, %443 : vector<1x256xi1>, vector<1x256xf32>
    %445 = arith.addf %391, %444 : vector<1x256xf32>
    %c0_176 = arith.constant 0 : index
    %c32 = arith.constant 32 : index
    %446 = memref.load %arg4[%c0_176, %c32] : memref<2x49xf32, #tpu.memory_space<smem>>
    %447 = vector.broadcast %446 : f32 to vector<1x256xf32>
    %448 = arith.mulf %447, %29 : vector<1x256xf32>
    %c1_177 = arith.constant 1 : index
    %c32_178 = arith.constant 32 : index
    %449 = memref.load %arg4[%c1_177, %c32_178] : memref<2x49xf32, #tpu.memory_space<smem>>
    %450 = vector.broadcast %449 : f32 to vector<1x256xf32>
    %451 = arith.mulf %450, %31 : vector<1x256xf32>
    %452 = arith.addf %448, %451 : vector<1x256xf32>
    %453 = vector.extract_strided_slice %452 {offsets = [0, 17], sizes = [1, 239], strides = [1, 1]} : vector<1x256xf32> to vector<1x239xf32>
    %cst_179 = arith.constant 0.000000e+00 : f32
    %454 = vector.broadcast %cst_179 : f32 to vector<1x17xf32>
    %455 = tpu.concatenate %453, %454 in 1 : vector<1x239xf32>, vector<1x17xf32> -> vector<1x256xf32>
    %cst_180 = arith.constant 0.000000e+00 : f32
    %456 = vector.broadcast %cst_180 : f32 to vector<1x256xf32>
    %457 = arith.select %393, %455, %456 : vector<1x256xi1>, vector<1x256xf32>
    %458 = arith.addf %406, %457 : vector<1x256xf32>
    %c0_181 = arith.constant 0 : index
    %c39 = arith.constant 39 : index
    %459 = memref.load %arg4[%c0_181, %c39] : memref<2x49xf32, #tpu.memory_space<smem>>
    %460 = vector.broadcast %459 : f32 to vector<1x256xf32>
    %461 = arith.mulf %460, %29 : vector<1x256xf32>
    %c1_182 = arith.constant 1 : index
    %c39_183 = arith.constant 39 : index
    %462 = memref.load %arg4[%c1_182, %c39_183] : memref<2x49xf32, #tpu.memory_space<smem>>
    %463 = vector.broadcast %462 : f32 to vector<1x256xf32>
    %464 = arith.mulf %463, %31 : vector<1x256xf32>
    %465 = arith.addf %461, %464 : vector<1x256xf32>
    %466 = vector.extract_strided_slice %465 {offsets = [0, 33], sizes = [1, 223], strides = [1, 1]} : vector<1x256xf32> to vector<1x223xf32>
    %cst_184 = arith.constant 0.000000e+00 : f32
    %467 = vector.broadcast %cst_184 : f32 to vector<1x33xf32>
    %468 = tpu.concatenate %466, %467 in 1 : vector<1x223xf32>, vector<1x33xf32> -> vector<1x256xf32>
    %cst_185 = arith.constant 0.000000e+00 : f32
    %469 = vector.broadcast %cst_185 : f32 to vector<1x256xf32>
    %470 = arith.select %393, %468, %469 : vector<1x256xi1>, vector<1x256xf32>
    %471 = arith.addf %419, %470 : vector<1x256xf32>
    %c0_186 = arith.constant 0 : index
    %c46 = arith.constant 46 : index
    %472 = memref.load %arg4[%c0_186, %c46] : memref<2x49xf32, #tpu.memory_space<smem>>
    %473 = vector.broadcast %472 : f32 to vector<1x256xf32>
    %474 = arith.mulf %473, %29 : vector<1x256xf32>
    %c1_187 = arith.constant 1 : index
    %c46_188 = arith.constant 46 : index
    %475 = memref.load %arg4[%c1_187, %c46_188] : memref<2x49xf32, #tpu.memory_space<smem>>
    %476 = vector.broadcast %475 : f32 to vector<1x256xf32>
    %477 = arith.mulf %476, %31 : vector<1x256xf32>
    %478 = arith.addf %474, %477 : vector<1x256xf32>
    %479 = vector.extract_strided_slice %478 {offsets = [0, 49], sizes = [1, 207], strides = [1, 1]} : vector<1x256xf32> to vector<1x207xf32>
    %cst_189 = arith.constant 0.000000e+00 : f32
    %480 = vector.broadcast %cst_189 : f32 to vector<1x49xf32>
    %481 = tpu.concatenate %479, %480 in 1 : vector<1x207xf32>, vector<1x49xf32> -> vector<1x256xf32>
    %cst_190 = arith.constant 0.000000e+00 : f32
    %482 = vector.broadcast %cst_190 : f32 to vector<1x256xf32>
    %483 = arith.select %393, %481, %482 : vector<1x256xi1>, vector<1x256xf32>
    %484 = arith.addf %432, %483 : vector<1x256xf32>
    %c14_i32 = arith.constant 14 : i32
    %485 = vector.broadcast %c14_i32 : i32 to vector<1x256xi32>
    %486 = arith.cmpi slt, %34, %485 : vector<1x256xi32>
    %c0_191 = arith.constant 0 : index
    %c5 = arith.constant 5 : index
    %487 = memref.load %arg4[%c0_191, %c5] : memref<2x49xf32, #tpu.memory_space<smem>>
    %488 = vector.broadcast %487 : f32 to vector<1x256xf32>
    %489 = arith.mulf %488, %29 : vector<1x256xf32>
    %c1_192 = arith.constant 1 : index
    %c5_193 = arith.constant 5 : index
    %490 = memref.load %arg4[%c1_192, %c5_193] : memref<2x49xf32, #tpu.memory_space<smem>>
    %491 = vector.broadcast %490 : f32 to vector<1x256xf32>
    %492 = arith.mulf %491, %31 : vector<1x256xf32>
    %493 = arith.addf %489, %492 : vector<1x256xf32>
    %cst_194 = arith.constant 0.000000e+00 : f32
    %494 = vector.broadcast %cst_194 : f32 to vector<1x46xf32>
    %495 = vector.extract_strided_slice %493 {offsets = [0, 0], sizes = [1, 210], strides = [1, 1]} : vector<1x256xf32> to vector<1x210xf32>
    %496 = tpu.concatenate %494, %495 in 1 : vector<1x46xf32>, vector<1x210xf32> -> vector<1x256xf32>
    %cst_195 = arith.constant 0.000000e+00 : f32
    %497 = vector.broadcast %cst_195 : f32 to vector<1x256xf32>
    %498 = arith.select %486, %496, %497 : vector<1x256xi1>, vector<1x256xf32>
    %499 = arith.addf %445, %498 : vector<1x256xf32>
    %c0_196 = arith.constant 0 : index
    %c12 = arith.constant 12 : index
    %500 = memref.load %arg4[%c0_196, %c12] : memref<2x49xf32, #tpu.memory_space<smem>>
    %501 = vector.broadcast %500 : f32 to vector<1x256xf32>
    %502 = arith.mulf %501, %29 : vector<1x256xf32>
    %c1_197 = arith.constant 1 : index
    %c12_198 = arith.constant 12 : index
    %503 = memref.load %arg4[%c1_197, %c12_198] : memref<2x49xf32, #tpu.memory_space<smem>>
    %504 = vector.broadcast %503 : f32 to vector<1x256xf32>
    %505 = arith.mulf %504, %31 : vector<1x256xf32>
    %506 = arith.addf %502, %505 : vector<1x256xf32>
    %cst_199 = arith.constant 0.000000e+00 : f32
    %507 = vector.broadcast %cst_199 : f32 to vector<1x30xf32>
    %508 = vector.extract_strided_slice %506 {offsets = [0, 0], sizes = [1, 226], strides = [1, 1]} : vector<1x256xf32> to vector<1x226xf32>
    %509 = tpu.concatenate %507, %508 in 1 : vector<1x30xf32>, vector<1x226xf32> -> vector<1x256xf32>
    %cst_200 = arith.constant 0.000000e+00 : f32
    %510 = vector.broadcast %cst_200 : f32 to vector<1x256xf32>
    %511 = arith.select %486, %509, %510 : vector<1x256xi1>, vector<1x256xf32>
    %512 = arith.addf %458, %511 : vector<1x256xf32>
    %c0_201 = arith.constant 0 : index
    %c19 = arith.constant 19 : index
    %513 = memref.load %arg4[%c0_201, %c19] : memref<2x49xf32, #tpu.memory_space<smem>>
    %514 = vector.broadcast %513 : f32 to vector<1x256xf32>
    %515 = arith.mulf %514, %29 : vector<1x256xf32>
    %c1_202 = arith.constant 1 : index
    %c19_203 = arith.constant 19 : index
    %516 = memref.load %arg4[%c1_202, %c19_203] : memref<2x49xf32, #tpu.memory_space<smem>>
    %517 = vector.broadcast %516 : f32 to vector<1x256xf32>
    %518 = arith.mulf %517, %31 : vector<1x256xf32>
    %519 = arith.addf %515, %518 : vector<1x256xf32>
    %cst_204 = arith.constant 0.000000e+00 : f32
    %520 = vector.broadcast %cst_204 : f32 to vector<1x14xf32>
    %521 = vector.extract_strided_slice %519 {offsets = [0, 0], sizes = [1, 242], strides = [1, 1]} : vector<1x256xf32> to vector<1x242xf32>
    %522 = tpu.concatenate %520, %521 in 1 : vector<1x14xf32>, vector<1x242xf32> -> vector<1x256xf32>
    %cst_205 = arith.constant 0.000000e+00 : f32
    %523 = vector.broadcast %cst_205 : f32 to vector<1x256xf32>
    %524 = arith.select %486, %522, %523 : vector<1x256xi1>, vector<1x256xf32>
    %525 = arith.addf %471, %524 : vector<1x256xf32>
    %c0_206 = arith.constant 0 : index
    %c26 = arith.constant 26 : index
    %526 = memref.load %arg4[%c0_206, %c26] : memref<2x49xf32, #tpu.memory_space<smem>>
    %527 = vector.broadcast %526 : f32 to vector<1x256xf32>
    %528 = arith.mulf %527, %29 : vector<1x256xf32>
    %c1_207 = arith.constant 1 : index
    %c26_208 = arith.constant 26 : index
    %529 = memref.load %arg4[%c1_207, %c26_208] : memref<2x49xf32, #tpu.memory_space<smem>>
    %530 = vector.broadcast %529 : f32 to vector<1x256xf32>
    %531 = arith.mulf %530, %31 : vector<1x256xf32>
    %532 = arith.addf %528, %531 : vector<1x256xf32>
    %533 = vector.extract_strided_slice %532 {offsets = [0, 2], sizes = [1, 254], strides = [1, 1]} : vector<1x256xf32> to vector<1x254xf32>
    %cst_209 = arith.constant 0.000000e+00 : f32
    %534 = vector.broadcast %cst_209 : f32 to vector<1x2xf32>
    %535 = tpu.concatenate %533, %534 in 1 : vector<1x254xf32>, vector<1x2xf32> -> vector<1x256xf32>
    %cst_210 = arith.constant 0.000000e+00 : f32
    %536 = vector.broadcast %cst_210 : f32 to vector<1x256xf32>
    %537 = arith.select %486, %535, %536 : vector<1x256xi1>, vector<1x256xf32>
    %538 = arith.addf %484, %537 : vector<1x256xf32>
    %c0_211 = arith.constant 0 : index
    %c33 = arith.constant 33 : index
    %539 = memref.load %arg4[%c0_211, %c33] : memref<2x49xf32, #tpu.memory_space<smem>>
    %540 = vector.broadcast %539 : f32 to vector<1x256xf32>
    %541 = arith.mulf %540, %29 : vector<1x256xf32>
    %c1_212 = arith.constant 1 : index
    %c33_213 = arith.constant 33 : index
    %542 = memref.load %arg4[%c1_212, %c33_213] : memref<2x49xf32, #tpu.memory_space<smem>>
    %543 = vector.broadcast %542 : f32 to vector<1x256xf32>
    %544 = arith.mulf %543, %31 : vector<1x256xf32>
    %545 = arith.addf %541, %544 : vector<1x256xf32>
    %546 = vector.extract_strided_slice %545 {offsets = [0, 18], sizes = [1, 238], strides = [1, 1]} : vector<1x256xf32> to vector<1x238xf32>
    %cst_214 = arith.constant 0.000000e+00 : f32
    %547 = vector.broadcast %cst_214 : f32 to vector<1x18xf32>
    %548 = tpu.concatenate %546, %547 in 1 : vector<1x238xf32>, vector<1x18xf32> -> vector<1x256xf32>
    %cst_215 = arith.constant 0.000000e+00 : f32
    %549 = vector.broadcast %cst_215 : f32 to vector<1x256xf32>
    %550 = arith.select %486, %548, %549 : vector<1x256xi1>, vector<1x256xf32>
    %551 = arith.addf %499, %550 : vector<1x256xf32>
    %c0_216 = arith.constant 0 : index
    %c40 = arith.constant 40 : index
    %552 = memref.load %arg4[%c0_216, %c40] : memref<2x49xf32, #tpu.memory_space<smem>>
    %553 = vector.broadcast %552 : f32 to vector<1x256xf32>
    %554 = arith.mulf %553, %29 : vector<1x256xf32>
    %c1_217 = arith.constant 1 : index
    %c40_218 = arith.constant 40 : index
    %555 = memref.load %arg4[%c1_217, %c40_218] : memref<2x49xf32, #tpu.memory_space<smem>>
    %556 = vector.broadcast %555 : f32 to vector<1x256xf32>
    %557 = arith.mulf %556, %31 : vector<1x256xf32>
    %558 = arith.addf %554, %557 : vector<1x256xf32>
    %559 = vector.extract_strided_slice %558 {offsets = [0, 34], sizes = [1, 222], strides = [1, 1]} : vector<1x256xf32> to vector<1x222xf32>
    %cst_219 = arith.constant 0.000000e+00 : f32
    %560 = vector.broadcast %cst_219 : f32 to vector<1x34xf32>
    %561 = tpu.concatenate %559, %560 in 1 : vector<1x222xf32>, vector<1x34xf32> -> vector<1x256xf32>
    %cst_220 = arith.constant 0.000000e+00 : f32
    %562 = vector.broadcast %cst_220 : f32 to vector<1x256xf32>
    %563 = arith.select %486, %561, %562 : vector<1x256xi1>, vector<1x256xf32>
    %564 = arith.addf %512, %563 : vector<1x256xf32>
    %c0_221 = arith.constant 0 : index
    %c47 = arith.constant 47 : index
    %565 = memref.load %arg4[%c0_221, %c47] : memref<2x49xf32, #tpu.memory_space<smem>>
    %566 = vector.broadcast %565 : f32 to vector<1x256xf32>
    %567 = arith.mulf %566, %29 : vector<1x256xf32>
    %c1_222 = arith.constant 1 : index
    %c47_223 = arith.constant 47 : index
    %568 = memref.load %arg4[%c1_222, %c47_223] : memref<2x49xf32, #tpu.memory_space<smem>>
    %569 = vector.broadcast %568 : f32 to vector<1x256xf32>
    %570 = arith.mulf %569, %31 : vector<1x256xf32>
    %571 = arith.addf %567, %570 : vector<1x256xf32>
    %572 = vector.extract_strided_slice %571 {offsets = [0, 50], sizes = [1, 206], strides = [1, 1]} : vector<1x256xf32> to vector<1x206xf32>
    %cst_224 = arith.constant 0.000000e+00 : f32
    %573 = vector.broadcast %cst_224 : f32 to vector<1x50xf32>
    %574 = tpu.concatenate %572, %573 in 1 : vector<1x206xf32>, vector<1x50xf32> -> vector<1x256xf32>
    %cst_225 = arith.constant 0.000000e+00 : f32
    %575 = vector.broadcast %cst_225 : f32 to vector<1x256xf32>
    %576 = arith.select %486, %574, %575 : vector<1x256xi1>, vector<1x256xf32>
    %577 = arith.addf %525, %576 : vector<1x256xf32>
    %c13_i32 = arith.constant 13 : i32
    %578 = vector.broadcast %c13_i32 : i32 to vector<1x256xi32>
    %579 = arith.cmpi slt, %34, %578 : vector<1x256xi32>
    %c0_226 = arith.constant 0 : index
    %c6 = arith.constant 6 : index
    %580 = memref.load %arg4[%c0_226, %c6] : memref<2x49xf32, #tpu.memory_space<smem>>
    %581 = vector.broadcast %580 : f32 to vector<1x256xf32>
    %582 = arith.mulf %581, %29 : vector<1x256xf32>
    %c1_227 = arith.constant 1 : index
    %c6_228 = arith.constant 6 : index
    %583 = memref.load %arg4[%c1_227, %c6_228] : memref<2x49xf32, #tpu.memory_space<smem>>
    %584 = vector.broadcast %583 : f32 to vector<1x256xf32>
    %585 = arith.mulf %584, %31 : vector<1x256xf32>
    %586 = arith.addf %582, %585 : vector<1x256xf32>
    %cst_229 = arith.constant 0.000000e+00 : f32
    %587 = vector.broadcast %cst_229 : f32 to vector<1x45xf32>
    %588 = vector.extract_strided_slice %586 {offsets = [0, 0], sizes = [1, 211], strides = [1, 1]} : vector<1x256xf32> to vector<1x211xf32>
    %589 = tpu.concatenate %587, %588 in 1 : vector<1x45xf32>, vector<1x211xf32> -> vector<1x256xf32>
    %cst_230 = arith.constant 0.000000e+00 : f32
    %590 = vector.broadcast %cst_230 : f32 to vector<1x256xf32>
    %591 = arith.select %579, %589, %590 : vector<1x256xi1>, vector<1x256xf32>
    %592 = arith.addf %538, %591 : vector<1x256xf32>
    %c0_231 = arith.constant 0 : index
    %c13 = arith.constant 13 : index
    %593 = memref.load %arg4[%c0_231, %c13] : memref<2x49xf32, #tpu.memory_space<smem>>
    %594 = vector.broadcast %593 : f32 to vector<1x256xf32>
    %595 = arith.mulf %594, %29 : vector<1x256xf32>
    %c1_232 = arith.constant 1 : index
    %c13_233 = arith.constant 13 : index
    %596 = memref.load %arg4[%c1_232, %c13_233] : memref<2x49xf32, #tpu.memory_space<smem>>
    %597 = vector.broadcast %596 : f32 to vector<1x256xf32>
    %598 = arith.mulf %597, %31 : vector<1x256xf32>
    %599 = arith.addf %595, %598 : vector<1x256xf32>
    %cst_234 = arith.constant 0.000000e+00 : f32
    %600 = vector.broadcast %cst_234 : f32 to vector<1x29xf32>
    %601 = vector.extract_strided_slice %599 {offsets = [0, 0], sizes = [1, 227], strides = [1, 1]} : vector<1x256xf32> to vector<1x227xf32>
    %602 = tpu.concatenate %600, %601 in 1 : vector<1x29xf32>, vector<1x227xf32> -> vector<1x256xf32>
    %cst_235 = arith.constant 0.000000e+00 : f32
    %603 = vector.broadcast %cst_235 : f32 to vector<1x256xf32>
    %604 = arith.select %579, %602, %603 : vector<1x256xi1>, vector<1x256xf32>
    %605 = arith.addf %551, %604 : vector<1x256xf32>
    %c0_236 = arith.constant 0 : index
    %c20 = arith.constant 20 : index
    %606 = memref.load %arg4[%c0_236, %c20] : memref<2x49xf32, #tpu.memory_space<smem>>
    %607 = vector.broadcast %606 : f32 to vector<1x256xf32>
    %608 = arith.mulf %607, %29 : vector<1x256xf32>
    %c1_237 = arith.constant 1 : index
    %c20_238 = arith.constant 20 : index
    %609 = memref.load %arg4[%c1_237, %c20_238] : memref<2x49xf32, #tpu.memory_space<smem>>
    %610 = vector.broadcast %609 : f32 to vector<1x256xf32>
    %611 = arith.mulf %610, %31 : vector<1x256xf32>
    %612 = arith.addf %608, %611 : vector<1x256xf32>
    %cst_239 = arith.constant 0.000000e+00 : f32
    %613 = vector.broadcast %cst_239 : f32 to vector<1x13xf32>
    %614 = vector.extract_strided_slice %612 {offsets = [0, 0], sizes = [1, 243], strides = [1, 1]} : vector<1x256xf32> to vector<1x243xf32>
    %615 = tpu.concatenate %613, %614 in 1 : vector<1x13xf32>, vector<1x243xf32> -> vector<1x256xf32>
    %cst_240 = arith.constant 0.000000e+00 : f32
    %616 = vector.broadcast %cst_240 : f32 to vector<1x256xf32>
    %617 = arith.select %579, %615, %616 : vector<1x256xi1>, vector<1x256xf32>
    %618 = arith.addf %564, %617 : vector<1x256xf32>
    %c0_241 = arith.constant 0 : index
    %c27 = arith.constant 27 : index
    %619 = memref.load %arg4[%c0_241, %c27] : memref<2x49xf32, #tpu.memory_space<smem>>
    %620 = vector.broadcast %619 : f32 to vector<1x256xf32>
    %621 = arith.mulf %620, %29 : vector<1x256xf32>
    %c1_242 = arith.constant 1 : index
    %c27_243 = arith.constant 27 : index
    %622 = memref.load %arg4[%c1_242, %c27_243] : memref<2x49xf32, #tpu.memory_space<smem>>
    %623 = vector.broadcast %622 : f32 to vector<1x256xf32>
    %624 = arith.mulf %623, %31 : vector<1x256xf32>
    %625 = arith.addf %621, %624 : vector<1x256xf32>
    %626 = vector.extract_strided_slice %625 {offsets = [0, 3], sizes = [1, 253], strides = [1, 1]} : vector<1x256xf32> to vector<1x253xf32>
    %cst_244 = arith.constant 0.000000e+00 : f32
    %627 = vector.broadcast %cst_244 : f32 to vector<1x3xf32>
    %628 = tpu.concatenate %626, %627 in 1 : vector<1x253xf32>, vector<1x3xf32> -> vector<1x256xf32>
    %cst_245 = arith.constant 0.000000e+00 : f32
    %629 = vector.broadcast %cst_245 : f32 to vector<1x256xf32>
    %630 = arith.select %579, %628, %629 : vector<1x256xi1>, vector<1x256xf32>
    %631 = arith.addf %577, %630 : vector<1x256xf32>
    %c0_246 = arith.constant 0 : index
    %c34 = arith.constant 34 : index
    %632 = memref.load %arg4[%c0_246, %c34] : memref<2x49xf32, #tpu.memory_space<smem>>
    %633 = vector.broadcast %632 : f32 to vector<1x256xf32>
    %634 = arith.mulf %633, %29 : vector<1x256xf32>
    %c1_247 = arith.constant 1 : index
    %c34_248 = arith.constant 34 : index
    %635 = memref.load %arg4[%c1_247, %c34_248] : memref<2x49xf32, #tpu.memory_space<smem>>
    %636 = vector.broadcast %635 : f32 to vector<1x256xf32>
    %637 = arith.mulf %636, %31 : vector<1x256xf32>
    %638 = arith.addf %634, %637 : vector<1x256xf32>
    %639 = vector.extract_strided_slice %638 {offsets = [0, 19], sizes = [1, 237], strides = [1, 1]} : vector<1x256xf32> to vector<1x237xf32>
    %cst_249 = arith.constant 0.000000e+00 : f32
    %640 = vector.broadcast %cst_249 : f32 to vector<1x19xf32>
    %641 = tpu.concatenate %639, %640 in 1 : vector<1x237xf32>, vector<1x19xf32> -> vector<1x256xf32>
    %cst_250 = arith.constant 0.000000e+00 : f32
    %642 = vector.broadcast %cst_250 : f32 to vector<1x256xf32>
    %643 = arith.select %579, %641, %642 : vector<1x256xi1>, vector<1x256xf32>
    %644 = arith.addf %592, %643 : vector<1x256xf32>
    %c0_251 = arith.constant 0 : index
    %c41 = arith.constant 41 : index
    %645 = memref.load %arg4[%c0_251, %c41] : memref<2x49xf32, #tpu.memory_space<smem>>
    %646 = vector.broadcast %645 : f32 to vector<1x256xf32>
    %647 = arith.mulf %646, %29 : vector<1x256xf32>
    %c1_252 = arith.constant 1 : index
    %c41_253 = arith.constant 41 : index
    %648 = memref.load %arg4[%c1_252, %c41_253] : memref<2x49xf32, #tpu.memory_space<smem>>
    %649 = vector.broadcast %648 : f32 to vector<1x256xf32>
    %650 = arith.mulf %649, %31 : vector<1x256xf32>
    %651 = arith.addf %647, %650 : vector<1x256xf32>
    %652 = vector.extract_strided_slice %651 {offsets = [0, 35], sizes = [1, 221], strides = [1, 1]} : vector<1x256xf32> to vector<1x221xf32>
    %cst_254 = arith.constant 0.000000e+00 : f32
    %653 = vector.broadcast %cst_254 : f32 to vector<1x35xf32>
    %654 = tpu.concatenate %652, %653 in 1 : vector<1x221xf32>, vector<1x35xf32> -> vector<1x256xf32>
    %cst_255 = arith.constant 0.000000e+00 : f32
    %655 = vector.broadcast %cst_255 : f32 to vector<1x256xf32>
    %656 = arith.select %579, %654, %655 : vector<1x256xi1>, vector<1x256xf32>
    %657 = arith.addf %605, %656 : vector<1x256xf32>
    %c0_256 = arith.constant 0 : index
    %c48 = arith.constant 48 : index
    %658 = memref.load %arg4[%c0_256, %c48] : memref<2x49xf32, #tpu.memory_space<smem>>
    %659 = vector.broadcast %658 : f32 to vector<1x256xf32>
    %660 = arith.mulf %659, %29 : vector<1x256xf32>
    %c1_257 = arith.constant 1 : index
    %c48_258 = arith.constant 48 : index
    %661 = memref.load %arg4[%c1_257, %c48_258] : memref<2x49xf32, #tpu.memory_space<smem>>
    %662 = vector.broadcast %661 : f32 to vector<1x256xf32>
    %663 = arith.mulf %662, %31 : vector<1x256xf32>
    %664 = arith.addf %660, %663 : vector<1x256xf32>
    %665 = vector.extract_strided_slice %664 {offsets = [0, 51], sizes = [1, 205], strides = [1, 1]} : vector<1x256xf32> to vector<1x205xf32>
    %cst_259 = arith.constant 0.000000e+00 : f32
    %666 = vector.broadcast %cst_259 : f32 to vector<1x51xf32>
    %667 = tpu.concatenate %665, %666 in 1 : vector<1x205xf32>, vector<1x51xf32> -> vector<1x256xf32>
    %cst_260 = arith.constant 0.000000e+00 : f32
    %668 = vector.broadcast %cst_260 : f32 to vector<1x256xf32>
    %669 = arith.select %579, %667, %668 : vector<1x256xi1>, vector<1x256xf32>
    %670 = arith.addf %618, %669 : vector<1x256xf32>
    %671 = arith.addf %670, %631 : vector<1x256xf32>
    %672 = arith.addf %644, %657 : vector<1x256xf32>
    %673 = arith.addf %671, %672 : vector<1x256xf32>
    %cst_261 = arith.constant 0.000000e+00 : f32
    %674 = vector.broadcast %cst_261 : f32 to vector<1x256xf32>
    %675 = arith.subf %674, %673 : vector<1x256xf32>
    %676 = math.exp %675 : vector<1x256xf32>
    %cst_262 = arith.constant 1.000000e+00 : f32
    %677 = vector.broadcast %cst_262 : f32 to vector<1x256xf32>
    %678 = arith.addf %677, %676 : vector<1x256xf32>
    %cst_263 = arith.constant 1.000000e+00 : f32
    %679 = vector.broadcast %cst_263 : f32 to vector<1x256xf32>
    %680 = arith.divf %679, %678 : vector<1x256xf32>
    %681 = vector.broadcast %680 : vector<1x256xf32> to vector<32x256xf32>
    %682 = arith.mulf %25, %681 : vector<32x256xf32>
    %c0_264 = arith.constant 0 : index
    %c0_265 = arith.constant 0 : index
    %c0_266 = arith.constant 0 : index
    %683 = vector.load %arg5[%c0_264, %c0_265, %c0_266] : memref<1x32x256xf32, #tpu.memory_space<vmem>>, vector<1x32x256xf32>
    %684 = vector.shape_cast %683 : vector<1x32x256xf32> to vector<32x256xf32>
    %685 = vector.shape_cast %682 : vector<32x256xf32> to vector<1x32x256xf32>
    tpu.vector_store %arg5[%c0_264, %c0_265, %c0_266], %685 {strides = array<i32>} : memref<1x32x256xf32, #tpu.memory_space<vmem>>, vector<1x32x256xf32>,
    return
  }
  func.func @transform_0(%arg0: i32) -> (i32, i32, i32) {
    %c0_i32 = arith.constant 0 : i32
    %c0_i32_0 = arith.constant 0 : i32
    %c0_i32_1 = arith.constant 0 : i32
    return %arg0, %c0_i32, %c0_i32_0 : i32, i32, i32
  }
  func.func @transform_1(%arg0: i32) -> (i32, i32) {
    %c0_i32 = arith.constant 0 : i32
    %c0_i32_0 = arith.constant 0 : i32
    %c0_i32_1 = arith.constant 0 : i32
    return %c0_i32, %c0_i32_0 : i32, i32
  }
  func.func @transform_2(%arg0: i32) -> (i32, i32) {
    %c0_i32 = arith.constant 0 : i32
    %c0_i32_0 = arith.constant 0 : i32
    %c0_i32_1 = arith.constant 0 : i32
    return %c0_i32, %c0_i32_0 : i32, i32
  }
  func.func @transform_3(%arg0: i32) -> (i32, i32) {
    %c0_i32 = arith.constant 0 : i32
    %c0_i32_0 = arith.constant 0 : i32
    %c0_i32_1 = arith.constant 0 : i32
    return %c0_i32, %c0_i32_0 : i32, i32
  }
  func.func @transform_4(%arg0: i32) -> (i32, i32, i32) {
    %c0_i32 = arith.constant 0 : i32
    %c0_i32_0 = arith.constant 0 : i32
    %c0_i32_1 = arith.constant 0 : i32
    return %arg0, %c0_i32, %c0_i32_0 : i32, i32, i32
  }
}

</mosaic_0001>

<bundles_post_ra>
// kernel: tpu_custom_call.1
= control target key start
LH: loop header
LB: loop body
LE: loop exit
PB: predicated region body
PF: predicated region fallthrough
CT: control target
= control target key end

     0   :  { %s3509_s0 = inlined_call_operand.hbm [shape: f32[2,32,256], index: 0, kind: input, shape index: {}]   ;;  %s3510_s1 = inlined_call_operand.vmem [shape: f32[2,32], index: 1, kind: input, shape index: {}]   ;;  %s3511_s2 = inlined_call_operand.vmem [shape: f32[32,2], index: 2, kind: input, shape index: {}]   ;;  %s3512_s3 = inlined_call_operand.vmem [shape: f32[2,49], index: 3, kind: input, shape index: {}]   ;;  %s3513_s4 = inlined_call_operand.hbm [shape: f32[2,32,256], index: 4, kind: output, shape index: {}]  }
   0x1   :  { %3514 = sst [smem:[#allocation11_spill]] %s3512_s3 }
   0x2   :  { %9 = vsyncpa [#allocation3], 0 }
   0x3   :  { %11 = vsyncpa [#allocation3 + $0x1], 0 }
   0x4   :  { %12 = vsyncpa [#allocation5], 0 }
   0x5   :  { %13 = vsyncpa [#allocation4], 0 }
   0x6   :  { %15 = vsyncpa [#allocation4 + $0x1], 0  ;;  %s2331_s15 = smov 0   ;;  %s2333_s16 = smov 0  }
   0x7   :  { %s2335_s17 = smov 0   ;;  %s2337_s18 = smov 0  }
   0x8 LB: > { %s2352_s19 = sadd.s32 4294967295, %s2250_s18   ;;  %s1874_s20 = sadd.s32 4294967294, %s2250_s18   ;;  %s2250_s18 = sphi %s2337_s18, %s3532_s18   ;;  %s2246_s17 = sphi %s2335_s17, %s3531_s17   ;;  %s2242_s16 = sphi %s2333_s16, %s3530_s16   ;;  %s2238_s15 = sphi %s2331_s15, %s3529_s15  }
   0x9   : > { %s2356_s21 = sadd.s32 1, %s2250_s18   ;;  %s28_s22 = sadd.s32 1, %s2246_s17 }
   0xa   : > { %s25_s23 = ssub.s32 %s2250_s18, %s2356_s21  ;;  %p35_p0 = scmp.ne.s32.totalorder %s2246_s17, %s2242_s16 }
   0xb   : > { %p26_p1 = scmp.eq.s32.totalorder %s25_s23, 0  ;;  %p36_p2 = scmp.eq.s32.totalorder %s2250_s18, 0 }
   0xc   : > { %p41_p3 = scmp.ne.s32.totalorder %s2242_s16, %s2238_s15  ;;  %p42_p4 = scmp.eq.s32.totalorder %s2352_s19, 0 }
   0xd   : > { %s2368_s24 = scalar_select %p26_p1, %s2246_s17, %s28_s22  }
   0xe   : > { %p2370_p5 = por %p36_p2, %p35_p0  ;;  %p2376_p6 = por %p42_p4, %p41_p3 }
   0xf   : > { %p128_p7 = scmp.eq.s32.totalorder %s2352_s19, 1  ;;  %p134_p8 = scmp.eq.s32.totalorder %s1874_s20, 1 }
  0x10   : > { %p1875_p9 = scmp.ge.s32.totalorder %s2250_s18, 1  ;;  %p141_p10 = scmp.lt.s32.totalorder %s2250_s18, 3 }
  0x11   : > { %p2383_p11 = por %p128_p7, %p35_p0  ;;  %p2387_p12 = por %p134_p8, %p41_p3 }
  0x12   : > { %p2391_p13 = pnand %p1875_p9, %p141_p10  ;;  %s3520_s3 = sld [smem:[#allocation11_spill]] }
  0x13   : > { %p2018_p2 = scmp.lt.s32.totalorder %s2250_s18, 2  ;;  %s170_s7 = sand.u32 1, %s2246_s17  }
  0x14   : > { %p2005_p1 = pneg %p2391_p13  ;;  %s1878_s9 = sshll.u32 %s170_s7, 6 }
  0x15   : > { %p2407_p3 = pnand %p2018_p2, %p2370_p5  ;;  %s2252_s10 = smov [#allocation6]  }
  0x16   : > { %p2006_p7 = pnand %p2005_p1, %p42_p4  ;;  %s1993_s11 = sshll.u32 %s2250_s18, 6 }
  0x17   : > { %s174_s12 = scalar_lea.vmem [#allocation2], %s1878_s9  ;;  %s179_s22 = scalar_lea.hbm %s3509_s0, %s1993_s11 }
  0x18   : > { %s159_s6 = sshll.u32 %s3520_s3, 4  ;;  %s182_s13 = sshll.u32 %s174_s12, 4  ;;  %s160_s6 = int_to_ptr.vmem [resolvable:$true] %s159_s6  ;;  %s183_s13 = int_to_ptr.vmem [resolvable:$true] %s182_s13 }
  0x19   : > { %2008 = dma.vmem_to_smem (!%p2006_p7), %s160_s6, 32, %s2252_s10, [#allocation5]  }
  0x1a   : > { %s180_s23 = sshll.u32 %s179_s22, 4  ;;  %s171_s30 = scalar_lea.sflag [#allocation3], %s170_s7  ;;  %s181_s23 = int_to_ptr.hbm [resolvable:$true] %s180_s23 }
  0x1b   : > { %s2150_s25 = sshra.s32 %s181_s23, 4  ;;  %p2154_p8 = pneg %p2407_p3  ;;  %s2151_s25 = int_to_ptr.hbm [resolvable:$true] %s2150_s25 }
  0x1c   : > { %s2152_s5 = scalar_lea.hbm %s2151_s25, 64  ;;  %s2157_s9 = scalar_lea.hbm %s3509_s0, 128 }
  0x1d   : > { %p2153_p5 = scmp.ne.s32.totalorder %s2151_s25, %s2152_s5  ;;  %p2158_p1 = scmp.lt.s32.totalorder %s2151_s25, %s3509_s0 }
  0x1e   : > { %p2159_p2 = scmp.lt.s32.totalorder %s2157_s9, %s2152_s5 }
  0x1f   : > { %p2155_p9 = pnand %p2154_p8, %p2153_p5 }
  0x20   : > { %p2160_p7 = por %p2159_p2, %p2158_p1 }
  0x21   : > { %p2156_p10 = pneg %p2155_p9 }
  0x23   : > { %p2161_p0 = pnand %p2160_p7, %p2156_p10 }
  0x25   : > { %2164 = shalt.err (!%p2161_p0)
}
  0x26   : > { %s2253_s7 = smov 256   ;;  %s2254_s11 = smov 16  }
  0x27   : > { %2012 = dma.hbm_to_vmem [thread:$0]  (!%p2407_p3), %s181_s23, 1024, %s183_s13, %s171_s30, %s2253_s7, %s2253_s7, %s2254_s11  }
  0x28   : > { %194 = sbr.rel (%p2391_p13) target bundleno = 1047 (0x417), region = 36  ;;  %s2428_s14 = sand.u32 (!%p2391_p13), 1, %s2242_s16  }
  0x29   : > { %s1882_s3 = sshll.u32 (!%p2391_p13), %s2428_s14, 6  ;;  %s197_s20 = scalar_lea.sflag (!%p2391_p13), [#allocation3], %s2428_s14 }
  0x2a   : > { %s200_s22 = scalar_lea.vmem (!%p2391_p13), [#allocation2], %s1882_s3 }
  0x2d   : > { %2225 = dma.done.wait (%p2376_p6), %s197_s20, 1024  }
  0x2e   : > { %2227 = vsyncadd (%p2376_p6), %s197_s20, 4294966272 }
  0x2f   : > { %2229 = dma.done.wait (%p42_p4), [#allocation5], 32  }
  0x30   : > { %2231 = vsyncadd (%p42_p4), [#allocation5], 4294967264 }
  0x31   : > { %211 = sfence }
  0x32   : > { %v2442_v0 = vld [vmem:[%s200_s22 + $0x30] sm:$0xff]  ;;  %v2444_v1 = vld [vmem:[%s200_s22 + $0x38] sm:$0xff]  ;;  %v2446_v2 = vld [vmem:[%s200_s22 + $0x20] sm:$0xff]  ;;  %v2255_v16 = vmov 256.0   ;;  %vm275_vm1 = vcmask 7168   ;;  %vm281_vm2 = vcmask 261120  }
  0x33   : > { %v249_v3 = vadd.f32 %v2444_v1, %v2442_v0  ;;  %v272_v4 = vmax.f32 %v2442_v0, %v2444_v1  ;;  %v2452_v5 = vld [vmem:[%s200_s22 + $0x28] sm:$0xff]  ;;  %v2456_v7 = vld [vmem:[%s200_s22 + $0x10] sm:$0xff]  ;;  %v2458_v8 = vld [vmem:[%s200_s22 + $0x18] sm:$0xff]  ;;  %2107 = vrcp.f32 %v2255_v16  ;;  %vm323_vm3 = vcmask 1041408   ;;  %s2562_s9 = sld [smem:[#allocation6 + $0x80]]  ;;  %s2257_s8 = smov 51  }
  0x34   : > { %v269_v6 = vmax.f32 %v2446_v2, %v2452_v5  ;;  %v2460_v9 = vld [vmem:[%s200_s22] sm:$0xff]  ;;  %v2462_v10 = vld [vmem:[%s200_s22 + $0x8] sm:$0xff]  ;;  %v246_v11 = vadd.f32 %v2452_v5, %v2446_v2  ;;  %v243_v12 = vadd.f32 %v2458_v8, %v2456_v7  ;;  %v266_v14 = vmax.f32 %v2456_v7, %v2458_v8  ;;  %v309_v44 = vld [vmem:[%s3511_s2 + $0x18] sm:$0xff]  ;;  %s2564_s12 = sld [smem:[#allocation6 + $0x87]]  ;;  %s2258_s13 = smov 35  }
  0x35   : > { %250 = vadd.xlane.f32.xlu0 %v249_v3  ;;  %273 = vmax.xlane.f32.xlu1 %v272_v4  ;;  %v240_v13 = vadd.f32 %v2462_v10, %v2460_v9  ;;  %v263_v15 = vmax.f32 %v2460_v9, %v2462_v10  ;;  %v280_v39 = vld [vmem:[%s3510_s1] sm:$0x3]  ;;  %vm310_vm4 = vcmask 15360   ;;  %v307_v43 = vld [vmem:[%s3511_s2 + $0x8] sm:$0xff]  ;;  %v308_v45 = vld [vmem:[%s3511_s2 + $0x10] sm:$0xff]  ;;  %s2566_s7 = sld [smem:[#allocation6]] }
  0x36   : > { %270 = vmax.xlane.f32.xlu2 %v269_v6  ;;  %v306_v42 = vld [vmem:[%s3511_s2] sm:$0xff]  ;;  %s2568_s11 = sld [smem:[#allocation6 + $0x7]]  ;;  %s2259_s5 = smov 19  }
  0x37   : > { %s2572_s20 = sld [smem:[#allocation6 + $0xe]] }
  0x38   : > { %s1895_s22 = sld [smem:[#allocation6 + $0x8e]] }
  0x39   : > { %v2108_v17 = vpop.eup %2107  ;;  %s2590_s26 = sld [smem:[#allocation6 + $0x1c]] }
  0x3a   : > { %v253_v18 = vmul.f32 256.0, %v2108_v17  ;;  %vm257_vm0 = vweird.f32 %v2108_v17  ;;  %s1896_s29 = sld [smem:[#allocation6 + $0x15]] }
  0x3b   : > { %s2593_s23 = sld [smem:[#allocation6 + $0x9c]] }
  0x3c   : > { %v254_v19 = vsub.f32 1.0, %v253_v18  ;;  %s1897_s30 = sld [smem:[#allocation6 + $0x95]] }
  0x3d   : > { %247 = vadd.xlane.f32.xlu0 %v246_v11  ;;  %244 = vadd.xlane.f32.xlu1 %v243_v12  ;;  %s1900_s25 = sld [smem:[#allocation6 + $0x23]] }
  0x3e   : > { %241 = vadd.xlane.f32.xlu2 %v240_v13  ;;  %v255_v20 = vmul.f32 %v2108_v17, %v254_v19  ;;  %s1901_s6 = sld [smem:[#allocation6 + $0xa3]] }
  0x3f   : > { %s2609_s10 = sld [smem:[#allocation6 + $0x1]] }
  0x40   : > { %v256_v21 = vadd.f32 %v2108_v17, %v255_v20 }
  0x42   : > { %v258_v22 = vsel %vm257_vm0, %v2108_v17, %v256_v21 }
  0x45   : > { %267 = vmax.xlane.f32.xlu0 %v266_v14  ;;  %264 = vmax.xlane.f32.xlu1 %v263_v15 }
  0xa8   : > { %v251_v23 = vpop.xlane.xlu0 %250  ;;  %v274_v24 = vpop.xlane.xlu1 %273 }
  0xa9   : > { %v262_v25 = vmul.f32 %v258_v22, %v251_v23  ;;  %v271_v26 = vpop.xlane.xlu2 %270 }
  0xab   : > { %v279_v27 = vsel %vm275_vm1, %v262_v25, %v274_v24 }
  0xac   : > { %297 = vmatpush.msra.mxu0 %v279_v27 }
  0xb0   : > { %v248_v28 = vpop.xlane.xlu0 %247  ;;  %v245_v29 = vpop.xlane.xlu1 %244 }
  0xb1   : > { %v261_v30 = vmul.f32 %v258_v22, %v248_v28  ;;  %v242_v31 = vpop.xlane.xlu2 %241  ;;  %v260_v34 = vmul.f32 %v258_v22, %v245_v29 }
  0xb2   : > { %v259_v33 = vmul.f32 %v258_v22, %v242_v31 }
  0xb3   : > { %v278_v32 = vsel %vm275_vm1, %v261_v30, %v271_v26 }
  0xb4   : > { %298 = vmatpush.msra.mxu0 %v278_v32 }
  0xb8   : > { %v268_v35 = vpop.xlane.xlu0 %267  ;;  %v265_v36 = vpop.xlane.xlu1 %264 }
  0xb9   : > { %v277_v37 = vsel %vm275_vm1, %v260_v34, %v268_v35  ;;  %v276_v38 = vsel %vm275_vm1, %v259_v33, %v265_v36 }
  0xba   : > { %299 = vmatpush.msra.mxu0 %v277_v37 }
  0xbc   : > { %300 = vmatpush.msra.mxu0 %v276_v38 }
  0xbd   : > { %1885 = vmatmul.msk.f32.vlgmr.msra.gmra.mxu0 %vm281_vm2, %v280_v39 }
 0x13a   : > { %v302_v40 = vpop.f32.mrf.mxu0 }
 0x13b   : > { %v305_v41 = vmax.f32 %v302_v40, 0.0 }
 0x13d   : > { %1886 = vmatpush.msk.msra.mxu1 %vm323_vm3, %v305_v41  ;;  %1995 = vmatpush.msk.msra.mxu2 %vm323_vm3, %v305_v41 }
 0x13e   : > { %1996 = vmatpush.msk.msra.mxu3 %vm323_vm3, %v305_v41  ;;  %1887 = vmatmul.msk.f32.vlgmr.msra.gmra.mxu1 %vm310_vm4, %v306_v42 }
 0x13f   : > { %1888 = vmatmul.msk.f32.vlgmr.msra.gmra.mxu2 %vm310_vm4, %v307_v43  ;;  %1890 = vmatmul.msk.f32.vlgmr.msra.gmra.mxu3 %vm310_vm4, %v309_v44  ;;  %v2256_v43 = vmov 32.0  }
 0x147   : > { %1889 = vmatmul.msk.f32.gmra.mxu2 %vm310_vm4, %v308_v45  ;;  %v534_v45 = vstv %s2564_s12  ;;  %s2260_s12 = smov 115  }
 0x1bb   : > { %v344_v46 = vpop.f32.mrf.mxu1 }
 0x1bc   : > { %v356_v47 = vsel %vm310_vm4, %v344_v46, 0.0 }
 0x1bd   : > { %357 = vadd.xlane.f32.xlu2 %v356_v47 }
 0x1c2   : > { %v347_v48 = vpop.f32.mrf.mxu2  ;;  %v353_v49 = vpop.f32.mrf.mxu3 }
 0x1c3   : > { %v359_v50 = vsel %vm310_vm4, %v347_v48, 0.0  ;;  %v365_v51 = vsel %vm310_vm4, %v353_v49, 0.0 }
 0x1c4   : > { %360 = vadd.xlane.f32.xlu0 %v359_v50 }
 0x1c5   : > { %366 = vadd.xlane.f32.xlu2 %v365_v51 }
 0x1ca   : > { %v350_v52 = vpop.f32.mrf.mxu2 }
 0x1cb   : > { %v362_v53 = vsel %vm310_vm4, %v350_v52, 0.0 }
 0x1cc   : > { %363 = vadd.xlane.f32.xlu1 %v362_v53 }
 0x230   : > { %v358_v54 = vpop.xlane.xlu2 %357 }
 0x231   : > { %v368_v55 = vsub.f32 0.0, %v358_v54 }
 0x233   : > { %v372_v56 = vmul.f32 1.442695, %v368_v55 }
 0x235   : > { %2109 = vpow2.f32 %v372_v56 }
 0x237   : > { %v361_v57 = vpop.xlane.xlu0 %360 }
 0x238   : > { %v369_v58 = vsub.f32 0.0, %v361_v57  ;;  %v367_v59 = vpop.xlane.xlu2 %366 }
 0x239   : > { %v371_v60 = vsub.f32 0.0, %v367_v59 }
 0x23a   : > { %v374_v61 = vmul.f32 1.442695, %v369_v58 }
 0x23b   : > { %v2110_v62 = vpop.eup %2109  ;;  %v378_v63 = vmul.f32 1.442695, %v371_v60 }
 0x23c   : > { %v380_v3 = vadd.f32 1.0, %v2110_v62  ;;  %2111 = vpow2.f32 %v374_v61 }
 0x23d   : > { %2113 = vpow2.f32 %v378_v63 }
 0x23e   : > { %2115 = vrcp.f32 %v380_v3  ;;  %vm389_vm5 = vweird.f32 %v380_v3  ;;  %v393_v27 = vand.u32 2147483647, %v380_v3  ;;  %v395_v37 = vand.u32 2147483648, %v380_v3 }
 0x23f   : > { %v364_v4 = vpop.xlane.xlu1 %363 }
 0x240   : > { %v370_v6 = vsub.f32 0.0, %v364_v4  ;;  %vm394_vm14 = vcmp.eq.f32.partialorder %v393_v27, 8.507059e+37  ;;  %v396_v51 = vor.u32 1.1754944e-38, %v395_v37 }
 0x242   : > { %v2112_v11 = vpop.eup %2111  ;;  %v376_v12 = vmul.f32 1.442695, %v370_v6 }
 0x243   : > { %v2114_v13 = vpop.eup %2113  ;;  %v381_v14 = vadd.f32 1.0, %v2112_v11 }
 0x244   : > { %v2116_v15 = vpop.eup %2115  ;;  %v383_v16 = vadd.f32 1.0, %v2114_v13  ;;  %2117 = vpow2.f32 %v376_v12 }
 0x245   : > { %2119 = vrcp.f32 %v381_v14  ;;  %v385_v17 = vmul.f32 %v2116_v15, %v380_v3  ;;  %vm390_vm6 = vweird.f32 %v2116_v15  ;;  %vm404_vm7 = vweird.f32 %v381_v14 }
 0x246   : > { %2121 = vrcp.f32 %v383_v16  ;;  %v410_v30 = vand.u32 2147483648, %v381_v14  ;;  %vm434_vm9 = vweird.f32 %v383_v16  ;;  %v408_v34 = vand.u32 2147483647, %v381_v14  ;;  %vm2514_vm13 = vmor %vm389_vm5, %vm390_vm6 }
 0x247   : > { %v386_v19 = vsub.f32 1.0, %v385_v17  ;;  %v440_v35 = vand.u32 2147483648, %v383_v16  ;;  %v438_v40 = vand.u32 2147483647, %v383_v16 }
 0x248   : > { %v411_v46 = vor.u32 1.1754944e-38, %v410_v30  ;;  %vm409_vm15 = vcmp.eq.f32.partialorder %v408_v34, 8.507059e+37 }
 0x249   : > { %v387_v25 = vmul.f32 %v2116_v15, %v386_v19  ;;  %v441_v49 = vor.u32 1.1754944e-38, %v440_v35  ;;  %vm439_vm0 = vcmp.eq.f32.partialorder %v438_v40, 8.507059e+37 }
 0x24a   : > { %v2118_v18 = vpop.eup %2117 }
 0x24b   : > { %v2120_v20 = vpop.eup %2119  ;;  %v382_v21 = vadd.f32 1.0, %v2118_v18  ;;  %v388_v32 = vadd.f32 %v2116_v15, %v387_v25 }
 0x24c   : > { %v2122_v22 = vpop.eup %2121  ;;  %v400_v23 = vmul.f32 %v2120_v20, %v381_v14  ;;  %vm405_vm8 = vweird.f32 %v2120_v20 }
 0x24d   : > { %v430_v24 = vmul.f32 %v2122_v22, %v383_v16  ;;  %2123 = vrcp.f32 %v382_v21  ;;  %vm435_vm10 = vweird.f32 %v2122_v22  ;;  %vm2502_vm11 = vmor %vm404_vm7, %vm405_vm8  ;;  %v392_v48 = vsel %vm2514_vm13, %v2116_v15, %v388_v32 }
 0x24e   : > { %v401_v26 = vsub.f32 1.0, %v400_v23  ;;  %vm2508_vm12 = vmor %vm434_vm9, %vm435_vm10  ;;  %2125 = vrcp.f32 %v2256_v43  ;;  %v425_v53 = vand.u32 2147483648, %v382_v21  ;;  %v423_v56 = vand.u32 2147483647, %v382_v21 }
 0x24f   : > { %v431_v28 = vsub.f32 1.0, %v430_v24  ;;  %v397_v57 = vsel %vm394_vm14, %v396_v51, %v392_v48  ;;  %vm419_vm5 = vweird.f32 %v382_v21  ;;  %v530_v51 = vstv %s2568_s11  ;;  %s2611_s11 = sld [smem:[#allocation6 + $0x81]] }
 0x250   : > { %v402_v29 = vmul.f32 %v2120_v20, %v401_v26  ;;  %v426_v3 = vor.u32 1.1754944e-38, %v425_v53  ;;  %v2535_v4 = vmul.f32 %v397_v57, %v2460_v9  ;;  %v2538_v6 = vmul.f32 %v397_v57, %v2462_v10 }
 0x251   : > { %v432_v31 = vmul.f32 %v2122_v22, %v431_v28  ;;  %vm424_vm7 = vcmp.eq.f32.partialorder %v423_v56, 8.507059e+37  ;;  %vm520_vm9 = vcmask 416768   ;;  %vm670_vm10 = vcmask 678912  }
 0x252   : > { %v403_v33 = vadd.f32 %v2120_v20, %v402_v29  ;;  %vm595_vm14 = vcmask 23552  }
 0x253   : > { %v2124_v36 = vpop.eup %2123  ;;  %v433_v39 = vadd.f32 %v2122_v22, %v432_v31 }
 0x254   : > { %v407_v41 = vsel %vm2502_vm11, %v2120_v20, %v403_v33  ;;  %v415_v44 = vmul.f32 %v2124_v36, %v382_v21  ;;  %vm420_vm3 = vweird.f32 %v2124_v36  ;;  %v2126_v58 = vpop.eup %2125  ;;  %vm570_vm11 = vcmask 154624  }
 0x255   : > { %v437_v47 = vsel %vm2508_vm12, %v2122_v22, %v433_v39  ;;  %v412_v52 = vsel %vm409_vm15, %v411_v46, %v407_v41  ;;  %vm421_vm6 = vmor %vm419_vm5, %vm420_vm3  ;;  %vm475_vm8 = vweird.f32 %v2126_v58  ;;  %vm545_vm12 = vcmask 285696  }
 0x256   : > { %v416_v50 = vsub.f32 1.0, %v415_v44  ;;  %v442_v54 = vsel %vm439_vm0, %v441_v49, %v437_v47  ;;  %v2523_v59 = vmul.f32 %v412_v52, %v2456_v7  ;;  %v2526_v60 = vmul.f32 %v412_v52, %v2458_v8 }
 0x257   : > { %v2529_v62 = vmul.f32 %v442_v54, %v2442_v0  ;;  %v2532_v63 = vmul.f32 %v442_v54, %v2444_v1  ;;  %v471_v8 = vmul.f32 32.0, %v2126_v58  ;;  %v509_v44 = vstv %s2562_s9  ;;  %s1902_s9 = sld [smem:[#allocation6 + $0x2a]] }
 0x258   : > { %v417_v55 = vmul.f32 %v2124_v36, %v416_v50  ;;  %v452_v12 = vadd.f32 %v2523_v59, %v2535_v4  ;;  %v461_v0 = vadd.f32 %v2526_v60, %v2538_v6  ;;  %v505_v50 = vstv %s2566_s7  ;;  %s2261_s7 = smov 3  }
 0x259   : > { %v480_v9 = vmax.f32 %v2523_v59, %v2529_v62  ;;  %v489_v10 = vmax.f32 %v2526_v60, %v2532_v63  ;;  %v472_v17 = vsub.f32 1.0, %v471_v8  ;;  %vm645_vm0 = vcmask 809984  }
 0x25a   : > { %v418_v61 = vadd.f32 %v2124_v36, %v417_v55  ;;  %vm620_vm3 = vcmask 941056   ;;  %vm722_vm5 = vcmask 277504  }
 0x25b   : > { %v473_v25 = vmul.f32 %v2126_v58, %v472_v17 }
 0x25c   : > { %v422_v7 = vsel %vm421_vm6, %v2124_v36, %v418_v61 }
 0x25d   : > { %v427_v11 = vsel %vm424_vm7, %v426_v3, %v422_v7  ;;  %v474_v34 = vadd.f32 %v2126_v58, %v473_v25  ;;  %vm697_vm7 = vcmask 408576  }
 0x25e   : > { %v2545_v1 = vmul.f32 %v427_v11, %v2446_v2  ;;  %v2548_v13 = vmul.f32 %v427_v11, %v2452_v5  ;;  %v555_v11 = vstv %s2572_s20  ;;  %s1903_s20 = sld [smem:[#allocation6 + $0xaa]] }
 0x25f   : > { %v476_v43 = vsel %vm475_vm8, %v2126_v58, %v474_v34  ;;  %vm821_vm8 = vcmask 801792  }
 0x260   : > { %v453_v14 = vadd.f32 %v452_v12, %v2545_v1  ;;  %v462_v15 = vadd.f32 %v461_v0, %v2548_v13  ;;  %v479_v16 = vmax.f32 %v2535_v4, %v2545_v1  ;;  %v488_v2 = vmax.f32 %v2538_v6, %v2548_v13 }
 0x261   : > { %v559_v12 = vstv %s1895_s22  ;;  %s1906_s22 = sld [smem:[#allocation6 + $0x8]] }
 0x262   : > { %v454_v5 = vadd.f32 %v453_v14, %v2529_v62  ;;  %v463_v18 = vadd.f32 %v462_v15, %v2532_v63  ;;  %v481_v19 = vmax.f32 %v479_v16, %v480_v9  ;;  %v490_v20 = vmax.f32 %v488_v2, %v489_v10 }
 0x264   : > { %v455_v21 = vrot.slane %v454_v5, 4  ;;  %v464_v22 = vrot.slane %v463_v18, 4  ;;  %v482_v23 = vrot.slane %v481_v19, 4  ;;  %v491_v24 = vrot.slane %v490_v20, 4 }
 0x266   : > { %v456_v26 = vadd.f32 %v455_v21, %v454_v5  ;;  %v465_v27 = vadd.f32 %v464_v22, %v463_v18  ;;  %v483_v28 = vmax.f32 %v481_v19, %v482_v23  ;;  %v492_v29 = vmax.f32 %v490_v20, %v491_v24 }
 0x267   : > { %v605_v18 = vstv %s2590_s26  ;;  %v580_v19 = vstv %s1896_s29  ;;  %v609_v20 = vstv %s2593_s23  ;;  %v584_v21 = vstv %s1897_s30  ;;  %s2262_s26 = smov 99   ;;  %s1907_s29 = sld [smem:[#allocation6 + $0x88]] }
 0x268   : > { %v457_v30 = vrot.slane %v456_v26, 2  ;;  %v466_v31 = vrot.slane %v465_v27, 2  ;;  %v484_v32 = vrot.slane %v483_v28, 2  ;;  %v493_v33 = vrot.slane %v492_v29, 2  ;;  %s2263_s23 = smov 50   ;;  %s2264_s30 = smov 83  }
 0x26a   : > { %v458_v35 = vadd.f32 %v457_v30, %v456_v26  ;;  %v467_v36 = vadd.f32 %v466_v31, %v465_v27  ;;  %v485_v37 = vmax.f32 %v483_v28, %v484_v32  ;;  %v494_v38 = vmax.f32 %v492_v29, %v493_v33 }
 0x26b   : > { %v630_v31 = vstv %s1900_s25  ;;  %v634_v32 = vstv %s1901_s6  ;;  %s2629_s25 = sld [smem:[#allocation6 + $0x96]] }
 0x26c   : > { %v459_v39 = vrot.slane %v458_v35, 1  ;;  %v468_v40 = vrot.slane %v467_v36, 1  ;;  %v486_v41 = vrot.slane %v485_v37, 1  ;;  %v495_v42 = vrot.slane %v494_v38, 1  ;;  %s1912_s6 = sld [smem:[#allocation6 + $0x1d]] }
 0x26e   : > { %v460_v46 = vadd.f32 %v459_v39, %v458_v35  ;;  %v469_v47 = vadd.f32 %v468_v40, %v467_v36  ;;  %v2574_v48 = vmax.f32 %v485_v37, %v486_v41  ;;  %v2576_v49 = vmax.f32 %v494_v38, %v495_v42 }
 0x26f   : > { %v682_v42 = vstv %s2609_s10  ;;  %s2265_s10 = smov 34  }
 0x270   : > { %v2580_v52 = vmul.f32 %v476_v43, %v460_v46  ;;  %v2582_v53 = vmul.f32 %v476_v43, %v469_v47  ;;  %v511_v54 = vmul.f32 %v509_v44, %v2576_v49  ;;  %v535_v55 = vmul.f32 %v534_v45, %v2574_v48 }
 0x271   : > { %v510_v61 = vmul.f32 %v509_v44, %v2574_v48  ;;  %v561_v14 = vmul.f32 %v559_v12, %v2576_v49  ;;  %v560_v15 = vmul.f32 %v559_v12, %v2574_v48  ;;  %v536_v16 = vmul.f32 %v534_v45, %v2576_v49 }
 0x272   : > { %v507_v56 = vmul.f32 %v505_v50, %v2582_v53  ;;  %v531_v57 = vmul.f32 %v530_v51, %v2580_v52  ;;  %v506_v58 = vmul.f32 %v505_v50, %v2580_v52  ;;  %v557_v0 = vmul.f32 %v555_v11, %v2582_v53 }
 0x273   : > { %v556_v9 = vmul.f32 %v555_v11, %v2580_v52  ;;  %v532_v10 = vmul.f32 %v530_v51, %v2582_v53  ;;  %v606_v22 = vmul.f32 %v605_v18, %v2580_v52  ;;  %v582_v23 = vmul.f32 %v580_v19, %v2582_v53 }
 0x274   : > { %v513_v3 = vadd.f32 %v511_v54, %v507_v56  ;;  %v537_v7 = vadd.f32 %v535_v55, %v531_v57  ;;  %v512_v8 = vadd.f32 %v510_v61, %v506_v58  ;;  %v563_v2 = vadd.f32 %v561_v14, %v557_v0 }
 0x275   : > { %v562_v17 = vadd.f32 %v560_v15, %v556_v9  ;;  %v538_v5 = vadd.f32 %v536_v16, %v532_v10  ;;  %v581_v24 = vmul.f32 %v580_v19, %v2580_v52  ;;  %v610_v25 = vmul.f32 %v609_v20, %v2574_v48 }
 0x276   : > { %518 = vrot.lane.b32.xlu1 %v513_v3, %s2257_s8  ;;  %541 = vrot.lane.b32.xlu2 %v537_v7, %s2258_s13  ;;  %v586_v26 = vmul.f32 %v584_v21, %v2576_v49  ;;  %v585_v27 = vmul.f32 %v584_v21, %v2574_v48  ;;  %v632_v33 = vmul.f32 %v630_v31, %v2582_v53  ;;  %v655_v43 = vstv %s1902_s9  ;;  %s1913_s9 = sld [smem:[#allocation6 + $0x9d]] }
 0x277   : > { %516 = vrot.lane.b32.xlu0 %v512_v8, %s2257_s8  ;;  %v612_v28 = vadd.f32 %v610_v25, %v606_v22  ;;  %v631_v34 = vmul.f32 %v630_v31, %v2580_v52  ;;  %v607_v35 = vmul.f32 %v605_v18, %v2582_v53  ;;  %v636_v36 = vmul.f32 %v634_v32, %v2576_v49  ;;  %s2627_s8 = sld [smem:[#allocation6 + $0x16]] }
 0x278   : > { %v588_v29 = vadd.f32 %v586_v26, %v582_v23  ;;  %v587_v30 = vadd.f32 %v585_v27, %v581_v24  ;;  %v635_v37 = vmul.f32 %v634_v32, %v2574_v48  ;;  %v611_v38 = vmul.f32 %v609_v20, %v2576_v49 }
 0x279   : > { %v638_v39 = vadd.f32 %v636_v36, %v632_v33  ;;  %v686_v44 = vstv %s2611_s11  ;;  %v659_v45 = vstv %s1903_s20  ;;  %v683_v46 = vmul.f32 %v682_v42, %v2580_v52  ;;  %s2266_s11 = smov 2   ;;  %s2267_s20 = smov 18  }
 0x27a   : > { %v637_v40 = vadd.f32 %v635_v37, %v631_v34  ;;  %v613_v41 = vadd.f32 %v611_v38, %v607_v35  ;;  %v657_v47 = vmul.f32 %v655_v43, %v2582_v53  ;;  %v656_v50 = vmul.f32 %v655_v43, %v2580_v52 }
 0x27b   : > { %v687_v51 = vmul.f32 %v686_v44, %v2574_v48  ;;  %v661_v54 = vmul.f32 %v659_v45, %v2576_v49  ;;  %v660_v55 = vmul.f32 %v659_v45, %v2574_v48  ;;  %v707_v61 = vstv %s1906_s22  ;;  %s2647_s22 = sld [smem:[#allocation6 + $0xab]] }
 0x27c   : > { %v711_v3 = vstv %s1907_s29  ;;  %v709_v7 = vmul.f32 %v707_v61, %v2582_v53  ;;  %v708_v8 = vmul.f32 %v707_v61, %v2580_v52  ;;  %v684_v11 = vmul.f32 %v682_v42, %v2582_v53  ;;  %s1918_s29 = sld [smem:[#allocation6 + $0x2]] }
 0x27d   : > { %v689_v56 = vadd.f32 %v687_v51, %v683_v46  ;;  %v663_v57 = vadd.f32 %v661_v54, %v657_v47  ;;  %v662_v58 = vadd.f32 %v660_v55, %v656_v50  ;;  %v713_v12 = vmul.f32 %v711_v3, %v2576_v49 }
 0x27e   : > { %568 = vrot.lane.b32.xlu1 %v563_v2, %s2259_s5  ;;  %566 = vrot.lane.b32.xlu2 %v562_v17, %s2259_s5  ;;  %s1909_s5 = sld [smem:[#allocation6 + $0x8f]]  ;;  %v712_v0 = vmul.f32 %v711_v3, %v2574_v48  ;;  %v688_v9 = vmul.f32 %v686_v44, %v2576_v49  ;;  %v757_v16 = vstv %s2627_s8  ;;  %v761_v17 = vstv %s2629_s25  ;;  %s2268_s8 = smov 114  }
 0x27f   : > { %543 = vrot.lane.b32.xlu0 %v538_v5, %s2258_s13  ;;  %s1908_s13 = sld [smem:[#allocation6 + $0xf]]  ;;  %v715_v10 = vadd.f32 %v713_v12, %v709_v7  ;;  %v758_v18 = vmul.f32 %v757_v16, %v2580_v52  ;;  %v762_v21 = vmul.f32 %v761_v17, %v2574_v48  ;;  %v781_v27 = vstv %s1912_s6  ;;  %s2269_s25 = smov 82  }
 0x280   : > { %v714_v14 = vadd.f32 %v712_v0, %v708_v8  ;;  %v690_v15 = vadd.f32 %v688_v9, %v684_v11  ;;  %v759_v31 = vmul.f32 %v757_v16, %v2582_v53  ;;  %v763_v34 = vmul.f32 %v761_v17, %v2576_v49  ;;  %s2665_s6 = sld [smem:[#allocation6 + $0x90]] }
 0x281   : > { %v764_v24 = vadd.f32 %v762_v21, %v758_v18 }
 0x282   : > { %v765_v37 = vadd.f32 %v763_v34, %v759_v31  ;;  %v858_v55 = vstv %s1918_s29  ;;  %s2685_s29 = sld [smem:[#allocation6 + $0xa5]] }
 0x284   : > { %v736_v5 = vstv %s1909_s5  ;;  %s2270_s5 = smov 98  }
 0x285   : > { %v732_v2 = vstv %s1908_s13  ;;  %v738_v22 = vmul.f32 %v736_v5, %v2576_v49  ;;  %v737_v23 = vmul.f32 %v736_v5, %v2574_v48  ;;  %s1919_s13 = sld [smem:[#allocation6 + $0x82]] }
 0x286   : > { %616 = vrot.lane.b32.xlu1 %v612_v28, %s2260_s12  ;;  %593 = vrot.lane.b32.xlu2 %v588_v29, %s2261_s7  ;;  %v734_v19 = vmul.f32 %v732_v2, %v2582_v53  ;;  %v733_v20 = vmul.f32 %v732_v2, %v2580_v52  ;;  %v785_v28 = vstv %s1913_s9  ;;  %v783_v29 = vmul.f32 %v781_v27, %v2582_v53  ;;  %s1924_s9 = sld [smem:[#allocation6 + $0x17]] }
 0x287   : > { %591 = vrot.lane.b32.xlu0 %v587_v30, %s2261_s7  ;;  %s1914_s7 = sld [smem:[#allocation6 + $0x24]]  ;;  %v782_v30 = vmul.f32 %v781_v27, %v2580_v52  ;;  %v787_v32 = vmul.f32 %v785_v28, %v2576_v49  ;;  %v786_v33 = vmul.f32 %v785_v28, %v2574_v48 }
 0x288   : > { %v740_v25 = vadd.f32 %v738_v22, %v734_v19  ;;  %v739_v26 = vadd.f32 %v737_v23, %v733_v20 }
 0x289   : > { %v789_v35 = vadd.f32 %v787_v32, %v783_v29  ;;  %v788_v36 = vadd.f32 %v786_v33, %v782_v30 }
 0x28c   : > { %v933_v23 = vstv %s1924_s9  ;;  %s2711_s9 = sld [smem:[#allocation6 + $0x8a]] }
 0x28e   : > { %643 = vrot.lane.b32.xlu1 %v638_v39, %s2262_s26  ;;  %641 = vrot.lane.b32.xlu2 %v637_v40, %s2262_s26  ;;  %s1915_s26 = sld [smem:[#allocation6 + $0xa4]]  ;;  %v806_v39 = vstv %s1914_s7  ;;  %v835_v40 = vstv %s2647_s22  ;;  %s2272_s22 = smov 17  }
 0x28f   : > { %618 = vrot.lane.b32.xlu0 %v613_v41, %s2260_s12  ;;  %s2645_s12 = sld [smem:[#allocation6 + $0x2b]]  ;;  %v808_v43 = vmul.f32 %v806_v39, %v2582_v53  ;;  %v807_v44 = vmul.f32 %v806_v39, %v2580_v52  ;;  %v836_v45 = vmul.f32 %v835_v40, %v2574_v48  ;;  %v837_v8 = vmul.f32 %v835_v40, %v2576_v49 }
 0x290   : > { %s1925_s7 = sld [smem:[#allocation6 + $0x97]] }
 0x294   : > { %v810_v41 = vstv %s1915_s26  ;;  %s2273_s26 = smov 33  }
 0x295   : > { %v831_v38 = vstv %s2645_s12  ;;  %v812_v46 = vmul.f32 %v810_v41, %v2576_v49  ;;  %v811_v47 = vmul.f32 %v810_v41, %v2574_v48  ;;  %s2271_s12 = smov 49  }
 0x296   : > { %693 = vrot.lane.b32.xlu1 %v689_v56, %s2263_s23  ;;  %668 = vrot.lane.b32.xlu2 %v663_v57, %s2264_s30  ;;  %v832_v42 = vmul.f32 %v831_v38, %v2580_v52  ;;  %v862_v56 = vstv %s1919_s13  ;;  %v860_v57 = vmul.f32 %v858_v55, %v2582_v53  ;;  %v833_v61 = vmul.f32 %v831_v38, %v2582_v53  ;;  %s2695_s13 = sld [smem:[#allocation6 + $0x2c]] }
 0x297   : > { %666 = vrot.lane.b32.xlu0 %v662_v58, %s2264_s30  ;;  %v814_v51 = vadd.f32 %v812_v46, %v808_v43  ;;  %v813_v54 = vadd.f32 %v811_v47, %v807_v44  ;;  %s1920_s30 = sld [smem:[#allocation6 + $0x9]]  ;;  %v859_v58 = vmul.f32 %v858_v55, %v2580_v52  ;;  %v864_v3 = vmul.f32 %v862_v56, %v2576_v49 }
 0x298   : > { %v838_v50 = vadd.f32 %v836_v45, %v832_v42  ;;  %v863_v7 = vmul.f32 %v862_v56, %v2574_v48  ;;  %v839_v0 = vadd.f32 %v837_v8, %v833_v61 }
 0x299   : > { %v866_v11 = vadd.f32 %v864_v3, %v860_v57 }
 0x29a   : > { %v865_v12 = vadd.f32 %v863_v7, %v859_v58 }
 0x29e   : > { %720 = vrot.lane.b32.xlu1 %v715_v10, %s2265_s10  ;;  %718 = vrot.lane.b32.xlu2 %v714_v14, %s2265_s10  ;;  %s1921_s10 = sld [smem:[#allocation6 + $0x89]]  ;;  %v883_v10 = vstv %s1920_s30  ;;  %v912_v14 = vstv %s2665_s6  ;;  %s2275_s6 = smov 97  }
 0x29f   : > { %695 = vrot.lane.b32.xlu0 %v690_v15, %s2263_s23  ;;  %s2663_s23 = sld [smem:[#allocation6 + $0x10]]  ;;  %v885_v2 = vmul.f32 %v883_v10, %v2582_v53  ;;  %v884_v17 = vmul.f32 %v883_v10, %v2580_v52  ;;  %v913_v5 = vmul.f32 %v912_v14, %v2574_v48  ;;  %v914_v30 = vmul.f32 %v912_v14, %v2576_v49 }
 0x2a0   : > { %s1931_s30 = sld [smem:[#allocation6 + $0xac]] }
 0x2a4   : > { %v887_v15 = vstv %s1921_s10  ;;  %s2276_s10 = smov 113  }
 0x2a5   : > { %v908_v9 = vstv %s2663_s23  ;;  %v889_v18 = vmul.f32 %v887_v15, %v2576_v49  ;;  %v888_v19 = vmul.f32 %v887_v15, %v2574_v48  ;;  %s2274_s23 = smov 1  }
 0x2a6   : > { %768 = vrot.lane.b32.xlu1 %v764_v24, %s2266_s11  ;;  %745 = vrot.lane.b32.xlu2 %v740_v25, %s2267_s20  ;;  %v909_v16 = vmul.f32 %v908_v9, %v2580_v52  ;;  %v937_v24 = vstv %s1925_s7  ;;  %v935_v25 = vmul.f32 %v933_v23, %v2582_v53  ;;  %v910_v27 = vmul.f32 %v908_v9, %v2582_v53  ;;  %s2723_s7 = sld [smem:[#allocation6 + $0x11]] }
 0x2a7   : > { %743 = vrot.lane.b32.xlu0 %v739_v26, %s2267_s20  ;;  %v891_v21 = vadd.f32 %v889_v18, %v885_v2  ;;  %v890_v22 = vadd.f32 %v888_v19, %v884_v17  ;;  %s2683_s20 = sld [smem:[#allocation6 + $0x1e]]  ;;  %v934_v26 = vmul.f32 %v933_v23, %v2580_v52  ;;  %v939_v28 = vmul.f32 %v937_v24, %v2576_v49 }
 0x2a8   : > { %v915_v20 = vadd.f32 %v913_v5, %v909_v16  ;;  %v938_v29 = vmul.f32 %v937_v24, %v2574_v48  ;;  %v916_v33 = vadd.f32 %v914_v30, %v910_v27  ;;  %v1059_v9 = vstv %s2711_s9  ;;  %s2799_s9 = sld [smem:[#allocation6 + $0x4]] }
 0x2a9   : > { %v941_v31 = vadd.f32 %v939_v28, %v935_v25  ;;  %v1060_v17 = vmul.f32 %v1059_v9, %v2574_v48  ;;  %v497_v18 = vlaneseq }
 0x2aa   : > { %v940_v32 = vadd.f32 %v938_v29, %v934_v26 }
 0x2ab   : > { %v2744_v24 = vand.u32 127, %v497_v18 }
 0x2ac   : > { %v1077_v23 = vstv %s2723_s7  ;;  %s2281_s7 = smov 96  }
 0x2ad   : > { %v1079_v28 = vmul.f32 %v1077_v23, %v2582_v53  ;;  %v1078_v29 = vmul.f32 %v1077_v23, %v2580_v52  ;;  %v499_v30 = vadd.s32 128, %v2744_v24 }
 0x2ae   : > { %794 = vrot.lane.b32.xlu1 %v789_v35, %s2268_s8  ;;  %792 = vrot.lane.b32.xlu2 %v788_v36, %s2268_s8  ;;  %s1927_s8 = sld [smem:[#allocation6 + $0x9e]]  ;;  %v957_v35 = vstv %s2683_s20  ;;  %v986_v36 = vstv %s2685_s29 }
 0x2af   : > { %770 = vrot.lane.b32.xlu0 %v765_v37, %s2266_s11  ;;  %s2681_s11 = sld [smem:[#allocation6 + $0x25]]  ;;  %v959_v40 = vmul.f32 %v957_v35, %v2582_v53  ;;  %v958_v41 = vmul.f32 %v957_v35, %v2580_v52  ;;  %v987_v42 = vmul.f32 %v986_v36, %v2574_v48  ;;  %v988_v3 = vmul.f32 %v986_v36, %v2576_v49 }
 0x2b0   : > { %s2726_s20 = sld [smem:[#allocation6 + $0x91]]  ;;  %v1061_v36 = vmul.f32 %v1059_v9, %v2576_v49 }
 0x2b1   : > { %s2741_s29 = sld [smem:[#allocation6 + $0x1f]] }
 0x2b4   : > { %v961_v37 = vstv %s1927_s8  ;;  %s2278_s8 = smov 32  }
 0x2b5   : > { %v982_v34 = vstv %s2681_s11  ;;  %v963_v43 = vmul.f32 %v961_v37, %v2576_v49  ;;  %v962_v44 = vmul.f32 %v961_v37, %v2574_v48  ;;  %s2277_s11 = smov 81  }
 0x2b6   : > { %842 = vrot.lane.b32.xlu1 %v838_v50, %s2269_s25  ;;  %819 = vrot.lane.b32.xlu2 %v814_v51, %s2270_s5  ;;  %v983_v39 = vmul.f32 %v982_v34, %v2580_v52  ;;  %v1007_v50 = vstv %s2695_s13  ;;  %v1011_v51 = vstv %s1931_s30  ;;  %v984_v57 = vmul.f32 %v982_v34, %v2582_v53  ;;  %s2279_s13 = smov 48   ;;  %s2769_s30 = sld [smem:[#allocation6 + $0x2d]] }
 0x2b7   : > { %817 = vrot.lane.b32.xlu0 %v813_v54, %s2270_s5  ;;  %v965_v46 = vadd.f32 %v963_v43, %v959_v40  ;;  %v964_v47 = vadd.f32 %v962_v44, %v958_v41  ;;  %s2709_s5 = sld [smem:[#allocation6 + $0x3]]  ;;  %v1009_v55 = vmul.f32 %v1007_v50, %v2582_v53  ;;  %v1008_v56 = vmul.f32 %v1007_v50, %v2580_v52 }
 0x2b8   : > { %v989_v45 = vadd.f32 %v987_v42, %v983_v39  ;;  %v1013_v58 = vmul.f32 %v1011_v51, %v2576_v49  ;;  %v1012_v61 = vmul.f32 %v1011_v51, %v2574_v48  ;;  %v1081_v25 = vstv %s2726_s20  ;;  %s2831_s20 = sld [smem:[#allocation6 + $0x12]] }
 0x2b9   : > { %v1083_v34 = vmul.f32 %v1081_v25, %v2576_v49  ;;  %v1082_v35 = vmul.f32 %v1081_v25, %v2574_v48  ;;  %v2765_v41 = vand.u32 15, %v499_v30  ;;  %v1112_v44 = vstv %s2741_s29  ;;  %s2881_s29 = sld [smem:[#allocation6 + $0x20]] }
 0x2ba   : > { %v1015_v7 = vadd.f32 %v1013_v58, %v1009_v55  ;;  %v1014_v8 = vadd.f32 %v1012_v61, %v1008_v56  ;;  %v1114_v55 = vmul.f32 %v1112_v44, %v2582_v53  ;;  %v1113_v56 = vmul.f32 %v1112_v44, %v2580_v52 }
 0x2bb   : > { %v1085_v37 = vadd.f32 %v1083_v34, %v1079_v28  ;;  %v1084_v39 = vadd.f32 %v1082_v35, %v1078_v29  ;;  %vm503_vm13 = vcmp.ge.s32.totalorder %v2765_v41, 3  ;;  %v1183_v34 = vstv %s2799_s9  ;;  %s2934_s9 = sld [smem:[#allocation6 + $0xa7]] }
 0x2be   : > { %871 = vrot.lane.b32.xlu1 %v866_v11, %s2271_s12  ;;  %869 = vrot.lane.b32.xlu2 %v865_v12, %s2271_s12  ;;  %s1933_s12 = sld [smem:[#allocation6 + $0x83]]  ;;  %v990_v11 = vadd.f32 %v988_v3, %v984_v57 }
 0x2bf   : > { %844 = vrot.lane.b32.xlu0 %v839_v0, %s2269_s25  ;;  %s2706_s25 = sld [smem:[#allocation6 + $0xa]]  ;;  %v1032_v0 = vstv %s2709_s5 }
 0x2c0   : > { %v1034_v16 = vmul.f32 %v1032_v0, %v2582_v53  ;;  %v1033_v2 = vmul.f32 %v1032_v0, %v2580_v52  ;;  %s2776_s5 = sld [smem:[#allocation6 + $0xad]] }
 0x2c4   : > { %v1036_v10 = vstv %s1933_s12  ;;  %s2804_s12 = sld [smem:[#allocation6 + $0x84]] }
 0x2c5   : > { %v1055_v12 = vstv %s2706_s25  ;;  %v1038_v5 = vmul.f32 %v1036_v10, %v2576_v49  ;;  %v1037_v19 = vmul.f32 %v1036_v10, %v2574_v48  ;;  %s2280_s25 = smov 16  }
 0x2c6   : > { %919 = vrot.lane.b32.xlu1 %v915_v20, %s2272_s22  ;;  %896 = vrot.lane.b32.xlu2 %v891_v21, %s2273_s26  ;;  %v1056_v15 = vmul.f32 %v1055_v12, %v2580_v52 }
 0x2c7   : > { %894 = vrot.lane.b32.xlu0 %v890_v22, %s2273_s26  ;;  %v1040_v21 = vadd.f32 %v1038_v5, %v1034_v16  ;;  %s2738_s26 = sld [smem:[#allocation6 + $0xa6]]  ;;  %v1039_v22 = vadd.f32 %v1037_v19, %v1033_v2  ;;  %v1158_v16 = vstv %s2769_s30  ;;  %v1162_v2 = vstv %s2776_s5 }
 0x2c8   : > { %v1062_v20 = vadd.f32 %v1060_v17, %v1056_v15  ;;  %v1160_v18 = vmul.f32 %v1158_v16, %v2582_v53  ;;  %v1159_v19 = vmul.f32 %v1158_v16, %v2580_v52  ;;  %v1164_v25 = vmul.f32 %v1162_v2, %v2576_v49  ;;  %s2891_s30 = sld [smem:[#allocation6 + $0xa0]] }
 0x2c9   : > { %s2895_s5 = sld [smem:[#allocation6 + $0x99]] }
 0x2ca   : > { %v1187_v35 = vstv %s2804_s12  ;;  %s2286_s12 = smov 15  }
 0x2cd   : > { %v1139_v43 = vstv %s2738_s26  ;;  %s2283_s26 = smov 80  }
 0x2ce   : > { %946 = vrot.lane.b32.xlu1 %v941_v31, %s2274_s23  ;;  %944 = vrot.lane.b32.xlu2 %v940_v32, %s2274_s23  ;;  %s2747_s23 = sld [smem:[#allocation6 + $0x9f]]  ;;  %v1057_v32 = vmul.f32 %v1055_v12, %v2582_v53  ;;  %v1140_v51 = vmul.f32 %v1139_v43, %v2574_v48  ;;  %v1141_v28 = vmul.f32 %v1139_v43, %v2576_v49 }
 0x2cf   : > { %921 = vrot.lane.b32.xlu0 %v916_v33, %s2272_s22  ;;  %s2735_s22 = sld [smem:[#allocation6 + $0x26]] }
 0x2d0   : > { %v2698_v38 = vpop.permute.xlu2 %541  ;;  %v1063_v42 = vadd.f32 %v1061_v36, %v1057_v32 }
 0x2d5   : > { %v1135_v40 = vstv %s2735_s22  ;;  %s2838_s22 = sld [smem:[#allocation6 + $0x92]] }
 0x2d6   : > { %993 = vrot.lane.b32.xlu1 %v989_v45, %s2275_s6  ;;  %970 = vrot.lane.b32.xlu2 %v965_v46, %s2276_s10  ;;  %v1136_v45 = vmul.f32 %v1135_v40, %v2580_v52  ;;  %v1116_v46 = vstv %s2747_s23  ;;  %s2285_s23 = smov 47  }
 0x2d7   : > { %968 = vrot.lane.b32.xlu0 %v964_v47, %s2276_s10  ;;  %s2790_s10 = sld [smem:[#allocation6 + $0x8b]]  ;;  %v1117_v0 = vmul.f32 %v1116_v46, %v2574_v48 }
 0x2d8   : > { %v2713_v54 = vpop.permute.xlu2 %566  ;;  %v1142_v9 = vadd.f32 %v1140_v51, %v1136_v45 }
 0x2d9   : > { %v1119_v15 = vadd.f32 %v1117_v0, %v1113_v56 }
 0x2dd   : > { %v1212_v30 = vstv %s2790_s10  ;;  %s2966_s10 = sld [smem:[#allocation6 + $0x5]] }
 0x2de   : > { %1020 = vrot.lane.b32.xlu1 %v1015_v7, %s2277_s11  ;;  %1018 = vrot.lane.b32.xlu2 %v1014_v8, %s2277_s11  ;;  %s2282_s11 = smov 112  }
 0x2df   : > { %995 = vrot.lane.b32.xlu0 %v990_v11, %s2275_s6  ;;  %s2783_s6 = sld [smem:[#allocation6 + $0xb]]  ;;  %v1118_v11 = vmul.f32 %v1116_v46, %v2576_v49 }
 0x2e0   : > { %v2728_v14 = vpop.permute.xlu2 %593 }
 0x2e1   : > { %v1120_v10 = vadd.f32 %v1118_v11, %v1114_v55 }
 0x2e5   : > { %v1208_v29 = vstv %s2783_s6  ;;  %s2931_s6 = sld [smem:[#allocation6 + $0x27]] }
 0x2e6   : > { %1066 = vrot.lane.b32.xlu1 %v1062_v20, %s2278_s8  ;;  %1045 = vrot.lane.b32.xlu2 %v1040_v21, %s2279_s13  ;;  %v2814_v20 = vand.u32 15, %v2744_v24  ;;  %v1166_v24 = vadd.f32 %v1164_v25, %v1160_v18  ;;  %v1237_v18 = vstv %s2838_s22  ;;  %v574_v25 = vsel %vm570_vm11, 0.0, %v2713_v54  ;;  %s2974_s22 = sld [smem:[#allocation6 + $0x85]] }
 0x2e7   : > { %1043 = vrot.lane.b32.xlu0 %v1039_v22, %s2279_s13  ;;  %v1137_v22 = vmul.f32 %v1135_v40, %v2582_v53  ;;  %v1213_v40 = vmul.f32 %v1212_v30, %v2574_v48  ;;  %s2284_s13 = smov 31  }
 0x2e8   : > { %v519_v26 = vpop.permute.xlu1 %518  ;;  %v2749_v27 = vpop.permute.xlu2 %641  ;;  %vm502_vm15 = vcmp.ge.s32.totalorder %v2814_v20, 3  ;;  %vm679_vm6 = vcmp.ge.s32.totalorder %v2814_v20, 2 }
 0x2e9   : > { %v2754_v31 = vpop.permute.xlu0 %516 }
 0x2ea   : > { %v2759_v33 = vsel %vm520_vm9, %v2754_v31, %v519_v26  ;;  %v1163_v26 = vmul.f32 %v1162_v2, %v2574_v48  ;;  %v524_v36 = vsel %vm520_vm9, 0.0, %v2754_v31  ;;  %v1189_v31 = vmul.f32 %v1187_v35, %v2576_v49 }
 0x2eb   : > { %v525_v44 = vsel %vm502_vm15, %v524_v36, 0.0  ;;  %v526_v51 = vsel %vm503_vm13, %v2759_v33, 0.0  ;;  %v1238_v36 = vmul.f32 %v1237_v18, %v2574_v48  ;;  %vm680_vm9 = vcmp.ge.s32.totalorder %v2765_v41, 2 }
 0x2ec   : > { %v1165_v32 = vadd.f32 %v1163_v26, %v1159_v19 }
 0x2ee   : > { %1090 = vrot.lane.b32.xlu1 %v1085_v37, %s2280_s25  ;;  %1088 = vrot.lane.b32.xlu2 %v1084_v39, %s2280_s25  ;;  %v1143_v37 = vadd.f32 %v1141_v28, %v1137_v22  ;;  %v1209_v39 = vmul.f32 %v1208_v29, %v2580_v52 }
 0x2ef   : > { %1068 = vrot.lane.b32.xlu0 %v1063_v42, %s2278_s8  ;;  %v1184_v42 = vmul.f32 %v1183_v34, %v2580_v52  ;;  %s2885_s8 = sld [smem:[#allocation6 + $0x19]] }
 0x2f0   : > { %v569_v47 = vpop.permute.xlu1 %568  ;;  %v2778_v50 = vpop.permute.xlu2 %668 }
 0x2f1   : > { %v571_v57 = vsel %vm570_vm11, %v2713_v54, %v569_v47  ;;  %v674_v58 = vsel %vm670_vm10, %v2778_v50, 0.0  ;;  %v544_v61 = vpop.permute.xlu0 %543  ;;  %v1188_v47 = vmul.f32 %v1187_v35, %v2574_v48  ;;  %v1210_v54 = vmul.f32 %v1208_v29, %v2582_v53 }
 0x2f2   : > { %v576_v3 = vsel %vm503_vm13, %v571_v57, 0.0  ;;  %v676_v7 = vsel %vm503_vm13, %v674_v58, 0.0  ;;  %v546_v8 = vsel %vm545_vm12, %v2698_v38, %v544_v61  ;;  %vm747_vm11 = vcmask 146432  }
 0x2f3   : > { %v2801_v12 = vadd.f32 %v676_v7, %v576_v3  ;;  %v551_v55 = vsel %vm503_vm13, %v546_v8, 0.0  ;;  %v1190_v2 = vadd.f32 %v1188_v47, %v1184_v42 }
 0x2f6   : > { %1146 = vrot.lane.b32.xlu1 %v1142_v9, %s2281_s7  ;;  %1125 = vrot.lane.b32.xlu2 %v1120_v10, %s2282_s11 }
 0x2f7   : > { %1123 = vrot.lane.b32.xlu0 %v1119_v15, %s2282_s11  ;;  %v1215_v15 = vadd.f32 %v1213_v40, %v1209_v39  ;;  %s2287_s11 = smov 111  }
 0x2f8   : > { %v617_v17 = vpop.permute.xlu1 %616  ;;  %v2809_v5 = vpop.permute.xlu2 %718 }
 0x2f9   : > { %v2816_v21 = vpop.permute.xlu0 %591  ;;  %v726_v19 = vsel %vm722_vm5, 0.0, %v2809_v5 }
 0x2fa   : > { %v2822_v23 = vsel %vm595_vm14, %v2816_v21, %v2728_v14  ;;  %v549_v14 = vsel %vm545_vm12, 0.0, %v2698_v38  ;;  %v1185_v38 = vmul.f32 %v1183_v34, %v2582_v53  ;;  %v599_v22 = vsel %vm595_vm14, 0.0, %v2816_v21 }
 0x2fb   : > { %v550_v43 = vsel %vm502_vm15, %v549_v14, 0.0  ;;  %v727_v35 = vsel %vm679_vm6, %v726_v19, 0.0  ;;  %vm855_vm12 = vcmp.ge.s32.totalorder %v2814_v20, 1  ;;  %vm856_vm14 = vcmp.ge.s32.totalorder %v2765_v41, 1 }
 0x2fc   : > { %v1191_v16 = vadd.f32 %v1189_v31, %v1185_v38  ;;  %v575_v31 = vsel %vm502_vm15, %v574_v25, 0.0 }
 0x2fe   : > { %1171 = vrot.lane.b32.xlu1 %v1166_v24, %s2283_s26  ;;  %1169 = vrot.lane.b32.xlu2 %v1165_v32, %s2283_s26  ;;  %v1239_v32 = vmul.f32 %v1237_v18, %v2576_v49  ;;  %s2977_s26 = sld [smem:[#allocation6 + $0xae]] }
 0x2ff   : > { %1148 = vrot.lane.b32.xlu0 %v1143_v37, %s2281_s7  ;;  %v600_v37 = vsel %vm502_vm15, %v599_v22, 0.0  ;;  %s2971_s7 = sld [smem:[#allocation6 + $0x2e]] }
 0x300   : > { %v644_v45 = vpop.permute.xlu1 %643  ;;  %v2854_v46 = vpop.permute.xlu2 %745 }
 0x301   : > { %v646_v56 = vsel %vm645_vm0, %v2749_v27, %v644_v45  ;;  %v649_v57 = vsel %vm645_vm0, %v644_v45, 0.0  ;;  %v619_v58 = vpop.permute.xlu0 %618  ;;  %vm923_vm0 = vcmask 138240  }
 0x302   : > { %v650_v61 = vsel %vm502_vm15, %v646_v56, 0.0  ;;  %v651_v3 = vsel %vm503_vm13, %v649_v57, 0.0  ;;  %v621_v7 = vsel %vm620_vm3, %v617_v17, %v619_v58  ;;  %v624_v33 = vsel %vm620_vm3, %v619_v58, 0.0 }
 0x303   : > { %v2871_v11 = vadd.f32 %v650_v61, %v550_v43  ;;  %v2873_v8 = vadd.f32 %v651_v3, %v551_v55  ;;  %v625_v27 = vsel %vm502_vm15, %v621_v7, 0.0  ;;  %v626_v0 = vsel %vm503_vm13, %v624_v33, 0.0 }
 0x304   : > { %v627_v9 = vadd.f32 %v625_v27, %v525_v44  ;;  %v2879_v10 = vadd.f32 %v626_v0, %v526_v51  ;;  %v1233_v17 = vstv %s2831_s20  ;;  %v1214_v43 = vmul.f32 %v1212_v30, %v2576_v49  ;;  %s2288_s20 = smov 127  }
 0x305   : > { %v1235_v24 = vmul.f32 %v1233_v17, %v2582_v53  ;;  %v1234_v34 = vmul.f32 %v1233_v17, %v2580_v52  ;;  %v1258_v55 = vstv %s2885_s8  ;;  %v1287_v56 = vstv %s2891_s30  ;;  %s2289_s8 = smov 95   ;;  %s3042_s30 = sld [smem:[#allocation6 + $0x9a]] }
 0x306   : > { %1219 = vrot.lane.b32.xlu1 %v1215_v15, %s2284_s13  ;;  %1196 = vrot.lane.b32.xlu2 %v1191_v16, %s2285_s23  ;;  %v2917_v38 = vadd.f32 %v727_v35, %v627_v9  ;;  %v1216_v51 = vadd.f32 %v1214_v43, %v1210_v54  ;;  %v1262_v57 = vstv %s2895_s5  ;;  %v1260_v3 = vmul.f32 %v1258_v55, %v2582_v53  ;;  %s3045_s5 = sld [smem:[#allocation6 + $0x13]] }
 0x307   : > { %1194 = vrot.lane.b32.xlu0 %v1190_v2, %s2285_s23  ;;  %v1241_v45 = vadd.f32 %v1239_v32, %v1235_v24  ;;  %v1240_v47 = vadd.f32 %v1238_v36, %v1234_v34  ;;  %v1288_v0 = vmul.f32 %v1287_v56, %v2574_v48  ;;  %v1259_v9 = vmul.f32 %v1258_v55, %v2580_v52  ;;  %s3030_s23 = sld [smem:[#allocation6 + $0x1a]] }
 0x308   : > { %v694_v26 = vpop.permute.xlu1 %693  ;;  %v2899_v28 = vpop.permute.xlu2 %792  ;;  %v1264_v2 = vmul.f32 %v1262_v57, %v2576_v49  ;;  %v1263_v17 = vmul.f32 %v1262_v57, %v2574_v48  ;;  %v1308_v32 = vstv %s2931_s6  ;;  %s2290_s6 = smov 46   ;;  %vm898_vm3 = vcmask 269312  }
 0x309   : > { %v701_v21 = vsel %vm697_vm7, 0.0, %v694_v26  ;;  %v667_v14 = vpop.permute.xlu0 %666  ;;  %v1309_v54 = vmul.f32 %v1308_v32, %v2580_v52 }
 0x30a   : > { %v702_v39 = vsel %vm679_vm6, %v701_v21, 0.0  ;;  %v671_v40 = vsel %vm670_vm10, %v667_v14, %v2778_v50  ;;  %v1283_v50 = vstv %s2881_s29  ;;  %v1265_v35 = vadd.f32 %v1263_v17, %v1259_v9  ;;  %s3010_s29 = sld [smem:[#allocation6 + $0xc]] }
 0x30b   : > { %v2921_v42 = vadd.f32 %v702_v39, %v600_v37  ;;  %v675_v29 = vsel %vm502_vm15, %v671_v40, 0.0  ;;  %v1284_v30 = vmul.f32 %v1283_v50, %v2580_v52  ;;  %v1312_v21 = vstv %s2934_s9  ;;  %s2291_s9 = smov 79  }
 0x30c   : > { %v2928_v44 = vadd.f32 %v675_v29, %v575_v31  ;;  %vm873_vm10 = vcmask 400384   ;;  %v1314_v36 = vmul.f32 %v1312_v21, %v2576_v49  ;;  %v1285_v37 = vmul.f32 %v1283_v50, %v2582_v53 }
 0x30d   : > { %v1290_v22 = vadd.f32 %v1288_v0, %v1284_v30  ;;  %v1313_v29 = vmul.f32 %v1312_v21, %v2574_v48  ;;  %v1289_v50 = vmul.f32 %v1287_v56, %v2576_v49  ;;  %v1364_v0 = vstv %s2974_s22  ;;  %s3110_s22 = sld [smem:[#allocation6 + $0x28]] }
 0x30e   : > { %1246 = vrot.lane.b32.xlu1 %v1241_v45, %s2286_s12  ;;  %1244 = vrot.lane.b32.xlu2 %v1240_v47, %s2286_s12  ;;  %s3048_s12 = sld [smem:[#allocation6 + $0x93]]  ;;  %vm846_vm15 = vcmask 670720  }
 0x30f   : > { %1221 = vrot.lane.b32.xlu0 %v1216_v51, %s2284_s13  ;;  %v1315_v56 = vadd.f32 %v1313_v29, %v1309_v54  ;;  %s3015_s13 = sld [smem:[#allocation6 + $0x8c]] }
 0x310   : > { %v721_v58 = vpop.permute.xlu1 %720  ;;  %v2941_v61 = vpop.permute.xlu2 %819 }
 0x311   : > { %v723_v7 = vsel %vm722_vm5, %v2809_v5, %v721_v58  ;;  %v825_v33 = vsel %vm821_vm8, %v2941_v61, 0.0  ;;  %v696_v27 = vpop.permute.xlu0 %695  ;;  %v601_v5 = vsel %vm503_vm13, %v2822_v23, 0.0  ;;  %v1310_v23 = vmul.f32 %v1308_v32, %v2582_v53 }
 0x312   : > { %v728_v15 = vsel %vm680_vm9, %v723_v7, 0.0  ;;  %v698_v16 = vsel %vm697_vm7, %v694_v26, %v696_v27  ;;  %v827_v25 = vsel %vm680_vm9, %v825_v33, 0.0  ;;  %v1266_v26 = vadd.f32 %v1264_v2, %v1260_v3 }
 0x313   : > { %v730_v18 = vadd.f32 %v728_v15, %v2879_v10  ;;  %v703_v19 = vsel %vm680_vm9, %v698_v16, 0.0  ;;  %v1316_v57 = vadd.f32 %v1314_v36, %v1310_v23  ;;  %v1291_v7 = vadd.f32 %v1289_v50, %v1285_v37 }
 0x314   : > { %v2963_v24 = vadd.f32 %v703_v19, %v601_v5  ;;  %v1360_v33 = vstv %s2966_s10  ;;  %v1333_v27 = vstv %s2971_s7  ;;  %vm796_vm13 = vcmask 932864   ;;  %s3067_s10 = sld [smem:[#allocation6 + $0x21]] }
 0x315   : > { %v2968_v34 = vadd.f32 %v827_v25, %v730_v18  ;;  %v1361_v15 = vmul.f32 %v1360_v33, %v2580_v52  ;;  %v1335_v16 = vmul.f32 %v1333_v27, %v2582_v53  ;;  %v1365_v18 = vmul.f32 %v1364_v0, %v2574_v48  ;;  %s3071_s7 = sld [smem:[#allocation6 + $0xa1]] }
 0x316   : > { %1294 = vrot.lane.b32.xlu1 %v1290_v22, %s2287_s11  ;;  %1271 = vrot.lane.b32.xlu2 %v1266_v26, %s2288_s20  ;;  %v1334_v19 = vmul.f32 %v1333_v27, %v2580_v52  ;;  %vm997_vm5 = vcmask 793600   ;;  %vm1047_vm7 = vcmask 392192  }
 0x317   : > { %1269 = vrot.lane.b32.xlu0 %v1265_v35, %s2288_s20  ;;  %v1367_v54 = vadd.f32 %v1365_v18, %v1361_v15  ;;  %s3104_s20 = sld [smem:[#allocation6 + $0x2f]] }
 0x318   : > { %v769_v10 = vpop.permute.xlu1 %768  ;;  %v2979_v14 = vpop.permute.xlu2 %869 }
 0x319   : > { %v775_v39 = vsel %vm310_vm4, 0.0, %v769_v10  ;;  %v877_v40 = vsel %vm873_vm10, 0.0, %v2979_v14  ;;  %v744_v31 = vpop.permute.xlu0 %743 }
 0x31a   : > { %v776_v43 = vsel %vm679_vm6, %v775_v39, 0.0  ;;  %v748_v45 = vsel %vm747_vm11, %v744_v31, %v2854_v46  ;;  %v751_v47 = vsel %vm747_vm11, 0.0, %v744_v31  ;;  %v878_v58 = vsel %vm855_vm12, %v877_v40, 0.0 }
 0x31b   : > { %v778_v51 = vadd.f32 %v776_v43, %v2928_v44  ;;  %v752_v55 = vsel %vm679_vm6, %v751_v47, 0.0  ;;  %v753_v30 = vsel %vm680_vm9, %v748_v45, 0.0  ;;  %v1385_v39 = vstv %s3010_s29  ;;  %s2294_s29 = smov 14  }
 0x31c   : > { %v3001_v3 = vadd.f32 %v752_v55, %v2871_v11  ;;  %v3004_v46 = vadd.f32 %v753_v30, %v2873_v8  ;;  %v1337_v11 = vstv %s2977_s26  ;;  %v1387_v40 = vmul.f32 %v1385_v39, %v2582_v53  ;;  %s2293_s26 = smov 126  }
 0x31d   : > { %v3006_v44 = vadd.f32 %v878_v58, %v778_v51  ;;  %v1339_v32 = vmul.f32 %v1337_v11, %v2576_v49  ;;  %v1338_v23 = vmul.f32 %v1337_v11, %v2574_v48  ;;  %v1386_v31 = vmul.f32 %v1385_v39, %v2580_v52 }
 0x31e   : > { %1321 = vrot.lane.b32.xlu1 %v1316_v57, %s2289_s8  ;;  %1319 = vrot.lane.b32.xlu2 %v1315_v56, %s2289_s8  ;;  %v1362_v43 = vmul.f32 %v1360_v33, %v2582_v53  ;;  %v1366_v55 = vmul.f32 %v1364_v0, %v2576_v49  ;;  %v1435_v30 = vstv %s3030_s23  ;;  %v1410_v33 = vstv %s3045_s5  ;;  %s3115_s8 = sld [smem:[#allocation6 + $0xaf]]  ;;  %s2295_s5 = smov 110  }
 0x31f   : > { %1296 = vrot.lane.b32.xlu0 %v1291_v7, %s2287_s11  ;;  %v1340_v37 = vadd.f32 %v1338_v23, %v1334_v19  ;;  %v1439_v7 = vstv %s3042_s30  ;;  %s2292_s11 = smov 30   ;;  %v1436_v27 = vmul.f32 %v1435_v30, %v2580_v52  ;;  %v1414_v0 = vstv %s3048_s12  ;;  %s3154_s23 = sld [smem:[#allocation6 + $0x6]] }
 0x320   : > { %v795_v8 = vpop.permute.xlu1 %794  ;;  %v3017_v9 = vpop.permute.xlu2 %896  ;;  %v1412_v15 = vmul.f32 %v1410_v33, %v2582_v53  ;;  %v1411_v18 = vmul.f32 %v1410_v33, %v2580_v52  ;;  %v1415_v23 = vmul.f32 %v1414_v0, %v2574_v48  ;;  %s3159_s30 = sld [smem:[#allocation6 + $0x86]]  ;;  %vm1181_vm11 = vcmp.lt.s32.totalorder %v2765_v41, 15 }
 0x321   : > { %v797_v2 = vsel %vm796_vm13, %v2899_v28, %v795_v8  ;;  %v800_v17 = vsel %vm796_vm13, %v795_v8, 0.0  ;;  %v771_v5 = vpop.permute.xlu0 %770  ;;  %v1440_v8 = vmul.f32 %v1439_v7, %v2574_v48  ;;  %s3184_s12 = sld [smem:[#allocation6 + $0xd]]  ;;  %vm1180_vm13 = vcmp.lt.s32.totalorder %v2814_v20, 15 }
 0x322   : > { %v801_v22 = vsel %vm679_vm6, %v797_v2, 0.0  ;;  %v802_v25 = vsel %vm680_vm9, %v800_v17, 0.0  ;;  %v772_v26 = vsel %vm310_vm4, %v769_v10, %v771_v5  ;;  %v1341_v10 = vadd.f32 %v1339_v32, %v1335_v16 }
 0x323   : > { %v3033_v28 = vadd.f32 %v801_v22, %v2921_v42  ;;  %v3036_v35 = vadd.f32 %v802_v25, %v2963_v24  ;;  %v777_v21 = vsel %vm680_vm9, %v772_v26, 0.0  ;;  %v1389_v42 = vstv %s3015_s13  ;;  %s3117_s13 = sld [smem:[#allocation6 + $0xa8]] }
 0x324   : > { %v779_v36 = vadd.f32 %v777_v21, %v2801_v12  ;;  %v1391_v47 = vmul.f32 %v1389_v42, %v2576_v49  ;;  %v1390_v50 = vmul.f32 %v1389_v42, %v2574_v48  ;;  %vm972_vm4 = vcmask 924672  }
 0x325   : > { %v1416_v5 = vmul.f32 %v1414_v0, %v2576_v49  ;;  %v1442_v26 = vadd.f32 %v1440_v8, %v1436_v27  ;;  %v1417_v42 = vadd.f32 %v1415_v23, %v1411_v18  ;;  %v1514_v18 = vstv %s3115_s8  ;;  %s3248_s8 = sld [smem:[#allocation6 + $0x22]] }
 0x326   : > { %1371 = vrot.lane.b32.xlu1 %v1367_v54, %s2290_s6  ;;  %1346 = vrot.lane.b32.xlu2 %v1341_v10, %s2291_s9  ;;  %v1393_v58 = vadd.f32 %v1391_v47, %v1387_v40  ;;  %v1392_v56 = vadd.f32 %v1390_v50, %v1386_v31  ;;  %v1464_v40 = vstv %s3071_s7  ;;  %v1515_v23 = vmul.f32 %v1514_v18, %v2574_v48  ;;  %s2296_s7 = smov 78  }
 0x327   : > { %1344 = vrot.lane.b32.xlu0 %v1340_v37, %s2291_s9  ;;  %v1418_v39 = vadd.f32 %v1416_v5, %v1412_v15  ;;  %v1485_v5 = vstv %s3110_s22  ;;  %s3175_s9 = sld [smem:[#allocation6 + $0x94]]  ;;  %s2298_s22 = smov 45  }
 0x328   : > { %v843_v24 = vpop.permute.xlu1 %842  ;;  %v3051_v12 = vpop.permute.xlu2 %944 }
 0x329   : > { %v818_v29 = vpop.permute.xlu0 %817  ;;  %v951_v31 = vsel %vm275_vm1, 0.0, %v3051_v12 }
 0x32a   : > { %v822_v45 = vsel %vm821_vm8, %v818_v29, %v2941_v61  ;;  %v1368_v61 = vadd.f32 %v1366_v55, %v1362_v43  ;;  %v1466_v43 = vmul.f32 %v1464_v40, %v2576_v49  ;;  %v952_v47 = vsel %vm855_vm12, %v951_v31, 0.0 }
 0x32b   : > { %v826_v51 = vsel %vm679_vm6, %v822_v45, 0.0  ;;  %v1465_v55 = vmul.f32 %v1464_v40, %v2574_v48  ;;  %vm1127_vm8 = vcmask 916480  }
 0x32c   : > { %v3065_v57 = vadd.f32 %v826_v51, %v2917_v38 }
 0x32e   : > { %1398 = vrot.lane.b32.xlu1 %v1393_v58, %s2292_s11  ;;  %1396 = vrot.lane.b32.xlu2 %v1392_v56, %s2292_s11  ;;  %v1437_v58 = vmul.f32 %v1435_v30, %v2582_v53  ;;  %v1441_v30 = vmul.f32 %v1439_v7, %v2576_v49  ;;  %v1489_v7 = vstv %s3117_s13  ;;  %s2297_s11 = smov 94   ;;  %s2299_s13 = smov 13  }
 0x32f   : > { %1373 = vrot.lane.b32.xlu0 %v1368_v61, %s2290_s6  ;;  %s3168_s6 = sld [smem:[#allocation6 + $0x14]] }
 0x330   : > { %v872_v38 = vpop.permute.xlu1 %871  ;;  %v3079_v11 = vpop.permute.xlu2 %970 }
 0x331   : > { %v874_v16 = vsel %vm873_vm10, %v2979_v14, %v872_v38  ;;  %v976_v2 = vsel %vm972_vm4, %v3079_v11, 0.0  ;;  %v845_v17 = vpop.permute.xlu0 %844  ;;  %vm1273_vm10 = vcmask 1039360  }
 0x332   : > { %v879_v19 = vsel %vm856_vm14, %v874_v16, 0.0  ;;  %v847_v22 = vsel %vm846_vm15, %v843_v24, %v845_v17  ;;  %v850_v25 = vsel %vm846_vm15, %v845_v17, 0.0  ;;  %v978_v54 = vsel %vm856_vm14, %v976_v2, 0.0 }
 0x333   : > { %v881_v32 = vadd.f32 %v879_v19, %v779_v36  ;;  %v851_v14 = vsel %vm679_vm6, %v847_v22, 0.0  ;;  %v852_v21 = vsel %vm680_vm9, %v850_v25, 0.0  ;;  %v1460_v24 = vstv %s3067_s10  ;;  %s3187_s10 = sld [smem:[#allocation6 + $0x8d]] }
 0x334   : > { %v853_v10 = vadd.f32 %v851_v14, %v3001_v3  ;;  %v3102_v37 = vadd.f32 %v852_v21, %v3004_v46  ;;  %v1462_v29 = vmul.f32 %v1460_v24, %v2582_v53  ;;  %v1461_v45 = vmul.f32 %v1460_v24, %v2580_v52 }
 0x335   : > { %v3106_v36 = vadd.f32 %v978_v54, %v881_v32  ;;  %v1443_v2 = vadd.f32 %v1441_v30, %v1437_v58  ;;  %v1510_v17 = vstv %s3104_s20  ;;  %v1487_v22 = vmul.f32 %v1485_v5, %v2582_v53  ;;  %s3210_s20 = sld [smem:[#allocation6 + $0x1b]] }
 0x336   : > { %1446 = vrot.lane.b32.xlu1 %v1442_v26, %s2293_s26  ;;  %1423 = vrot.lane.b32.xlu2 %v1418_v39, %s2294_s29  ;;  %v3134_v27 = vadd.f32 %v952_v47, %v853_v10  ;;  %v1468_v16 = vadd.f32 %v1466_v43, %v1462_v29  ;;  %v1486_v32 = vmul.f32 %v1485_v5, %v2580_v52  ;;  %v1587_v30 = vstv %s3168_s6  ;;  %s3281_s6 = sld [smem:[#allocation6 + $0x30]] }
 0x337   : > { %1421 = vrot.lane.b32.xlu0 %v1417_v42, %s2294_s29  ;;  %v1491_v54 = vmul.f32 %v1489_v7, %v2576_v49  ;;  %v1490_v39 = vmul.f32 %v1489_v7, %v2574_v48  ;;  %vm1092_vm6 = vcmask 130048   ;;  %s3243_s29 = sld [smem:[#allocation6 + $0x29]]  ;;  %vm1173_vm9 = vcmask 654336  }
 0x338   : > { %v920_v3 = vpop.permute.xlu1 %919  ;;  %v3119_v46 = vpop.permute.xlu2 %1018  ;;  %vm1348_vm15 = vcmask 646144  }
 0x339   : > { %v927_v50 = vsel %vm923_vm0, 0.0, %v920_v3  ;;  %v895_v51 = vpop.permute.xlu0 %894  ;;  %v1493_v40 = vadd.f32 %v1491_v54, %v1487_v22  ;;  %v1492_v31 = vadd.f32 %v1490_v39, %v1486_v32 }
 0x33a   : > { %v928_v56 = vsel %vm855_vm12, %v927_v50, 0.0  ;;  %v899_v61 = vsel %vm898_vm3, %v895_v51, %v3017_v9  ;;  %v902_v33 = vsel %vm898_vm3, 0.0, %v895_v51  ;;  %v1512_v50 = vmul.f32 %v1510_v17, %v2582_v53 }
 0x33b   : > { %v3137_v0 = vadd.f32 %v928_v56, %v3065_v57  ;;  %v903_v38 = vsel %vm855_vm12, %v902_v33, 0.0  ;;  %v904_v8 = vsel %vm856_vm14, %v899_v61, 0.0  ;;  %v1467_v57 = vadd.f32 %v1465_v55, %v1461_v45 }
 0x33c   : > { %v3147_v15 = vadd.f32 %v903_v38, %v3033_v28  ;;  %v3150_v9 = vadd.f32 %v904_v8, %v3036_v35  ;;  %v1511_v35 = vmul.f32 %v1510_v17, %v2580_v52  ;;  %v1516_v61 = vmul.f32 %v1514_v18, %v2576_v49 }
 0x33d   : > { %vm1298_vm3 = vcmask 908288  }
 0x33e   : > { %1473 = vrot.lane.b32.xlu1 %v1468_v16, %s2295_s5  ;;  %1471 = vrot.lane.b32.xlu2 %v1467_v57, %s2295_s5  ;;  %v1517_v24 = vadd.f32 %v1515_v23, %v1511_v35  ;;  %v1518_v16 = vadd.f32 %v1516_v61, %v1512_v50  ;;  %v1591_v57 = vstv %s3175_s9  ;;  %s3252_s5 = sld [smem:[#allocation6 + $0xa9]] }
 0x33f   : > { %1448 = vrot.lane.b32.xlu0 %v1443_v2, %s2293_s26  ;;  %v1562_v2 = vstv %s3184_s12  ;;  %s3212_s26 = sld [smem:[#allocation6 + $0x9b]]  ;;  %v1592_v18 = vmul.f32 %v1591_v57, %v2574_v48  ;;  %s2301_s12 = smov 125  }
 0x340   : > { %v947_v28 = vpop.permute.xlu1 %946  ;;  %v3161_v19 = vpop.permute.xlu2 %1045  ;;  %v1564_v7 = vmul.f32 %v1562_v2, %v2582_v53  ;;  %v1563_v35 = vmul.f32 %v1562_v2, %v2580_v52  ;;  %s3286_s9 = sld [smem:[#allocation6 + $0xb0]] }
 0x341   : > { %v948_v25 = vsel %vm275_vm1, %v3051_v12, %v947_v28  ;;  %v922_v26 = vpop.permute.xlu0 %921  ;;  %vm1022_vm1 = vcmask 662528  }
 0x342   : > { %v953_v14 = vsel %vm856_vm14, %v948_v25, 0.0  ;;  %v924_v21 = vsel %vm923_vm0, %v920_v3, %v922_v26  ;;  %v1537_v3 = vstv %s3154_s23  ;;  %s2300_s23 = smov 29   ;;  %vm1323_vm0 = vcmask 777216  }
 0x343   : > { %v3178_v12 = vadd.f32 %v953_v14, %v3102_v37  ;;  %v929_v10 = vsel %vm856_vm14, %v924_v21, 0.0  ;;  %v1541_v37 = vstv %s3159_s30  ;;  %v1538_v45 = vmul.f32 %v1537_v3, %v2580_v52  ;;  %s3256_s30 = sld [smem:[#allocation6 + $0xa2]] }
 0x344   : > { %v931_v42 = vadd.f32 %v929_v10, %v2968_v34  ;;  %v1539_v34 = vmul.f32 %v1537_v3, %v2582_v53  ;;  %v1543_v55 = vmul.f32 %v1541_v37, %v2576_v49  ;;  %v1542_v58 = vmul.f32 %v1541_v37, %v2574_v48 }
 0x346   : > { %1521 = vrot.lane.b32.xlu1 %v1517_v24, %s2296_s7  ;;  %1498 = vrot.lane.b32.xlu2 %v1493_v40, %s2297_s11  ;;  %v1545_v38 = vadd.f32 %v1543_v55, %v1539_v34  ;;  %v1544_v8 = vadd.f32 %v1542_v58, %v1538_v45  ;;  %v1616_v34 = vstv %s3212_s26  ;;  %s1994_s26 = sshll.u32 %s2352_s19, 6 }
 0x347   : > { %1496 = vrot.lane.b32.xlu0 %v1492_v31, %s2297_s11  ;;  %v1618_v58 = vmul.f32 %v1616_v34, %v2576_v49  ;;  %s3302_s11 = sld [smem:[#allocation6 + $0x18]] }
 0x348   : > { %v994_v29 = vpop.permute.xlu1 %993  ;;  %v3191_v43 = vpop.permute.xlu2 %1088 }
 0x349   : > { %v969_v47 = vpop.permute.xlu0 %968 }
 0x34a   : > { %v973_v51 = vsel %vm972_vm4, %v969_v47, %v3079_v11  ;;  %v1566_v11 = vstv %s3187_s10  ;;  %s2302_s10 = smov 93   ;;  %vm1223_vm4 = vcmask 252928  }
 0x34b   : > { %v977_v56 = vsel %vm855_vm12, %v973_v51, 0.0  ;;  %v1568_v28 = vmul.f32 %v1566_v11, %v2576_v49  ;;  %v1567_v32 = vmul.f32 %v1566_v11, %v2574_v48 }
 0x34c   : > { %v3204_v33 = vadd.f32 %v977_v56, %v3006_v44  ;;  %v1588_v44 = vmul.f32 %v1587_v30, %v2580_v52  ;;  %v1589_v56 = vmul.f32 %v1587_v30, %v2582_v53 }
 0x34d   : > { %v1570_v37 = vadd.f32 %v1568_v28, %v1564_v7  ;;  %v1662_v7 = vstv %s3243_s29  ;;  %v1637_v28 = vstv %s3248_s8 }
 0x34e   : > { %1550 = vrot.lane.b32.xlu1 %v1545_v38, %s2298_s22  ;;  %1548 = vrot.lane.b32.xlu2 %v1544_v8, %s2298_s22  ;;  %v1594_v3 = vadd.f32 %v1592_v18, %v1588_v44  ;;  %v1593_v44 = vmul.f32 %v1591_v57, %v2576_v49  ;;  %s2304_s22 = smov 77  }
 0x34f   : > { %1523 = vrot.lane.b32.xlu0 %v1518_v16, %s2296_s7  ;;  %v1617_v16 = vmul.f32 %v1616_v34, %v2574_v48  ;;  %s2303_s7 = smov 109  }
 0x350   : > { %v1021_v17 = vpop.permute.xlu1 %1020  ;;  %v3216_v5 = vpop.permute.xlu2 %1125 }
 0x351   : > { %v1023_v22 = vsel %vm1022_vm1, %v3119_v46, %v1021_v17  ;;  %v1026_v25 = vsel %vm1022_vm1, %v1021_v17, 0.0  ;;  %v996_v26 = vpop.permute.xlu0 %995  ;;  %v1131_v30 = vsel %vm1127_vm8, %v3216_v5, 0.0  ;;  %vm1375_vm1 = vcmask 375808  }
 0x352   : > { %v1027_v14 = vsel %vm855_vm12, %v1023_v22, 0.0  ;;  %v1028_v21 = vsel %vm856_vm14, %v1026_v25, 0.0  ;;  %v998_v23 = vsel %vm997_vm5, %v994_v29, %v996_v26  ;;  %v1001_v54 = vsel %vm997_vm5, %v996_v26, 0.0 }
 0x353   : > { %v3233_v10 = vadd.f32 %v1027_v14, %v3137_v0  ;;  %v3235_v39 = vadd.f32 %v1028_v21, %v931_v42  ;;  %v1002_v46 = vsel %vm855_vm12, %v998_v23, 0.0  ;;  %v1003_v24 = vsel %vm856_vm14, %v1001_v54, 0.0 }
 0x354   : > { %v1004_v40 = vadd.f32 %v1002_v46, %v3147_v15  ;;  %v1005_v31 = vadd.f32 %v1003_v24, %v3150_v9  ;;  %v1096_v0 = vsel %vm1092_vm6, 0.0, %v3191_v43  ;;  %v1569_v42 = vadd.f32 %v1567_v32, %v1563_v35 }
 0x355   : > { %v1612_v29 = vstv %s3210_s20  ;;  %v1663_v22 = vmul.f32 %v1662_v7, %v2580_v52  ;;  %v1639_v25 = vmul.f32 %v1637_v28, %v2582_v53  ;;  %v1638_v14 = vmul.f32 %v1637_v28, %v2580_v52  ;;  %s3308_s20 = sld [smem:[#allocation6 + $0x98]] }
 0x356   : > { %1598 = vrot.lane.b32.xlu1 %v1594_v3, %s2299_s13  ;;  %1575 = vrot.lane.b32.xlu2 %v1570_v37, %s2300_s23  ;;  %v3254_v15 = vadd.f32 %v1096_v0, %v1004_v40  ;;  %v1614_v47 = vmul.f32 %v1612_v29, %v2582_v53  ;;  %v1613_v50 = vmul.f32 %v1612_v29, %v2580_v52  ;;  %vm1150_vm12 = vcmask 785408  }
 0x357   : > { %1573 = vrot.lane.b32.xlu0 %v1569_v42, %s2300_s23  ;;  %v1687_v42 = vstv %s3281_s6  ;;  %vm1198_vm14 = vcmask 384000   ;;  %vm1357_vm5 = vcmp.lt.s32.totalorder %v2814_v20, 14  ;;  %s231_s23 = scalar_lea.vmem [#allocation7], %s1882_s3  ;;  %s1774_s3 = scalar_lea.sflag [#allocation4], %s2428_s14 }
 0x358   : > { %v1067_v9 = vpop.permute.xlu1 %1066  ;;  %v3258_v45 = vpop.permute.xlu2 %1169  ;;  %v1620_v17 = vadd.f32 %v1618_v58, %v1614_v47  ;;  %v1689_v34 = vmul.f32 %v1687_v42, %v2582_v53  ;;  %v1664_v47 = vmul.f32 %v1662_v7, %v2582_v53  ;;  %s1786_s19 = sshll.u32 %s231_s23, 4  ;;  %s1787_s19 = int_to_ptr.vmem [resolvable:$true] %s1786_s19 }
 0x359   : > { %v1073_v51 = vsel %vm281_vm2, 0.0, %v1067_v9  ;;  %v1044_v55 = vpop.permute.xlu0 %1043 }
 0x35a   : > { %v3266_v61 = vadd.f32 %v1073_v51, %v3204_v33  ;;  %v1048_v38 = vsel %vm1047_vm7, %v1044_v55, %v3161_v19  ;;  %v1051_v8 = vsel %vm1047_vm7, 0.0, %v1044_v55  ;;  %v1619_v33 = vadd.f32 %v1617_v16, %v1613_v50 }
 0x35b   : > { %v1052_v2 = vadd.f32 %v1051_v8, %v3134_v27  ;;  %v1053_v11 = vadd.f32 %v1048_v38, %v3178_v12  ;;  %v1595_v19 = vadd.f32 %v1593_v44, %v1589_v56  ;;  %v1666_v27 = vstv %s3252_s5 }
 0x35c   : > { %v1641_v12 = vstv %s3256_s30  ;;  %v1667_v54 = vmul.f32 %v1666_v27, %v2574_v48  ;;  %v1668_v56 = vmul.f32 %v1666_v27, %v2576_v49  ;;  %v1104_v44 = vstv %s3308_s20 }
 0x35d   : > { %v3277_v18 = vadd.f32 %v1131_v30, %v1053_v11  ;;  %v1643_v46 = vmul.f32 %v1641_v12, %v2576_v49  ;;  %v1642_v40 = vmul.f32 %v1641_v12, %v2574_v48  ;;  %v1100_v11 = vstv %s3302_s11 }
 0x35e   : > { %1625 = vrot.lane.b32.xlu1 %v1620_v17, %s2301_s12  ;;  %1623 = vrot.lane.b32.xlu2 %v1619_v33, %s2301_s12  ;;  %v1669_v3 = vadd.f32 %v1667_v54, %v1663_v22  ;;  %v1670_v16 = vadd.f32 %v1668_v56, %v1664_v47  ;;  %vm1400_vm7 = vcmask 244736  }
 0x35f   : > { %1600 = vrot.lane.b32.xlu0 %v1595_v19, %s2299_s13  ;;  %v1645_v37 = vadd.f32 %v1643_v46, %v1639_v25  ;;  %v1644_v0 = vadd.f32 %v1642_v40, %v1638_v14  ;;  %s1785_s13 = scalar_lea.hbm %s3513_s4, %s1994_s26 }
 0x360   : > { %v1091_v57 = vpop.permute.xlu1 %1090  ;;  %v3288_v35 = vpop.permute.xlu2 %1196  ;;  %s1788_s5 = sshll.u32 %s1785_s13, 4  ;;  %s1789_s5 = int_to_ptr.hbm [resolvable:$true] %s1788_s5 }
 0x361   : > { %v1093_v26 = vsel %vm1092_vm6, %v3191_v43, %v1091_v57  ;;  %v1069_v32 = vpop.permute.xlu0 %1068  ;;  %v1691_v43 = vstv %s3286_s9  ;;  %vm1358_vm6 = vcmp.lt.s32.totalorder %v2765_v41, 14  ;;  %s2194_s30 = sshra.s32 %s1789_s5, 4  ;;  %s2195_s30 = int_to_ptr.hbm [resolvable:$true] %s2194_s30 }
 0x362   : > { %v1098_v21 = vadd.f32 %v1093_v26, %v1005_v31  ;;  %v1070_v23 = vsel %vm281_vm2, %v1067_v9, %v1069_v32  ;;  %v1693_v51 = vmul.f32 %v1691_v43, %v2576_v49  ;;  %v1692_v55 = vmul.f32 %v1691_v43, %v2574_v48  ;;  %s2196_s6 = scalar_lea.hbm %s2195_s30, 64  ;;  %p2201_p0 = scmp.lt.s32.totalorder %s2195_s30, %s3513_s4 }
 0x363   : > { %v1075_v24 = vadd.f32 %v1070_v23, %v3106_v36  ;;  %v1688_v36 = vmul.f32 %v1687_v42, %v2580_v52  ;;  %vm1248_vm2 = vcmask 121856   ;;  %v1101_v26 = vmul.f32 %v1100_v11, %v2580_v52  ;;  %p2197_p4 = scmp.ne.s32.totalorder %s2195_s30, %s2196_s6 }
 0x364   : > { %v1695_v38 = vadd.f32 %v1693_v51, %v1689_v34  ;;  %v1102_v23 = vmul.f32 %v1100_v11, %v2582_v53 }
 0x365   : > { %v1694_v8 = vadd.f32 %v1692_v55, %v1688_v36  ;;  %p2198_p6 = pnand %p2197_p4, %p2383_p11 }
 0x366   : > { %1673 = vrot.lane.b32.xlu1 %v1669_v3, %s2302_s10  ;;  %1650 = vrot.lane.b32.xlu2 %v1645_v37, %s2303_s7 }
 0x367   : > { %1648 = vrot.lane.b32.xlu0 %v1644_v0, %s2303_s7  ;;  %p2199_p13 = pneg %p2198_p6 }
 0x368   : > { %v1147_v31 = vpop.permute.xlu1 %1146  ;;  %v3304_v29 = vpop.permute.xlu2 %1244 }
 0x369   : > { %v1124_v9 = vpop.permute.xlu0 %1123  ;;  %v1252_v30 = vsel %vm1248_vm2, 0.0, %v3304_v29 }
 0x36a   : > { %v1128_v50 = vsel %vm1127_vm8, %v1124_v9, %v3216_v5  ;;  %v1253_v32 = vsel %vm1180_vm13, %v1252_v30, 0.0  ;;  %vm1450_vm8 = vcmask 1031168  }
 0x36b   : > { %v1132_v58 = vadd.f32 %v1128_v50, %v1052_v2 }
 0x36e   : > { %1700 = vrot.lane.b32.xlu1 %v1695_v38, %s2304_s22  ;;  %1698 = vrot.lane.b32.xlu2 %v1694_v8, %s2304_s22 }
 0x36f   : > { %1675 = vrot.lane.b32.xlu0 %v1670_v16, %s2302_s10  ;;  %s2200_s10 = scalar_lea.hbm %s3513_s4, 128 }
 0x370   : > { %v1172_v5 = vpop.permute.xlu1 %1171  ;;  %v1272_v2 = vpop.permute.xlu2 %1271  ;;  %p2202_p3 = scmp.lt.s32.totalorder %s2200_s10, %s2196_s6 }
 0x371   : > { %v1174_v17 = vsel %vm1173_vm9, %v3258_v45, %v1172_v5  ;;  %v1177_v33 = vsel %vm1173_vm9, %v1172_v5, 0.0  ;;  %v1277_v19 = vsel %vm1273_vm10, %v1272_v2, 0.0  ;;  %v1149_v7 = vpop.permute.xlu0 %1148  ;;  %vm1425_vm9 = vcmask 113664  }
 0x372   : > { %v1178_v28 = vadd.f32 %v1174_v17, %v3254_v15  ;;  %v1179_v27 = vadd.f32 %v1177_v33, %v1098_v21  ;;  %v1279_v12 = vsel %vm1181_vm11, %v1277_v19, 0.0  ;;  %v1151_v57 = vsel %vm1150_vm12, %v1147_v31, %v1149_v7  ;;  %p2203_p5 = por %p2202_p3, %p2201_p0 }
 0x373   : > { %v1154_v22 = vsel %vm1150_vm12, %v1149_v7, 0.0  ;;  %v1155_v25 = vadd.f32 %v1151_v57, %v3266_v61  ;;  %v1105_v15 = vmul.f32 %v1104_v44, %v2574_v48  ;;  %v1106_v21 = vmul.f32 %v1104_v44, %v2576_v49 }
 0x374   : > { %v3331_v45 = vadd.f32 %v1279_v12, %v1179_v27  ;;  %v1156_v14 = vadd.f32 %v1154_v22, %v1075_v24  ;;  %vm1552_vm12 = vcmask 367616   ;;  %p2204_p8 = pnand %p2203_p5, %p2199_p13 }
 0x375   : > { %v3334_v54 = vadd.f32 %v1253_v32, %v1155_v25  ;;  %v1107_v46 = vadd.f32 %v1105_v15, %v1101_v26  ;;  %v1108_v52 = vadd.f32 %v1106_v21, %v1102_v23 }
 0x377   : > { %v1109_v37 = vadd.f32 %v1107_v46, %v3233_v10  ;;  %v1110_v24 = vadd.f32 %v1108_v52, %v3235_v39 }
 0x378   : > { %v1220_v61 = vpop.permute.xlu1 %1219  ;;  %v1320_v40 = vpop.permute.xlu2 %1319 }
 0x379   : > { %v1227_v3 = vsel %vm1223_vm4, 0.0, %v1220_v61  ;;  %v1195_v0 = vpop.permute.xlu0 %1194 }
 0x37a   : > { %v1228_v53 = vsel %vm1180_vm13, %v1227_v3, 0.0  ;;  %v1199_v48 = vsel %vm1198_vm14, %v1195_v0, %v3288_v35  ;;  %v1202_v42 = vsel %vm1198_vm14, 0.0, %v1195_v0  ;;  %vm1525_vm14 = vcmask 637952  }
 0x37b   : > { %v1230_v43 = vadd.f32 %v1228_v53, %v1132_v58  ;;  %v1203_v49 = vsel %vm1180_vm13, %v1202_v42, 0.0  ;;  %v1204_v31 = vsel %vm1181_vm11, %v1199_v48, 0.0 }
 0x37c   : > { %v1205_v34 = vadd.f32 %v1203_v49, %v1109_v37  ;;  %v1206_v36 = vadd.f32 %v1204_v31, %v1110_v24 }
 0x380   : > { %v1247_v10 = vpop.permute.xlu1 %1246  ;;  %v1347_v9 = vpop.permute.xlu2 %1346 }
 0x381   : > { %v1249_v47 = vsel %vm1248_vm2, %v3304_v29, %v1247_v10  ;;  %v1352_v39 = vsel %vm1348_vm15, %v1347_v9, 0.0  ;;  %v1222_v50 = vpop.permute.xlu0 %1221  ;;  %vm1500_vm2 = vcmask 769024  }
 0x382   : > { %v1254_v35 = vsel %vm1181_vm11, %v1249_v47, 0.0  ;;  %v1224_v51 = vsel %vm1223_vm4, %v1220_v61, %v1222_v50  ;;  %v1354_v56 = vsel %vm1181_vm11, %v1352_v39, 0.0  ;;  %vm1652_vm4 = vcmask 891904  }
 0x383   : > { %v1256_v55 = vadd.f32 %v1254_v35, %v1156_v14  ;;  %v1229_v58 = vsel %vm1181_vm11, %v1224_v51, 0.0 }
 0x384   : > { %v1231_v38 = vadd.f32 %v1229_v58, %v3277_v18 }
 0x385   : > { %v3359_v8 = vadd.f32 %v1354_v56, %v1256_v55 }
 0x388   : > { %v1295_v29 = vpop.permute.xlu1 %1294  ;;  %v1397_v30 = vpop.permute.xlu2 %1396 }
 0x389   : > { %v1270_v16 = vpop.permute.xlu0 %1269  ;;  %v1404_v56 = vsel %vm1400_vm7, 0.0, %v1397_v30 }
 0x38a   : > { %v1274_v5 = vsel %vm1273_vm10, %v1270_v16, %v1272_v2  ;;  %vm1475_vm10 = vcmask 900096  }
 0x38b   : > { %v1278_v11 = vsel %vm1180_vm13, %v1274_v5, 0.0 }
 0x38c   : > { %v1280_v44 = vadd.f32 %v1278_v11, %v1178_v28  ;;  %v1405_v11 = vsel %vm1357_vm5, %v1404_v56, 0.0 }
 0x390   : > { %v1322_v17 = vpop.permute.xlu1 %1321  ;;  %v1424_v21 = vpop.permute.xlu2 %1423 }
 0x391   : > { %v1324_v33 = vsel %vm1323_vm0, %v1320_v40, %v1322_v17  ;;  %v1327_v19 = vsel %vm1323_vm0, %v1322_v17, 0.0  ;;  %v1297_v7 = vpop.permute.xlu0 %1296  ;;  %vm1577_vm0 = vcmask 236544  }
 0x392   : > { %v1328_v18 = vsel %vm1180_vm13, %v1324_v33, 0.0  ;;  %v1329_v27 = vsel %vm1181_vm11, %v1327_v19, 0.0  ;;  %v1299_v12 = vsel %vm1298_vm3, %v1295_v29, %v1297_v7  ;;  %v1302_v57 = vsel %vm1298_vm3, %v1297_v7, 0.0 }
 0x393   : > { %v3368_v2 = vadd.f32 %v1328_v18, %v1230_v43  ;;  %v3370_v22 = vadd.f32 %v1329_v27, %v1231_v38  ;;  %v1303_v28 = vsel %vm1180_vm13, %v1299_v12, 0.0  ;;  %v1304_v25 = vsel %vm1181_vm11, %v1302_v57, 0.0 }
 0x394   : > { %v1305_v26 = vadd.f32 %v1303_v28, %v1205_v34  ;;  %v1306_v32 = vadd.f32 %v1304_v25, %v1206_v36  ;;  %vm1534_vm11 = vcmp.lt.s32.totalorder %v2814_v20, 13  ;;  %vm1627_vm3 = vcmask 1022976  }
 0x396   : > { %v1407_v18 = vadd.f32 %v1405_v11, %v1305_v26 }
 0x398   : > { %v1372_v14 = vpop.permute.xlu1 %1371  ;;  %v1472_v48 = vpop.permute.xlu2 %1471 }
 0x399   : > { %v1379_v23 = vsel %vm1375_vm1, 0.0, %v1372_v14  ;;  %v1345_v15 = vpop.permute.xlu0 %1344 }
 0x39a   : > { %v1380_v46 = vsel %vm1357_vm5, %v1379_v23, 0.0  ;;  %v1349_v61 = vsel %vm1348_vm15, %v1345_v15, %v1347_v9  ;;  %vm1602_vm15 = vcmask 105472  }
 0x39b   : > { %v3380_v40 = vadd.f32 %v1380_v46, %v1280_v44  ;;  %v1353_v52 = vsel %vm1180_vm13, %v1349_v61, 0.0  ;;  %vm1535_vm13 = vcmp.lt.s32.totalorder %v2765_v41, 13 }
 0x39c   : > { %v1355_v3 = vadd.f32 %v1353_v52, %v3334_v54 }
 0x3a0   : > { %v1399_v37 = vpop.permute.xlu1 %1398  ;;  %v1499_v31 = vpop.permute.xlu2 %1498 }
 0x3a1   : > { %v1374_v0 = vpop.permute.xlu0 %1373  ;;  %v1401_v55 = vsel %vm1400_vm7, %v1397_v30, %v1399_v37  ;;  %v1504_v16 = vsel %vm1500_vm2, %v1499_v31, 0.0 }
 0x3a2   : > { %v1376_v53 = vsel %vm1375_vm1, %v1372_v14, %v1374_v0  ;;  %v1506_v27 = vsel %vm1358_vm6, %v1504_v16, 0.0  ;;  %vm1702_vm1 = vcmask 629760  }
 0x3a3   : > { %v1381_v24 = vsel %vm1358_vm6, %v1376_v53, 0.0 }
 0x3a4   : > { %v1383_v42 = vadd.f32 %v1381_v24, %v3331_v45  ;;  %v1406_v45 = vsel %vm1358_vm6, %v1401_v55, 0.0 }
 0x3a5   : > { %v1408_v29 = vadd.f32 %v1406_v45, %v1306_v32 }
 0x3a7   : > { %v1508_v28 = vadd.f32 %v1506_v27, %v1408_v29 }
 0x3a8   : > { %v1447_v43 = vpop.permute.xlu1 %1446  ;;  %v1549_v10 = vpop.permute.xlu2 %1548 }
 0x3a9   : > { %v1422_v49 = vpop.permute.xlu0 %1421  ;;  %v1556_v12 = vsel %vm1552_vm12, 0.0, %v1549_v10 }
 0x3aa   : > { %v1426_v44 = vsel %vm1425_vm9, %v1422_v49, %v1424_v21  ;;  %v1429_v17 = vsel %vm1425_vm9, 0.0, %v1422_v49  ;;  %v1557_v21 = vsel %vm1534_vm11, %v1556_v12, 0.0 }
 0x3ab   : > { %v1430_v25 = vsel %vm1357_vm5, %v1429_v17, 0.0  ;;  %v1431_v32 = vsel %vm1358_vm6, %v1426_v44, 0.0 }
 0x3ac   : > { %v1432_v52 = vadd.f32 %v1430_v25, %v3368_v2  ;;  %v1433_v37 = vadd.f32 %v1431_v32, %v3370_v22 }
 0x3b0   : > { %v1474_v34 = vpop.permute.xlu1 %1473  ;;  %v1576_v50 = vpop.permute.xlu2 %1575 }
 0x3b1   : > { %v1449_v36 = vpop.permute.xlu0 %1448  ;;  %v1476_v33 = vsel %vm1475_vm10, %v1472_v48, %v1474_v34  ;;  %v1479_v7 = vsel %vm1475_vm10, %v1474_v34, 0.0 }
 0x3b2   : > { %v1451_v38 = vsel %vm1450_vm8, %v1447_v43, %v1449_v36  ;;  %v1454_v57 = vsel %vm1450_vm8, %v1449_v36, 0.0  ;;  %v1480_v26 = vsel %vm1357_vm5, %v1476_v33, 0.0  ;;  %v1481_v14 = vsel %vm1358_vm6, %v1479_v7, 0.0 }
 0x3b3   : > { %v1455_v30 = vsel %vm1357_vm5, %v1451_v38, 0.0  ;;  %v1456_v46 = vsel %vm1358_vm6, %v1454_v57, 0.0  ;;  %v1482_v0 = vadd.f32 %v1480_v26, %v3380_v40 }
 0x3b4   : > { %v1457_v23 = vadd.f32 %v1455_v30, %v1355_v3  ;;  %v1483_v3 = vadd.f32 %v1481_v14, %v1383_v42  ;;  %v1458_v49 = vadd.f32 %v1456_v46, %v3359_v8 }
 0x3b6   : > { %v1559_v2 = vadd.f32 %v1557_v21, %v1457_v23 }
 0x3b8   : > { %v1522_v9 = vpop.permute.xlu1 %1521  ;;  %v1624_v58 = vpop.permute.xlu2 %1623 }
 0x3b9   : > { %v1497_v47 = vpop.permute.xlu0 %1496 }
 0x3ba   : > { %v1501_v15 = vsel %vm1500_vm2, %v1497_v47, %v1499_v31 }
 0x3bb   : > { %v1505_v53 = vsel %vm1357_vm5, %v1501_v15, 0.0 }
 0x3bc   : > { %v1507_v55 = vadd.f32 %v1505_v53, %v1407_v18 }
 0x3c0   : > { %v1551_v54 = vpop.permute.xlu1 %1550  ;;  %v1651_v61 = vpop.permute.xlu2 %1650 }
 0x3c1   : > { %v1524_v39 = vpop.permute.xlu0 %1523  ;;  %v1553_v31 = vsel %vm1552_vm12, %v1549_v10, %v1551_v54 }
 0x3c2   : > { %v1526_v24 = vsel %vm1525_vm14, %v1522_v9, %v1524_v39  ;;  %v1529_v48 = vsel %vm1525_vm14, %v1524_v39, 0.0  ;;  %v1558_v54 = vsel %vm1535_vm13, %v1553_v31, 0.0  ;;  %v1656_v39 = vsel %vm1652_vm4, %v1651_v61, 0.0 }
 0x3c3   : > { %v1530_v9 = vsel %vm1357_vm5, %v1526_v24, 0.0  ;;  %v1531_v8 = vsel %vm1358_vm6, %v1529_v48, 0.0  ;;  %v1658_v11 = vsel %vm1535_vm13, %v1656_v39, 0.0  ;;  %vm1677_vm5 = vcmask 760832  }
 0x3c4   : > { %v1532_v56 = vadd.f32 %v1530_v9, %v1432_v52  ;;  %v1533_v38 = vadd.f32 %v1531_v8, %v1433_v37 }
 0x3c8   : > { %v3389_v35 = vpop.permute.xlu1 %1598  ;;  %v1699_v17 = vpop.permute.xlu2 %1698 }
 0x3c9   : > { %v1574_v51 = vpop.permute.xlu0 %1573  ;;  %v1606_v34 = vsel %vm1602_vm15, 0.0, %v3389_v35 }
 0x3ca   : > { %v1578_v22 = vsel %vm1577_vm0, %v1574_v51, %v1576_v50  ;;  %v1581_v40 = vsel %vm1577_vm0, 0.0, %v1574_v51  ;;  %v1607_v50 = vsel %vm1534_vm11, %v1606_v34, 0.0 }
 0x3cb   : > { %v1582_v51 = vsel %vm1534_vm11, %v1581_v40, 0.0  ;;  %v1609_v44 = vadd.f32 %v1607_v50, %v1507_v55 }
 0x3cc   : > { %v1584_v33 = vadd.f32 %v1582_v51, %v1482_v0 }
 0x3d0   : > { %v1626_v5 = vpop.permute.xlu1 %1625 }
 0x3d1   : > { %v1601_v19 = vpop.permute.xlu0 %1600  ;;  %v1628_v42 = vsel %vm1627_vm3, %v1624_v58, %v1626_v5  ;;  %v1631_v47 = vsel %vm1627_vm3, %v1626_v5, 0.0  ;;  %v1583_v58 = vsel %vm1535_vm13, %v1578_v22, 0.0  ;;  %v1560_v5 = vadd.f32 %v1558_v54, %v1458_v49 }
 0x3d2   : > { %v1603_v10 = vsel %vm1602_vm15, %v3389_v35, %v1601_v19  ;;  %v1632_v45 = vsel %vm1534_vm11, %v1628_v42, 0.0  ;;  %v1633_v35 = vsel %vm1535_vm13, %v1631_v47, 0.0  ;;  %v1585_v19 = vadd.f32 %v1583_v58, %v1483_v3 }
 0x3d3   : > { %v1608_v29 = vsel %vm1535_vm13, %v1603_v10, 0.0  ;;  %v1634_v7 = vadd.f32 %v1632_v45, %v1532_v56  ;;  %v1635_v30 = vadd.f32 %v1633_v35, %v1533_v38  ;;  %v1660_v52 = vadd.f32 %v1658_v11, %v1560_v5 }
 0x3d4   : > { %v1610_v27 = vadd.f32 %v1608_v29, %v1508_v28 }
 0x3d8   : > { %v1674_v43 = vpop.permute.xlu1 %1673 }
 0x3d9   : > { %v1649_v36 = vpop.permute.xlu0 %1648 }
 0x3da   : > { %v1653_v16 = vsel %vm1652_vm4, %v1649_v36, %v1651_v61 }
 0x3db   : > { %v1657_v12 = vsel %vm1534_vm11, %v1653_v16, 0.0 }
 0x3dc   : > { %v1659_v37 = vadd.f32 %v1657_v12, %v1559_v2 }
 0x3e0   : > { %v1701_v18 = vpop.permute.xlu1 %1700 }
 0x3e1   : > { %v1703_v57 = vsel %vm1702_vm1, %v1699_v17, %v1701_v18  ;;  %v1706_v25 = vsel %vm1702_vm1, %v1701_v18, 0.0  ;;  %v1676_v32 = vpop.permute.xlu0 %1675 }
 0x3e2   : > { %v1707_v26 = vsel %vm1534_vm11, %v1703_v57, 0.0  ;;  %v1708_v14 = vsel %vm1535_vm13, %v1706_v25, 0.0  ;;  %v1678_v23 = vsel %vm1677_vm5, %v1674_v43, %v1676_v32  ;;  %v1681_v15 = vsel %vm1677_vm5, %v1676_v32, 0.0 }
 0x3e3   : > { %v1709_v21 = vadd.f32 %v1707_v26, %v1609_v44  ;;  %v1710_v46 = vadd.f32 %v1708_v14, %v1610_v27  ;;  %v1682_v28 = vsel %vm1534_vm11, %v1678_v23, 0.0  ;;  %v1683_v61 = vsel %vm1535_vm13, %v1681_v15, 0.0 }
 0x3e4   : > { %v1684_v0 = vadd.f32 %v1682_v28, %v1584_v33  ;;  %v1685_v3 = vadd.f32 %v1683_v61, %v1585_v19 }
 0x3e5   : > { %v1711_v53 = vadd.f32 %v1709_v21, %v1634_v7  ;;  %v1712_v24 = vadd.f32 %v1710_v46, %v1635_v30 }
 0x3e6   : > { %v1713_v48 = vadd.f32 %v1684_v0, %v1659_v37  ;;  %v1714_v49 = vadd.f32 %v1685_v3, %v1660_v52 }
 0x3e8   : > { %v1715_v31 = vadd.f32 %v1713_v48, %v1711_v53  ;;  %v1716_v34 = vadd.f32 %v1714_v49, %v1712_v24 }
 0x3ea   : > { %v1717_v43 = vsub.f32 0.0, %v1715_v31  ;;  %v1718_v36 = vsub.f32 0.0, %v1716_v34 }
 0x3ec   : > { %v1719_v22 = vmul.f32 1.442695, %v1717_v43  ;;  %v1721_v40 = vmul.f32 1.442695, %v1718_v36 }
 0x3ee   : > { %2127 = vpow2.f32 %v1719_v22 }
 0x3ef   : > { %2129 = vpow2.f32 %v1721_v40 }
 0x3f4   : > { %v2128_v20 = vpop.eup %2127 }
 0x3f5   : > { %v2130_v42 = vpop.eup %2129  ;;  %v1723_v41 = vadd.f32 1.0, %v2128_v20 }
 0x3f6   : > { %v1724_v47 = vadd.f32 1.0, %v2130_v42 }
 0x3f7   : > { %2131 = vrcp.f32 %v1723_v41  ;;  %v1736_v54 = vand.u32 2147483648, %v1723_v41  ;;  %v1734_v51 = vand.u32 2147483647, %v1723_v41  ;;  %vm1730_vm8 = vweird.f32 %v1723_v41 }
 0x3f8   : > { %2133 = vrcp.f32 %v1724_v47  ;;  %v1751_v58 = vand.u32 2147483648, %v1724_v47  ;;  %v1749_v35 = vand.u32 2147483647, %v1724_v47  ;;  %vm1745_vm9 = vweird.f32 %v1724_v47 }
 0x3f9   : > { %v1737_v38 = vor.u32 1.1754944e-38, %v1736_v54  ;;  %vm1735_vm10 = vcmp.eq.f32.partialorder %v1734_v51, 8.507059e+37 }
 0x3fa   : > { %v1752_v5 = vor.u32 1.1754944e-38, %v1751_v58  ;;  %vm1750_vm12 = vcmp.eq.f32.partialorder %v1749_v35, 8.507059e+37 }
 0x3fd   : > { %v2132_v2 = vpop.eup %2131 }
 0x3fe   : > { %v2134_v55 = vpop.eup %2133  ;;  %v1726_v9 = vmul.f32 %v2132_v2, %v1723_v41  ;;  %vm1731_vm6 = vweird.f32 %v2132_v2 }
 0x3ff   : > { %v1741_v8 = vmul.f32 %v2134_v55, %v1724_v47  ;;  %vm1746_vm7 = vweird.f32 %v2134_v55  ;;  %vm1732_vm2 = vmor %vm1730_vm8, %vm1731_vm6 }
 0x400   : > { %v1727_v10 = vsub.f32 1.0, %v1726_v9  ;;  %vm1747_vm11 = vmor %vm1745_vm9, %vm1746_vm7 }
 0x401   : > { %v1742_v39 = vsub.f32 1.0, %v1741_v8 }
 0x402   : > { %v1728_v50 = vmul.f32 %v2132_v2, %v1727_v10 }
 0x403   : > { %v1743_v45 = vmul.f32 %v2134_v55, %v1742_v39 }
 0x404   : > { %v1729_v56 = vadd.f32 %v2132_v2, %v1728_v50 }
 0x405   : > { %v1744_v29 = vadd.f32 %v2134_v55, %v1743_v45 }
 0x406   : > { %v1733_v16 = vsel %vm1732_vm2, %v2132_v2, %v1729_v56 }
 0x407   : > { %v1738_v11 = vsel %vm1735_vm10, %v1737_v38, %v1733_v16  ;;  %v1748_v44 = vsel %vm1747_vm11, %v2134_v55, %v1744_v29 }
 0x408   : > { %v1753_v17 = vsel %vm1750_vm12, %v1752_v5, %v1748_v44  ;;  %v1755_v33 = vperm.slane %v1738_v11, 0 }
 0x409   : > { %v1756_v19 = vperm.slane %v1753_v17, 0 }
 0x40a   : > { %v1757_v7 = vmul.f32 %v1755_v33, %v2535_v4  ;;  %v1759_v30 = vmul.f32 %v1755_v33, %v2523_v59  ;;  %v1761_v12 = vmul.f32 %v1755_v33, %v2545_v1  ;;  %v1763_v59 = vmul.f32 %v1755_v33, %v2529_v62 }
 0x40b   : > { %v1758_v18 = vmul.f32 %v1756_v19, %v2538_v6  ;;  %v1760_v27 = vmul.f32 %v1756_v19, %v2526_v60  ;;  %v1762_v57 = vmul.f32 %v1756_v19, %v2548_v13  ;;  %v1764_v60 = vmul.f32 %v1756_v19, %v2532_v63 }
 0x40c   : > { %1765 = vst [vmem:[%s231_s23] sm:$0xff] %v1757_v7 }
 0x40d   : > { %1766 = vst [vmem:[%s231_s23 + $0x8] sm:$0xff] %v1758_v18 }
 0x40e   : > { %1767 = vst [vmem:[%s231_s23 + $0x10] sm:$0xff] %v1759_v30 }
 0x40f   : > { %1768 = vst [vmem:[%s231_s23 + $0x18] sm:$0xff] %v1760_v27 }
 0x410   : > { %1769 = vst [vmem:[%s231_s23 + $0x20] sm:$0xff] %v1761_v12 }
 0x411   : > { %1770 = vst [vmem:[%s231_s23 + $0x28] sm:$0xff] %v1762_v57 }
 0x412   : > { %1771 = vst [vmem:[%s231_s23 + $0x30] sm:$0xff] %v1763_v59 }
 0x413   : > { %1772 = vst [vmem:[%s231_s23 + $0x38] sm:$0xff] %v1764_v60 }
 0x414   : > { %2207 = shalt.err (!%p2204_p8)
}
 0x415   : > { %s2305_s14 = smov 256  }
 0x416   : > { %2003 = dma.vmem_to_hbm [thread:$0]  (%p2383_p11), %s1787_s19, 1024, %s1789_s5, %s1774_s3, %s2305_s14, %s2305_s14, %s2280_s25  }
 0x417 PF: > { %s1803_s20 = sand.u32 1, %s2238_s15   ;;  %p3528_p9 = scmp.ge.s32.totalorder %s2250_s18, 2 }
 0x418   : > { %s1804_s22 = scalar_lea.sflag [#allocation4], %s1803_s20 }
 0x419   : > { %p2014_p10 = pnand %p3528_p9, %p2387_p12 }
 0x41b   : > { %p2015_p1 = pneg %p2014_p10 }
 0x41d   : > { %2233 = dma.done.wait (%p2015_p1), %s1804_s22, 1024  }
 0x41e   : > { %2235 = vsyncadd (%p2015_p1), %s1804_s22, 4294966272  ;;  %p18_p2 = scmp.ge.s32.totalorder %s2356_s21, 4   ;;  %s3529_s15 = smov %s2242_s16 }
 0x41f   : > { %s3530_s16 = smov %s2246_s17  ;;  %s3531_s17 = smov %s2368_s24 }
 0x420   : > { %s3532_s18 = smov %s2356_s21  ;;  %20 = sbr.rel (!%p18_p2) target bundleno = 8 (0x8), region = 86 }
 0x425   :  { %1810 = vsyncpa [#allocation3], 1 }
 0x426   :  { %1812 = vsyncpa [#allocation3 + $0x1], 1 }
 0x427   :  { %1813 = vsyncpa [#allocation4], 1 }
 0x428   :  { %1815 = vsyncpa [#allocation4 + $0x1], 1 }
 0x429   :  { %1816 = vsyncpa [#allocation5], 1 }
 0x42a   :  { %1818 = vsyncpa [#allocation5 + $0x1], 1 }

</bundles_post_ra>
